<compile_context>
chip_gen: v6e
topology: v6e:2x2x1
jax: 0.10.0
libtpu: 0.0.40
codegen_flags: <defaults>
</compile_context>

<pallas_src>
import numpy as np
import jax
import jax.numpy as jnp
from jax import lax
from jax.experimental import pallas as pl
from jax.experimental.pallas import tpu as pltpu

# ------------------------- synthetic model dims ---------------------------
C_LAT = 4        # unet.config.in_channels
H = W = 16       # latent spatial (512//8 -> shrunk to 16 for the test)
HW = H * W
SEQ = 8          # tokenizer.model_max_length (shrunk)
EMB = 32         # text-encoder hidden size (shrunk)
DH = 32          # attention head dim
C_COND = 3       # controlnet conditioning image channels
C_IMG = 3        # decoded image channels
VOCAB = 64
GUIDANCE_SCALE = 7.5
VAE_SCALE = 0.18215
NUM_TRAIN_TIMESTEPS = 1000
NUM_INFERENCE_STEPS = 4
NUM_COEFS = 4    # per-step DDIM scalars; temb values appended after these


# ------------------------------ fused kernel -------------------------------
def make_pipeline_kernel(batch, n_steps, guidance_scale):
    """Grid-less kernel: full DDIM loop + ControlNet last step + VAE decode.

    Activation layout is channel-major with batch folded into lanes:
    (C, B*HW) = (4, 512) so every matmul N-dim / store is lane-dense.
    """
    g = float(guidance_scale)

    def kernel(coef_ref,        # SMEM (steps, 4+C_LAT): DDIM coefs + timestep emb
               lat0_ref,        # VMEM (C_LAT, B*HW)   initial noise latents
               ehs_ref,         # VMEM (B*2*SEQ, EMB)  per-batch [neg;pos] text emb
               secret_ref,      # VMEM (C_COND, B*HW)  controlnet conditioning
               wq_t_ref,        # (DH, C_LAT)  (1/sqrt(DH) pre-folded)
               wk_ref,          # (EMB, DH)
               wv_t_ref,        # (DH, EMB)
               wo_t_ref,        # (C_LAT, DH)
               wc_t_ref,        # (C_LAT, C_COND)  controlnet 1x1 conv
               wd_t_ref,        # (C_IMG, C_LAT)   vae-decoder 1x1 conv
               bd_ref,          # (C_IMG, 1)
               img_ref):        # out: (C_IMG, B*HW)
        # ------------- step-invariant work hoisted out of the loop -------------
        ehs = ehs_ref[...]                                   # (B*2*SEQ, EMB)
        wk = wk_ref[...]
        wv_t = wv_t_ref[...]
        k_b, vt_b = [], []
        for b in range(batch):                               # static tiny batch
            ehs_b = ehs[b * 2 * SEQ:(b + 1) * 2 * SEQ, :]    # (2*SEQ, EMB) [neg;pos]
            k_b.append(jnp.dot(ehs_b, wk,
                               preferred_element_type=jnp.float32))        # (2*SEQ, DH)
            vt_b.append(lax.dot_general(wv_t, ehs_b, (((1,), (1,)), ((), ())),
                                        preferred_element_type=jnp.float32))  # (DH, 2*SEQ)

        # ControlNet residual: one 1x1 conv total (only consumed on last step).
        # TODO(synk): real ControlNet emits per-resolution down/mid residuals
        # consumed inside the UNet; here a single residual is added to eps.
        res = jnp.dot(wc_t_ref[...], secret_ref[...],
                      preferred_element_type=jnp.float32)    # (C_LAT, B*HW)

        wq_t = wq_t_ref[...]
        wo_t = wo_t_ref[...]

        ch_iota = lax.broadcasted_iota(jnp.int32, (C_LAT, 1), 0)

        def temb_col(step):
            # Rebuild the (C_LAT, 1) timestep-embedding column from SMEM scalars.
            t = jnp.zeros((C_LAT, 1), jnp.float32)
            for c in range(C_LAT):
                t = jnp.where(ch_iota == c, coef_ref[step, NUM_COEFS + c], t)
            return t

        def seg_softmax(s, scale):
            # Softmax over the SEQ rows of ONE CFG branch, pre-scaled by the
            # guidance weight (folds CFG into the attention matmul).
            m = jnp.max(s, axis=0, keepdims=True)
            p = jnp.exp(s - m)
            denom = jnp.sum(p, axis=0, keepdims=True)
            return p * (scale * pl.reciprocal(denom, approx=True))

        def ddim_step(lat, step, use_controlnet):
            sqrt_1m_at = coef_ref[step, 0]
            inv_sqrt_at = coef_ref[step, 1]
            sqrt_ap = coef_ref[step, 2]
            sqrt_1m_ap = coef_ref[step, 3]

            h = lat + temb_col(step)                                      # (C_LAT, B*HW)
            q_t = jnp.dot(wq_t, h, preferred_element_type=jnp.float32)    # (DH, B*HW)

            attn_cols = []
            for b in range(batch):
                qb = q_t[:, b * HW:(b + 1) * HW]                          # (DH, HW)
                s = jnp.dot(k_b[b], qb,
                            preferred_element_type=jnp.float32)           # (2*SEQ, HW)
                # Segmented softmax per 8-row CFG half; halves weighted (1-g)/g.
                p_all = jnp.concatenate(
                    [seg_softmax(s[:SEQ], 1.0 - g),
                     seg_softmax(s[SEQ:], g)], axis=0)                    # (2*SEQ, HW)
                attn_cols.append(jnp.dot(vt_b[b], p_all,
                                         preferred_element_type=jnp.float32))  # (DH, HW)
            attn_t = jnp.concatenate(attn_cols, axis=1)                   # (DH, B*HW)
            out_t = jnp.dot(wo_t, attn_t,
                            preferred_element_type=jnp.float32)           # (C_LAT, B*HW)

            # eps = (1-g)*eps_uncond + g*eps_cond, with the shared (h [+res])
            # term factored out (the CFG weighting is already inside out_t).
            eps = out_t + h
            if use_controlnet:          # static gate: traced only into last step
                eps = eps + res
            # DDIM (eta=0) scheduler step
            x0 = (lat - sqrt_1m_at * eps) * inv_sqrt_at
            return sqrt_ap * x0 + sqrt_1m_ap * eps

        lat = lat0_ref[...]
        # Steps 0 .. n-2: plain UNet (no ControlNet residual), fully unrolled.
        lat = lax.fori_loop(0, n_steps - 1,
                            lambda s, l: ddim_step(l, s, False),
                            lat, unroll=True)
        # Last step: ControlNet residual injected into the noise prediction.
        lat = ddim_step(lat, n_steps - 1, True)

        # ---------------- VAE-decode stand-in + postprocess ----------------
        # TODO(synk): real VAE decoder upsamples latents 8x spatially; the
        # synthetic decoder keeps latent resolution, exact postprocess math.
        x = lat * (1.0 / VAE_SCALE)
        y = jnp.dot(wd_t_ref[...], x, preferred_element_type=jnp.float32) + bd_ref[...]
        y = jnp.clip(y * 0.5 + 0.5, 0.0, 1.0) * 255.0
        img_ref[...] = jnp.floor(y)     # emulate .to(torch.uint8).float()

    return kernel


# --------------------------- pallas wrapper --------------------------------
def run_pipeline(table, lat0_cm, ehs, secret_cm, params):
    batch = lat0_cm.shape[1] // HW
    n_steps = table.shape[0]
    kernel = make_pipeline_kernel(batch, n_steps, GUIDANCE_SCALE)

    smem = pl.BlockSpec(memory_space=pltpu.MemorySpace.SMEM)
    vmem = pl.BlockSpec(memory_space=pltpu.MemorySpace.VMEM)

    # TODO(synk): on v7x, a leading "parallel" grid axis over batch / HW tiles
    # would engage the second TensorCore; skipped at this toy size where the
    # per-step grid overhead would dominate.
    return pl.pallas_call(
        kernel,
        out_shape=jax.ShapeDtypeStruct((C_IMG, batch * HW), jnp.float32),
        in_specs=[smem] + [vmem] * 10,
        out_specs=vmem,
    )(table, lat0_cm, ehs, secret_cm,
      params["wq_t"], params["wk"], params["wv_t"], params["wo_t"],
      params["wc_t"], params["wd_t"], params["bd"])


# --------------------------- glue / parameters ------------------------------
def init_params():
    def nrm(key, shape, scale):
        return (scale * jax.random.normal(jax.random.PRNGKey(key), shape)).astype(jnp.float32)
    # Weights stored in the channel-major (output, input) orientation used in
    # the kernel; 1/sqrt(DH) attention scale folded into wq_t at init (free).
    return {
        "embed_table": nrm(10, (VOCAB, EMB), 0.5),
        "wq_t": nrm(11, (DH, C_LAT), 0.3) * jnp.float32(1.0 / np.sqrt(DH)),
        "wk":   nrm(12, (EMB, DH), 0.2),
        "wv_t": nrm(13, (DH, EMB), 0.2),
        "wo_t": nrm(14, (C_LAT, DH), 0.3),
        "wc_t": nrm(15, (C_LAT, C_COND), 0.3),   # controlnet 1x1 conv
        "wd_t": nrm(16, (C_IMG, C_LAT), 0.5),    # vae-decoder 1x1 conv
        "bd":   nrm(17, (C_IMG, 1), 0.1),
    }


def make_scheduler_table(num_inference_steps):
    """DDIM coefficients + timestep embeddings, one (steps, 4+C_LAT) SMEM table."""
    betas = np.linspace(1e-4, 0.02, NUM_TRAIN_TIMESTEPS, dtype=np.float64)
    alphas_cumprod = np.cumprod(1.0 - betas)
    step_ratio = NUM_TRAIN_TIMESTEPS // num_inference_steps
    timesteps = (np.arange(num_inference_steps) * step_ratio).round()[::-1].astype(np.int64)

    table = np.zeros((num_inference_steps, NUM_COEFS + C_LAT), dtype=np.float64)
    ks = np.arange(C_LAT, dtype=np.float64)
    for i, t in enumerate(timesteps):
        prev_t = int(t) - step_ratio
        alpha_t = alphas_cumprod[int(t)]
        # TODO(synk): diffusers' DDIM with set_alpha_to_one=True would use 1.0 as
        # final_alpha_cumprod; we keep the alphas_cumprod[0] fallback.
        alpha_prev = alphas_cumprod[prev_t] if prev_t >= 0 else alphas_cumprod[0]
        table[i, 0:NUM_COEFS] = [np.sqrt(1.0 - alpha_t), 1.0 / np.sqrt(alpha_t),
                                 np.sqrt(alpha_prev), np.sqrt(1.0 - alpha_prev)]
        table[i, NUM_COEFS:] = np.sin((float(t) + 1.0) * 0.001 * (ks + 1.0))
    return jnp.asarray(table, dtype=jnp.float32)


@jax.jit
def forward(secret_inputs_nchw, prompt_ids, negative_prompt_ids, noise_key,
            params, table):
    """Mirrors StableDiffusionControlnetPipeline.forward at synthetic scale."""
    batch = prompt_ids.shape[0]

    # prepare_latents -> channel-major (C_LAT, B*HW): cols [b*HW:(b+1)*HW] = batch b.
    latents0 = jax.random.normal(noise_key, (batch, C_LAT, H, W), dtype=jnp.float32)
    lat_cm = latents0.transpose(1, 0, 2, 3).reshape(C_LAT, batch * HW)

    # prepare_prompts: per batch, [negative ; positive] embeddings stacked on rows.
    # TODO(synk): real pipeline runs a CLIP text encoder; here a learned embedding table.
    neg_emb = params["embed_table"][negative_prompt_ids]      # (B, SEQ, EMB)
    pos_emb = params["embed_table"][prompt_ids]               # (B, SEQ, EMB)
    ehs = jnp.concatenate([neg_emb, pos_emb], axis=1).reshape(batch * 2 * SEQ, EMB)

    secret_cm = secret_inputs_nchw.transpose(1, 0, 2, 3).reshape(C_COND, batch * HW)

    # DDIMLoop + decode_latents: one fused, grid-less pallas_call.
    img_cm = run_pipeline(table, lat_cm, ehs, secret_cm, params)   # (C_IMG, B*HW)
    return img_cm.reshape(C_IMG, batch, H, W).transpose(1, 0, 2, 3)


# --------------------------------- main -------------------------------------
if __name__ == "__main__":
    params = init_params()
    table = make_scheduler_table(NUM_INFERENCE_STEPS)

    key = jax.random.PRNGKey(0)
    k1, k2, _ = jax.random.split(key, 3)
    batch = 2
    secret_inputs = jax.random.uniform(k1, (batch, C_COND, H, W), dtype=jnp.float32)
    prompt_ids = jax.random.randint(k2, (batch, SEQ), 0, VOCAB)
    negative_prompt_ids = jnp.zeros((batch, SEQ), dtype=jnp.int32)   # '' prompts

    noise_key = jax.random.PRNGKey(0)   # prepare_latents(seed=0)
    images = forward(secret_inputs, prompt_ids, negative_prompt_ids, noise_key,
                     params, table)
    images = jax.block_until_ready(images)

    assert images.shape == (batch, C_IMG, H, W), images.shape
    assert bool(jnp.all(images >= 0.0)) and bool(jnp.all(images <= 255.0))
    print("KERNEL_OK")
</pallas_src>

<mosaic_0001>
module attributes {stable_mosaic.version = 11 : i64} {
  func.func @kernel(%arg0: memref<4x8xf32, #tpu.memory_space<smem>>, %arg1: memref<4x512xf32, #tpu.memory_space<vmem>>, %arg2: memref<32x32xf32, #tpu.memory_space<vmem>>, %arg3: memref<3x512xf32, #tpu.memory_space<vmem>>, %arg4: memref<32x4xf32, #tpu.memory_space<vmem>>, %arg5: memref<32x32xf32, #tpu.memory_space<vmem>>, %arg6: memref<32x32xf32, #tpu.memory_space<vmem>>, %arg7: memref<4x32xf32, #tpu.memory_space<vmem>>, %arg8: memref<4x3xf32, #tpu.memory_space<vmem>>, %arg9: memref<3x4xf32, #tpu.memory_space<vmem>>, %arg10: memref<3x1xf32, #tpu.memory_space<vmem>>, %arg11: memref<3x512xf32, #tpu.memory_space<vmem>>) attributes {dimension_semantics = [], scalar_prefetch = 0 : i64, scratch_operands = 0 : i64, tpu.core_type = #tpu.core_type<tc>} {
    %c0 = arith.constant 0 : index
    %c0_0 = arith.constant 0 : index
    %0 = vector.load %arg2[%c0, %c0_0] : memref<32x32xf32, #tpu.memory_space<vmem>>, vector<32x32xf32>
    %c0_1 = arith.constant 0 : index
    %c0_2 = arith.constant 0 : index
    %1 = vector.load %arg5[%c0_1, %c0_2] : memref<32x32xf32, #tpu.memory_space<vmem>>, vector<32x32xf32>
    %c0_3 = arith.constant 0 : index
    %c0_4 = arith.constant 0 : index
    %2 = vector.load %arg6[%c0_3, %c0_4] : memref<32x32xf32, #tpu.memory_space<vmem>>, vector<32x32xf32>
    %3 = vector.extract_strided_slice %0 {offsets = [0, 0], sizes = [16, 32], strides = [1, 1]} : vector<32x32xf32> to vector<16x32xf32>
    %cst = arith.constant dense<0.000000e+00> : vector<16x32xf32>
    %4 = tpu.matmul %3, %1, %cst {dimension_numbers = #tpu.dot_dimension_numbers<[1], [0], [0], [1], [0, 0, 1, 1], [], []>} : vector<16x32xf32>, vector<32x32xf32>, vector<16x32xf32> -> vector<16x32xf32>
    %cst_5 = arith.constant dense<0.000000e+00> : vector<32x16xf32>
    %5 = tpu.matmul %2, %3, %cst_5 {dimension_numbers = #tpu.dot_dimension_numbers<[1], [1], [0], [0], [0, 0, 1, 0], [], []>} : vector<32x32xf32>, vector<16x32xf32>, vector<32x16xf32> -> vector<32x16xf32>
    %6 = vector.extract_strided_slice %0 {offsets = [16, 0], sizes = [16, 32], strides = [1, 1]} : vector<32x32xf32> to vector<16x32xf32>
    %cst_6 = arith.constant dense<0.000000e+00> : vector<16x32xf32>
    %7 = tpu.matmul %6, %1, %cst_6 {dimension_numbers = #tpu.dot_dimension_numbers<[1], [0], [0], [1], [0, 0, 1, 1], [], []>} : vector<16x32xf32>, vector<32x32xf32>, vector<16x32xf32> -> vector<16x32xf32>
    %cst_7 = arith.constant dense<0.000000e+00> : vector<32x16xf32>
    %8 = tpu.matmul %2, %6, %cst_7 {dimension_numbers = #tpu.dot_dimension_numbers<[1], [1], [0], [0], [0, 0, 1, 0], [], []>} : vector<32x32xf32>, vector<16x32xf32>, vector<32x16xf32> -> vector<32x16xf32>
    %c0_8 = arith.constant 0 : index
    %c0_9 = arith.constant 0 : index
    %9 = vector.load %arg8[%c0_8, %c0_9] : memref<4x3xf32, #tpu.memory_space<vmem>>, vector<4x3xf32>
    %c0_10 = arith.constant 0 : index
    %c0_11 = arith.constant 0 : index
    %10 = vector.load %arg3[%c0_10, %c0_11] : memref<3x512xf32, #tpu.memory_space<vmem>>, vector<3x512xf32>
    %cst_12 = arith.constant dense<0.000000e+00> : vector<4x512xf32>
    %11 = tpu.matmul %9, %10, %cst_12 {dimension_numbers = #tpu.dot_dimension_numbers<[1], [0], [0], [1], [0, 0, 1, 1], [], []>} : vector<4x3xf32>, vector<3x512xf32>, vector<4x512xf32> -> vector<4x512xf32>
    %c0_13 = arith.constant 0 : index
    %c0_14 = arith.constant 0 : index
    %12 = vector.load %arg4[%c0_13, %c0_14] : memref<32x4xf32, #tpu.memory_space<vmem>>, vector<32x4xf32>
    %c0_15 = arith.constant 0 : index
    %c0_16 = arith.constant 0 : index
    %13 = vector.load %arg7[%c0_15, %c0_16] : memref<4x32xf32, #tpu.memory_space<vmem>>, vector<4x32xf32>
    %14 = tpu.iota {dimensions = array<i32: 0>} : vector<4x1xi32>
    %c0_17 = arith.constant 0 : index
    %c0_18 = arith.constant 0 : index
    %15 = vector.load %arg1[%c0_17, %c0_18] : memref<4x512xf32, #tpu.memory_space<vmem>>, vector<4x512xf32>
    %c0_i32 = arith.constant 0 : i32
    %16 = arith.index_cast %c0_i32 : i32 to index
    %c0_19 = arith.constant 0 : index
    %17 = memref.load %arg0[%16, %c0_19] : memref<4x8xf32, #tpu.memory_space<smem>>
    %18 = arith.index_cast %c0_i32 : i32 to index
    %c1 = arith.constant 1 : index
    %19 = memref.load %arg0[%18, %c1] : memref<4x8xf32, #tpu.memory_space<smem>>
    %20 = arith.index_cast %c0_i32 : i32 to index
    %c2 = arith.constant 2 : index
    %21 = memref.load %arg0[%20, %c2] : memref<4x8xf32, #tpu.memory_space<smem>>
    %22 = arith.index_cast %c0_i32 : i32 to index
    %c3 = arith.constant 3 : index
    %23 = memref.load %arg0[%22, %c3] : memref<4x8xf32, #tpu.memory_space<smem>>
    %cst_20 = arith.constant 0.000000e+00 : f32
    %24 = vector.broadcast %cst_20 : f32 to vector<4x1xf32>
    %c0_i32_21 = arith.constant 0 : i32
    %25 = vector.broadcast %c0_i32_21 : i32 to vector<4x1xi32>
    %26 = arith.cmpi eq, %14, %25 : vector<4x1xi32>
    %27 = arith.index_cast %c0_i32 : i32 to index
    %c4 = arith.constant 4 : index
    %28 = memref.load %arg0[%27, %c4] : memref<4x8xf32, #tpu.memory_space<smem>>
    %29 = vector.broadcast %28 : f32 to vector<4x1xf32>
    %30 = arith.select %26, %29, %24 : vector<4x1xi1>, vector<4x1xf32>
    %c1_i32 = arith.constant 1 : i32
    %31 = vector.broadcast %c1_i32 : i32 to vector<4x1xi32>
    %32 = arith.cmpi eq, %14, %31 : vector<4x1xi32>
    %33 = arith.index_cast %c0_i32 : i32 to index
    %c5 = arith.constant 5 : index
    %34 = memref.load %arg0[%33, %c5] : memref<4x8xf32, #tpu.memory_space<smem>>
    %35 = vector.broadcast %34 : f32 to vector<4x1xf32>
    %36 = arith.select %32, %35, %30 : vector<4x1xi1>, vector<4x1xf32>
    %c2_i32 = arith.constant 2 : i32
    %37 = vector.broadcast %c2_i32 : i32 to vector<4x1xi32>
    %38 = arith.cmpi eq, %14, %37 : vector<4x1xi32>
    %39 = arith.index_cast %c0_i32 : i32 to index
    %c6 = arith.constant 6 : index
    %40 = memref.load %arg0[%39, %c6] : memref<4x8xf32, #tpu.memory_space<smem>>
    %41 = vector.broadcast %40 : f32 to vector<4x1xf32>
    %42 = arith.select %38, %41, %36 : vector<4x1xi1>, vector<4x1xf32>
    %c3_i32 = arith.constant 3 : i32
    %43 = vector.broadcast %c3_i32 : i32 to vector<4x1xi32>
    %44 = arith.cmpi eq, %14, %43 : vector<4x1xi32>
    %45 = arith.index_cast %c0_i32 : i32 to index
    %c7 = arith.constant 7 : index
    %46 = memref.load %arg0[%45, %c7] : memref<4x8xf32, #tpu.memory_space<smem>>
    %47 = vector.broadcast %46 : f32 to vector<4x1xf32>
    %48 = arith.select %44, %47, %42 : vector<4x1xi1>, vector<4x1xf32>
    %49 = vector.broadcast %48 : vector<4x1xf32> to vector<4x512xf32>
    %50 = arith.addf %15, %49 : vector<4x512xf32>
    %cst_22 = arith.constant dense<0.000000e+00> : vector<32x512xf32>
    %51 = tpu.matmul %12, %50, %cst_22 {dimension_numbers = #tpu.dot_dimension_numbers<[1], [0], [0], [1], [0, 0, 1, 1], [], []>} : vector<32x4xf32>, vector<4x512xf32>, vector<32x512xf32> -> vector<32x512xf32>
    %52 = vector.extract_strided_slice %51 {offsets = [0, 0], sizes = [32, 256], strides = [1, 1]} : vector<32x512xf32> to vector<32x256xf32>
    %cst_23 = arith.constant dense<0.000000e+00> : vector<16x256xf32>
    %53 = tpu.matmul %4, %52, %cst_23 {dimension_numbers = #tpu.dot_dimension_numbers<[1], [0], [0], [1], [0, 0, 1, 1], [], []>} : vector<16x32xf32>, vector<32x256xf32>, vector<16x256xf32> -> vector<16x256xf32>
    %54 = vector.extract_strided_slice %53 {offsets = [0, 0], sizes = [8, 256], strides = [1, 1]} : vector<16x256xf32> to vector<8x256xf32>
    %cst_24 = arith.constant dense<0xFF800000> : vector<256xf32>
    %55 = vector.multi_reduction <maximumf>, %54, %cst_24 [0] : vector<8x256xf32> to vector<256xf32>
    %56 = vector.shape_cast %55 : vector<256xf32> to vector<1x256xf32>
    %57 = vector.broadcast %56 : vector<1x256xf32> to vector<8x256xf32>
    %58 = arith.subf %54, %57 : vector<8x256xf32>
    %59 = math.exp %58 : vector<8x256xf32>
    %cst_25 = arith.constant dense<0.000000e+00> : vector<256xf32>
    %60 = vector.multi_reduction <add>, %59, %cst_25 [0] : vector<8x256xf32> to vector<256xf32>
    %61 = vector.shape_cast %60 : vector<256xf32> to vector<1x256xf32>
    %62 = tpu.reciprocal %61 {approx = true} : vector<1x256xf32> -> vector<1x256xf32>
    %cst_26 = arith.constant -6.500000e+00 : f32
    %63 = vector.broadcast %cst_26 : f32 to vector<1x256xf32>
    %64 = arith.mulf %63, %62 : vector<1x256xf32>
    %65 = vector.broadcast %64 : vector<1x256xf32> to vector<8x256xf32>
    %66 = arith.mulf %59, %65 : vector<8x256xf32>
    %67 = vector.extract_strided_slice %53 {offsets = [8, 0], sizes = [8, 256], strides = [1, 1]} : vector<16x256xf32> to vector<8x256xf32>
    %cst_27 = arith.constant dense<0xFF800000> : vector<256xf32>
    %68 = vector.multi_reduction <maximumf>, %67, %cst_27 [0] : vector<8x256xf32> to vector<256xf32>
    %69 = vector.shape_cast %68 : vector<256xf32> to vector<1x256xf32>
    %70 = vector.broadcast %69 : vector<1x256xf32> to vector<8x256xf32>
    %71 = arith.subf %67, %70 : vector<8x256xf32>
    %72 = math.exp %71 : vector<8x256xf32>
    %cst_28 = arith.constant dense<0.000000e+00> : vector<256xf32>
    %73 = vector.multi_reduction <add>, %72, %cst_28 [0] : vector<8x256xf32> to vector<256xf32>
    %74 = vector.shape_cast %73 : vector<256xf32> to vector<1x256xf32>
    %75 = tpu.reciprocal %74 {approx = true} : vector<1x256xf32> -> vector<1x256xf32>
    %cst_29 = arith.constant 7.500000e+00 : f32
    %76 = vector.broadcast %cst_29 : f32 to vector<1x256xf32>
    %77 = arith.mulf %76, %75 : vector<1x256xf32>
    %78 = vector.broadcast %77 : vector<1x256xf32> to vector<8x256xf32>
    %79 = arith.mulf %72, %78 : vector<8x256xf32>
    %80 = tpu.concatenate %66, %79 in 0 : vector<8x256xf32>, vector<8x256xf32> -> vector<16x256xf32>
    %cst_30 = arith.constant dense<0.000000e+00> : vector<32x256xf32>
    %81 = tpu.matmul %5, %80, %cst_30 {dimension_numbers = #tpu.dot_dimension_numbers<[1], [0], [0], [1], [0, 0, 1, 1], [], []>} : vector<32x16xf32>, vector<16x256xf32>, vector<32x256xf32> -> vector<32x256xf32>
    %82 = vector.extract_strided_slice %51 {offsets = [0, 256], sizes = [32, 256], strides = [1, 1]} : vector<32x512xf32> to vector<32x256xf32>
    %cst_31 = arith.constant dense<0.000000e+00> : vector<16x256xf32>
    %83 = tpu.matmul %7, %82, %cst_31 {dimension_numbers = #tpu.dot_dimension_numbers<[1], [0], [0], [1], [0, 0, 1, 1], [], []>} : vector<16x32xf32>, vector<32x256xf32>, vector<16x256xf32> -> vector<16x256xf32>
    %84 = vector.extract_strided_slice %83 {offsets = [0, 0], sizes = [8, 256], strides = [1, 1]} : vector<16x256xf32> to vector<8x256xf32>
    %cst_32 = arith.constant dense<0xFF800000> : vector<256xf32>
    %85 = vector.multi_reduction <maximumf>, %84, %cst_32 [0] : vector<8x256xf32> to vector<256xf32>
    %86 = vector.shape_cast %85 : vector<256xf32> to vector<1x256xf32>
    %87 = vector.broadcast %86 : vector<1x256xf32> to vector<8x256xf32>
    %88 = arith.subf %84, %87 : vector<8x256xf32>
    %89 = math.exp %88 : vector<8x256xf32>
    %cst_33 = arith.constant dense<0.000000e+00> : vector<256xf32>
    %90 = vector.multi_reduction <add>, %89, %cst_33 [0] : vector<8x256xf32> to vector<256xf32>
    %91 = vector.shape_cast %90 : vector<256xf32> to vector<1x256xf32>
    %92 = tpu.reciprocal %91 {approx = true} : vector<1x256xf32> -> vector<1x256xf32>
    %cst_34 = arith.constant -6.500000e+00 : f32
    %93 = vector.broadcast %cst_34 : f32 to vector<1x256xf32>
    %94 = arith.mulf %93, %92 : vector<1x256xf32>
    %95 = vector.broadcast %94 : vector<1x256xf32> to vector<8x256xf32>
    %96 = arith.mulf %89, %95 : vector<8x256xf32>
    %97 = vector.extract_strided_slice %83 {offsets = [8, 0], sizes = [8, 256], strides = [1, 1]} : vector<16x256xf32> to vector<8x256xf32>
    %cst_35 = arith.constant dense<0xFF800000> : vector<256xf32>
    %98 = vector.multi_reduction <maximumf>, %97, %cst_35 [0] : vector<8x256xf32> to vector<256xf32>
    %99 = vector.shape_cast %98 : vector<256xf32> to vector<1x256xf32>
    %100 = vector.broadcast %99 : vector<1x256xf32> to vector<8x256xf32>
    %101 = arith.subf %97, %100 : vector<8x256xf32>
    %102 = math.exp %101 : vector<8x256xf32>
    %cst_36 = arith.constant dense<0.000000e+00> : vector<256xf32>
    %103 = vector.multi_reduction <add>, %102, %cst_36 [0] : vector<8x256xf32> to vector<256xf32>
    %104 = vector.shape_cast %103 : vector<256xf32> to vector<1x256xf32>
    %105 = tpu.reciprocal %104 {approx = true} : vector<1x256xf32> -> vector<1x256xf32>
    %cst_37 = arith.constant 7.500000e+00 : f32
    %106 = vector.broadcast %cst_37 : f32 to vector<1x256xf32>
    %107 = arith.mulf %106, %105 : vector<1x256xf32>
    %108 = vector.broadcast %107 : vector<1x256xf32> to vector<8x256xf32>
    %109 = arith.mulf %102, %108 : vector<8x256xf32>
    %110 = tpu.concatenate %96, %109 in 0 : vector<8x256xf32>, vector<8x256xf32> -> vector<16x256xf32>
    %cst_38 = arith.constant dense<0.000000e+00> : vector<32x256xf32>
    %111 = tpu.matmul %8, %110, %cst_38 {dimension_numbers = #tpu.dot_dimension_numbers<[1], [0], [0], [1], [0, 0, 1, 1], [], []>} : vector<32x16xf32>, vector<16x256xf32>, vector<32x256xf32> -> vector<32x256xf32>
    %112 = tpu.concatenate %81, %111 in 1 : vector<32x256xf32>, vector<32x256xf32> -> vector<32x512xf32>
    %cst_39 = arith.constant dense<0.000000e+00> : vector<4x512xf32>
    %113 = tpu.matmul %13, %112, %cst_39 {dimension_numbers = #tpu.dot_dimension_numbers<[1], [0], [0], [1], [0, 0, 1, 1], [], []>} : vector<4x32xf32>, vector<32x512xf32>, vector<4x512xf32> -> vector<4x512xf32>
    %114 = arith.addf %113, %50 : vector<4x512xf32>
    %115 = vector.broadcast %17 : f32 to vector<4x512xf32>
    %116 = arith.mulf %115, %114 : vector<4x512xf32>
    %117 = arith.subf %15, %116 : vector<4x512xf32>
    %118 = vector.broadcast %19 : f32 to vector<4x512xf32>
    %119 = arith.mulf %117, %118 : vector<4x512xf32>
    %120 = vector.broadcast %21 : f32 to vector<4x512xf32>
    %121 = arith.mulf %120, %119 : vector<4x512xf32>
    %122 = vector.broadcast %23 : f32 to vector<4x512xf32>
    %123 = arith.mulf %122, %114 : vector<4x512xf32>
    %124 = arith.addf %121, %123 : vector<4x512xf32>
    %c1_i32_40 = arith.constant 1 : i32
    %125 = arith.index_cast %c1_i32_40 : i32 to index
    %c0_41 = arith.constant 0 : index
    %126 = memref.load %arg0[%125, %c0_41] : memref<4x8xf32, #tpu.memory_space<smem>>
    %127 = arith.index_cast %c1_i32_40 : i32 to index
    %c1_42 = arith.constant 1 : index
    %128 = memref.load %arg0[%127, %c1_42] : memref<4x8xf32, #tpu.memory_space<smem>>
    %129 = arith.index_cast %c1_i32_40 : i32 to index
    %c2_43 = arith.constant 2 : index
    %130 = memref.load %arg0[%129, %c2_43] : memref<4x8xf32, #tpu.memory_space<smem>>
    %131 = arith.index_cast %c1_i32_40 : i32 to index
    %c3_44 = arith.constant 3 : index
    %132 = memref.load %arg0[%131, %c3_44] : memref<4x8xf32, #tpu.memory_space<smem>>
    %cst_45 = arith.constant 0.000000e+00 : f32
    %133 = vector.broadcast %cst_45 : f32 to vector<4x1xf32>
    %c0_i32_46 = arith.constant 0 : i32
    %134 = vector.broadcast %c0_i32_46 : i32 to vector<4x1xi32>
    %135 = arith.cmpi eq, %14, %134 : vector<4x1xi32>
    %136 = arith.index_cast %c1_i32_40 : i32 to index
    %c4_47 = arith.constant 4 : index
    %137 = memref.load %arg0[%136, %c4_47] : memref<4x8xf32, #tpu.memory_space<smem>>
    %138 = vector.broadcast %137 : f32 to vector<4x1xf32>
    %139 = arith.select %135, %138, %133 : vector<4x1xi1>, vector<4x1xf32>
    %c1_i32_48 = arith.constant 1 : i32
    %140 = vector.broadcast %c1_i32_48 : i32 to vector<4x1xi32>
    %141 = arith.cmpi eq, %14, %140 : vector<4x1xi32>
    %142 = arith.index_cast %c1_i32_40 : i32 to index
    %c5_49 = arith.constant 5 : index
    %143 = memref.load %arg0[%142, %c5_49] : memref<4x8xf32, #tpu.memory_space<smem>>
    %144 = vector.broadcast %143 : f32 to vector<4x1xf32>
    %145 = arith.select %141, %144, %139 : vector<4x1xi1>, vector<4x1xf32>
    %c2_i32_50 = arith.constant 2 : i32
    %146 = vector.broadcast %c2_i32_50 : i32 to vector<4x1xi32>
    %147 = arith.cmpi eq, %14, %146 : vector<4x1xi32>
    %148 = arith.index_cast %c1_i32_40 : i32 to index
    %c6_51 = arith.constant 6 : index
    %149 = memref.load %arg0[%148, %c6_51] : memref<4x8xf32, #tpu.memory_space<smem>>
    %150 = vector.broadcast %149 : f32 to vector<4x1xf32>
    %151 = arith.select %147, %150, %145 : vector<4x1xi1>, vector<4x1xf32>
    %c3_i32_52 = arith.constant 3 : i32
    %152 = vector.broadcast %c3_i32_52 : i32 to vector<4x1xi32>
    %153 = arith.cmpi eq, %14, %152 : vector<4x1xi32>
    %154 = arith.index_cast %c1_i32_40 : i32 to index
    %c7_53 = arith.constant 7 : index
    %155 = memref.load %arg0[%154, %c7_53] : memref<4x8xf32, #tpu.memory_space<smem>>
    %156 = vector.broadcast %155 : f32 to vector<4x1xf32>
    %157 = arith.select %153, %156, %151 : vector<4x1xi1>, vector<4x1xf32>
    %158 = vector.broadcast %157 : vector<4x1xf32> to vector<4x512xf32>
    %159 = arith.addf %124, %158 : vector<4x512xf32>
    %cst_54 = arith.constant dense<0.000000e+00> : vector<32x512xf32>
    %160 = tpu.matmul %12, %159, %cst_54 {dimension_numbers = #tpu.dot_dimension_numbers<[1], [0], [0], [1], [0, 0, 1, 1], [], []>} : vector<32x4xf32>, vector<4x512xf32>, vector<32x512xf32> -> vector<32x512xf32>
    %161 = vector.extract_strided_slice %160 {offsets = [0, 0], sizes = [32, 256], strides = [1, 1]} : vector<32x512xf32> to vector<32x256xf32>
    %cst_55 = arith.constant dense<0.000000e+00> : vector<16x256xf32>
    %162 = tpu.matmul %4, %161, %cst_55 {dimension_numbers = #tpu.dot_dimension_numbers<[1], [0], [0], [1], [0, 0, 1, 1], [], []>} : vector<16x32xf32>, vector<32x256xf32>, vector<16x256xf32> -> vector<16x256xf32>
    %163 = vector.extract_strided_slice %162 {offsets = [0, 0], sizes = [8, 256], strides = [1, 1]} : vector<16x256xf32> to vector<8x256xf32>
    %cst_56 = arith.constant dense<0xFF800000> : vector<256xf32>
    %164 = vector.multi_reduction <maximumf>, %163, %cst_56 [0] : vector<8x256xf32> to vector<256xf32>
    %165 = vector.shape_cast %164 : vector<256xf32> to vector<1x256xf32>
    %166 = vector.broadcast %165 : vector<1x256xf32> to vector<8x256xf32>
    %167 = arith.subf %163, %166 : vector<8x256xf32>
    %168 = math.exp %167 : vector<8x256xf32>
    %cst_57 = arith.constant dense<0.000000e+00> : vector<256xf32>
    %169 = vector.multi_reduction <add>, %168, %cst_57 [0] : vector<8x256xf32> to vector<256xf32>
    %170 = vector.shape_cast %169 : vector<256xf32> to vector<1x256xf32>
    %171 = tpu.reciprocal %170 {approx = true} : vector<1x256xf32> -> vector<1x256xf32>
    %cst_58 = arith.constant -6.500000e+00 : f32
    %172 = vector.broadcast %cst_58 : f32 to vector<1x256xf32>
    %173 = arith.mulf %172, %171 : vector<1x256xf32>
    %174 = vector.broadcast %173 : vector<1x256xf32> to vector<8x256xf32>
    %175 = arith.mulf %168, %174 : vector<8x256xf32>
    %176 = vector.extract_strided_slice %162 {offsets = [8, 0], sizes = [8, 256], strides = [1, 1]} : vector<16x256xf32> to vector<8x256xf32>
    %cst_59 = arith.constant dense<0xFF800000> : vector<256xf32>
    %177 = vector.multi_reduction <maximumf>, %176, %cst_59 [0] : vector<8x256xf32> to vector<256xf32>
    %178 = vector.shape_cast %177 : vector<256xf32> to vector<1x256xf32>
    %179 = vector.broadcast %178 : vector<1x256xf32> to vector<8x256xf32>
    %180 = arith.subf %176, %179 : vector<8x256xf32>
    %181 = math.exp %180 : vector<8x256xf32>
    %cst_60 = arith.constant dense<0.000000e+00> : vector<256xf32>
    %182 = vector.multi_reduction <add>, %181, %cst_60 [0] : vector<8x256xf32> to vector<256xf32>
    %183 = vector.shape_cast %182 : vector<256xf32> to vector<1x256xf32>
    %184 = tpu.reciprocal %183 {approx = true} : vector<1x256xf32> -> vector<1x256xf32>
    %cst_61 = arith.constant 7.500000e+00 : f32
    %185 = vector.broadcast %cst_61 : f32 to vector<1x256xf32>
    %186 = arith.mulf %185, %184 : vector<1x256xf32>
    %187 = vector.broadcast %186 : vector<1x256xf32> to vector<8x256xf32>
    %188 = arith.mulf %181, %187 : vector<8x256xf32>
    %189 = tpu.concatenate %175, %188 in 0 : vector<8x256xf32>, vector<8x256xf32> -> vector<16x256xf32>
    %cst_62 = arith.constant dense<0.000000e+00> : vector<32x256xf32>
    %190 = tpu.matmul %5, %189, %cst_62 {dimension_numbers = #tpu.dot_dimension_numbers<[1], [0], [0], [1], [0, 0, 1, 1], [], []>} : vector<32x16xf32>, vector<16x256xf32>, vector<32x256xf32> -> vector<32x256xf32>
    %191 = vector.extract_strided_slice %160 {offsets = [0, 256], sizes = [32, 256], strides = [1, 1]} : vector<32x512xf32> to vector<32x256xf32>
    %cst_63 = arith.constant dense<0.000000e+00> : vector<16x256xf32>
    %192 = tpu.matmul %7, %191, %cst_63 {dimension_numbers = #tpu.dot_dimension_numbers<[1], [0], [0], [1], [0, 0, 1, 1], [], []>} : vector<16x32xf32>, vector<32x256xf32>, vector<16x256xf32> -> vector<16x256xf32>
    %193 = vector.extract_strided_slice %192 {offsets = [0, 0], sizes = [8, 256], strides = [1, 1]} : vector<16x256xf32> to vector<8x256xf32>
    %cst_64 = arith.constant dense<0xFF800000> : vector<256xf32>
    %194 = vector.multi_reduction <maximumf>, %193, %cst_64 [0] : vector<8x256xf32> to vector<256xf32>
    %195 = vector.shape_cast %194 : vector<256xf32> to vector<1x256xf32>
    %196 = vector.broadcast %195 : vector<1x256xf32> to vector<8x256xf32>
    %197 = arith.subf %193, %196 : vector<8x256xf32>
    %198 = math.exp %197 : vector<8x256xf32>
    %cst_65 = arith.constant dense<0.000000e+00> : vector<256xf32>
    %199 = vector.multi_reduction <add>, %198, %cst_65 [0] : vector<8x256xf32> to vector<256xf32>
    %200 = vector.shape_cast %199 : vector<256xf32> to vector<1x256xf32>
    %201 = tpu.reciprocal %200 {approx = true} : vector<1x256xf32> -> vector<1x256xf32>
    %cst_66 = arith.constant -6.500000e+00 : f32
    %202 = vector.broadcast %cst_66 : f32 to vector<1x256xf32>
    %203 = arith.mulf %202, %201 : vector<1x256xf32>
    %204 = vector.broadcast %203 : vector<1x256xf32> to vector<8x256xf32>
    %205 = arith.mulf %198, %204 : vector<8x256xf32>
    %206 = vector.extract_strided_slice %192 {offsets = [8, 0], sizes = [8, 256], strides = [1, 1]} : vector<16x256xf32> to vector<8x256xf32>
    %cst_67 = arith.constant dense<0xFF800000> : vector<256xf32>
    %207 = vector.multi_reduction <maximumf>, %206, %cst_67 [0] : vector<8x256xf32> to vector<256xf32>
    %208 = vector.shape_cast %207 : vector<256xf32> to vector<1x256xf32>
    %209 = vector.broadcast %208 : vector<1x256xf32> to vector<8x256xf32>
    %210 = arith.subf %206, %209 : vector<8x256xf32>
    %211 = math.exp %210 : vector<8x256xf32>
    %cst_68 = arith.constant dense<0.000000e+00> : vector<256xf32>
    %212 = vector.multi_reduction <add>, %211, %cst_68 [0] : vector<8x256xf32> to vector<256xf32>
    %213 = vector.shape_cast %212 : vector<256xf32> to vector<1x256xf32>
    %214 = tpu.reciprocal %213 {approx = true} : vector<1x256xf32> -> vector<1x256xf32>
    %cst_69 = arith.constant 7.500000e+00 : f32
    %215 = vector.broadcast %cst_69 : f32 to vector<1x256xf32>
    %216 = arith.mulf %215, %214 : vector<1x256xf32>
    %217 = vector.broadcast %216 : vector<1x256xf32> to vector<8x256xf32>
    %218 = arith.mulf %211, %217 : vector<8x256xf32>
    %219 = tpu.concatenate %205, %218 in 0 : vector<8x256xf32>, vector<8x256xf32> -> vector<16x256xf32>
    %cst_70 = arith.constant dense<0.000000e+00> : vector<32x256xf32>
    %220 = tpu.matmul %8, %219, %cst_70 {dimension_numbers = #tpu.dot_dimension_numbers<[1], [0], [0], [1], [0, 0, 1, 1], [], []>} : vector<32x16xf32>, vector<16x256xf32>, vector<32x256xf32> -> vector<32x256xf32>
    %221 = tpu.concatenate %190, %220 in 1 : vector<32x256xf32>, vector<32x256xf32> -> vector<32x512xf32>
    %cst_71 = arith.constant dense<0.000000e+00> : vector<4x512xf32>
    %222 = tpu.matmul %13, %221, %cst_71 {dimension_numbers = #tpu.dot_dimension_numbers<[1], [0], [0], [1], [0, 0, 1, 1], [], []>} : vector<4x32xf32>, vector<32x512xf32>, vector<4x512xf32> -> vector<4x512xf32>
    %223 = arith.addf %222, %159 : vector<4x512xf32>
    %224 = vector.broadcast %126 : f32 to vector<4x512xf32>
    %225 = arith.mulf %224, %223 : vector<4x512xf32>
    %226 = arith.subf %124, %225 : vector<4x512xf32>
    %227 = vector.broadcast %128 : f32 to vector<4x512xf32>
    %228 = arith.mulf %226, %227 : vector<4x512xf32>
    %229 = vector.broadcast %130 : f32 to vector<4x512xf32>
    %230 = arith.mulf %229, %228 : vector<4x512xf32>
    %231 = vector.broadcast %132 : f32 to vector<4x512xf32>
    %232 = arith.mulf %231, %223 : vector<4x512xf32>
    %233 = arith.addf %230, %232 : vector<4x512xf32>
    %c2_i32_72 = arith.constant 2 : i32
    %234 = arith.index_cast %c2_i32_72 : i32 to index
    %c0_73 = arith.constant 0 : index
    %235 = memref.load %arg0[%234, %c0_73] : memref<4x8xf32, #tpu.memory_space<smem>>
    %236 = arith.index_cast %c2_i32_72 : i32 to index
    %c1_74 = arith.constant 1 : index
    %237 = memref.load %arg0[%236, %c1_74] : memref<4x8xf32, #tpu.memory_space<smem>>
    %238 = arith.index_cast %c2_i32_72 : i32 to index
    %c2_75 = arith.constant 2 : index
    %239 = memref.load %arg0[%238, %c2_75] : memref<4x8xf32, #tpu.memory_space<smem>>
    %240 = arith.index_cast %c2_i32_72 : i32 to index
    %c3_76 = arith.constant 3 : index
    %241 = memref.load %arg0[%240, %c3_76] : memref<4x8xf32, #tpu.memory_space<smem>>
    %cst_77 = arith.constant 0.000000e+00 : f32
    %242 = vector.broadcast %cst_77 : f32 to vector<4x1xf32>
    %c0_i32_78 = arith.constant 0 : i32
    %243 = vector.broadcast %c0_i32_78 : i32 to vector<4x1xi32>
    %244 = arith.cmpi eq, %14, %243 : vector<4x1xi32>
    %245 = arith.index_cast %c2_i32_72 : i32 to index
    %c4_79 = arith.constant 4 : index
    %246 = memref.load %arg0[%245, %c4_79] : memref<4x8xf32, #tpu.memory_space<smem>>
    %247 = vector.broadcast %246 : f32 to vector<4x1xf32>
    %248 = arith.select %244, %247, %242 : vector<4x1xi1>, vector<4x1xf32>
    %c1_i32_80 = arith.constant 1 : i32
    %249 = vector.broadcast %c1_i32_80 : i32 to vector<4x1xi32>
    %250 = arith.cmpi eq, %14, %249 : vector<4x1xi32>
    %251 = arith.index_cast %c2_i32_72 : i32 to index
    %c5_81 = arith.constant 5 : index
    %252 = memref.load %arg0[%251, %c5_81] : memref<4x8xf32, #tpu.memory_space<smem>>
    %253 = vector.broadcast %252 : f32 to vector<4x1xf32>
    %254 = arith.select %250, %253, %248 : vector<4x1xi1>, vector<4x1xf32>
    %c2_i32_82 = arith.constant 2 : i32
    %255 = vector.broadcast %c2_i32_82 : i32 to vector<4x1xi32>
    %256 = arith.cmpi eq, %14, %255 : vector<4x1xi32>
    %257 = arith.index_cast %c2_i32_72 : i32 to index
    %c6_83 = arith.constant 6 : index
    %258 = memref.load %arg0[%257, %c6_83] : memref<4x8xf32, #tpu.memory_space<smem>>
    %259 = vector.broadcast %258 : f32 to vector<4x1xf32>
    %260 = arith.select %256, %259, %254 : vector<4x1xi1>, vector<4x1xf32>
    %c3_i32_84 = arith.constant 3 : i32
    %261 = vector.broadcast %c3_i32_84 : i32 to vector<4x1xi32>
    %262 = arith.cmpi eq, %14, %261 : vector<4x1xi32>
    %263 = arith.index_cast %c2_i32_72 : i32 to index
    %c7_85 = arith.constant 7 : index
    %264 = memref.load %arg0[%263, %c7_85] : memref<4x8xf32, #tpu.memory_space<smem>>
    %265 = vector.broadcast %264 : f32 to vector<4x1xf32>
    %266 = arith.select %262, %265, %260 : vector<4x1xi1>, vector<4x1xf32>
    %267 = vector.broadcast %266 : vector<4x1xf32> to vector<4x512xf32>
    %268 = arith.addf %233, %267 : vector<4x512xf32>
    %cst_86 = arith.constant dense<0.000000e+00> : vector<32x512xf32>
    %269 = tpu.matmul %12, %268, %cst_86 {dimension_numbers = #tpu.dot_dimension_numbers<[1], [0], [0], [1], [0, 0, 1, 1], [], []>} : vector<32x4xf32>, vector<4x512xf32>, vector<32x512xf32> -> vector<32x512xf32>
    %270 = vector.extract_strided_slice %269 {offsets = [0, 0], sizes = [32, 256], strides = [1, 1]} : vector<32x512xf32> to vector<32x256xf32>
    %cst_87 = arith.constant dense<0.000000e+00> : vector<16x256xf32>
    %271 = tpu.matmul %4, %270, %cst_87 {dimension_numbers = #tpu.dot_dimension_numbers<[1], [0], [0], [1], [0, 0, 1, 1], [], []>} : vector<16x32xf32>, vector<32x256xf32>, vector<16x256xf32> -> vector<16x256xf32>
    %272 = vector.extract_strided_slice %271 {offsets = [0, 0], sizes = [8, 256], strides = [1, 1]} : vector<16x256xf32> to vector<8x256xf32>
    %cst_88 = arith.constant dense<0xFF800000> : vector<256xf32>
    %273 = vector.multi_reduction <maximumf>, %272, %cst_88 [0] : vector<8x256xf32> to vector<256xf32>
    %274 = vector.shape_cast %273 : vector<256xf32> to vector<1x256xf32>
    %275 = vector.broadcast %274 : vector<1x256xf32> to vector<8x256xf32>
    %276 = arith.subf %272, %275 : vector<8x256xf32>
    %277 = math.exp %276 : vector<8x256xf32>
    %cst_89 = arith.constant dense<0.000000e+00> : vector<256xf32>
    %278 = vector.multi_reduction <add>, %277, %cst_89 [0] : vector<8x256xf32> to vector<256xf32>
    %279 = vector.shape_cast %278 : vector<256xf32> to vector<1x256xf32>
    %280 = tpu.reciprocal %279 {approx = true} : vector<1x256xf32> -> vector<1x256xf32>
    %cst_90 = arith.constant -6.500000e+00 : f32
    %281 = vector.broadcast %cst_90 : f32 to vector<1x256xf32>
    %282 = arith.mulf %281, %280 : vector<1x256xf32>
    %283 = vector.broadcast %282 : vector<1x256xf32> to vector<8x256xf32>
    %284 = arith.mulf %277, %283 : vector<8x256xf32>
    %285 = vector.extract_strided_slice %271 {offsets = [8, 0], sizes = [8, 256], strides = [1, 1]} : vector<16x256xf32> to vector<8x256xf32>
    %cst_91 = arith.constant dense<0xFF800000> : vector<256xf32>
    %286 = vector.multi_reduction <maximumf>, %285, %cst_91 [0] : vector<8x256xf32> to vector<256xf32>
    %287 = vector.shape_cast %286 : vector<256xf32> to vector<1x256xf32>
    %288 = vector.broadcast %287 : vector<1x256xf32> to vector<8x256xf32>
    %289 = arith.subf %285, %288 : vector<8x256xf32>
    %290 = math.exp %289 : vector<8x256xf32>
    %cst_92 = arith.constant dense<0.000000e+00> : vector<256xf32>
    %291 = vector.multi_reduction <add>, %290, %cst_92 [0] : vector<8x256xf32> to vector<256xf32>
    %292 = vector.shape_cast %291 : vector<256xf32> to vector<1x256xf32>
    %293 = tpu.reciprocal %292 {approx = true} : vector<1x256xf32> -> vector<1x256xf32>
    %cst_93 = arith.constant 7.500000e+00 : f32
    %294 = vector.broadcast %cst_93 : f32 to vector<1x256xf32>
    %295 = arith.mulf %294, %293 : vector<1x256xf32>
    %296 = vector.broadcast %295 : vector<1x256xf32> to vector<8x256xf32>
    %297 = arith.mulf %290, %296 : vector<8x256xf32>
    %298 = tpu.concatenate %284, %297 in 0 : vector<8x256xf32>, vector<8x256xf32> -> vector<16x256xf32>
    %cst_94 = arith.constant dense<0.000000e+00> : vector<32x256xf32>
    %299 = tpu.matmul %5, %298, %cst_94 {dimension_numbers = #tpu.dot_dimension_numbers<[1], [0], [0], [1], [0, 0, 1, 1], [], []>} : vector<32x16xf32>, vector<16x256xf32>, vector<32x256xf32> -> vector<32x256xf32>
    %300 = vector.extract_strided_slice %269 {offsets = [0, 256], sizes = [32, 256], strides = [1, 1]} : vector<32x512xf32> to vector<32x256xf32>
    %cst_95 = arith.constant dense<0.000000e+00> : vector<16x256xf32>
    %301 = tpu.matmul %7, %300, %cst_95 {dimension_numbers = #tpu.dot_dimension_numbers<[1], [0], [0], [1], [0, 0, 1, 1], [], []>} : vector<16x32xf32>, vector<32x256xf32>, vector<16x256xf32> -> vector<16x256xf32>
    %302 = vector.extract_strided_slice %301 {offsets = [0, 0], sizes = [8, 256], strides = [1, 1]} : vector<16x256xf32> to vector<8x256xf32>
    %cst_96 = arith.constant dense<0xFF800000> : vector<256xf32>
    %303 = vector.multi_reduction <maximumf>, %302, %cst_96 [0] : vector<8x256xf32> to vector<256xf32>
    %304 = vector.shape_cast %303 : vector<256xf32> to vector<1x256xf32>
    %305 = vector.broadcast %304 : vector<1x256xf32> to vector<8x256xf32>
    %306 = arith.subf %302, %305 : vector<8x256xf32>
    %307 = math.exp %306 : vector<8x256xf32>
    %cst_97 = arith.constant dense<0.000000e+00> : vector<256xf32>
    %308 = vector.multi_reduction <add>, %307, %cst_97 [0] : vector<8x256xf32> to vector<256xf32>
    %309 = vector.shape_cast %308 : vector<256xf32> to vector<1x256xf32>
    %310 = tpu.reciprocal %309 {approx = true} : vector<1x256xf32> -> vector<1x256xf32>
    %cst_98 = arith.constant -6.500000e+00 : f32
    %311 = vector.broadcast %cst_98 : f32 to vector<1x256xf32>
    %312 = arith.mulf %311, %310 : vector<1x256xf32>
    %313 = vector.broadcast %312 : vector<1x256xf32> to vector<8x256xf32>
    %314 = arith.mulf %307, %313 : vector<8x256xf32>
    %315 = vector.extract_strided_slice %301 {offsets = [8, 0], sizes = [8, 256], strides = [1, 1]} : vector<16x256xf32> to vector<8x256xf32>
    %cst_99 = arith.constant dense<0xFF800000> : vector<256xf32>
    %316 = vector.multi_reduction <maximumf>, %315, %cst_99 [0] : vector<8x256xf32> to vector<256xf32>
    %317 = vector.shape_cast %316 : vector<256xf32> to vector<1x256xf32>
    %318 = vector.broadcast %317 : vector<1x256xf32> to vector<8x256xf32>
    %319 = arith.subf %315, %318 : vector<8x256xf32>
    %320 = math.exp %319 : vector<8x256xf32>
    %cst_100 = arith.constant dense<0.000000e+00> : vector<256xf32>
    %321 = vector.multi_reduction <add>, %320, %cst_100 [0] : vector<8x256xf32> to vector<256xf32>
    %322 = vector.shape_cast %321 : vector<256xf32> to vector<1x256xf32>
    %323 = tpu.reciprocal %322 {approx = true} : vector<1x256xf32> -> vector<1x256xf32>
    %cst_101 = arith.constant 7.500000e+00 : f32
    %324 = vector.broadcast %cst_101 : f32 to vector<1x256xf32>
    %325 = arith.mulf %324, %323 : vector<1x256xf32>
    %326 = vector.broadcast %325 : vector<1x256xf32> to vector<8x256xf32>
    %327 = arith.mulf %320, %326 : vector<8x256xf32>
    %328 = tpu.concatenate %314, %327 in 0 : vector<8x256xf32>, vector<8x256xf32> -> vector<16x256xf32>
    %cst_102 = arith.constant dense<0.000000e+00> : vector<32x256xf32>
    %329 = tpu.matmul %8, %328, %cst_102 {dimension_numbers = #tpu.dot_dimension_numbers<[1], [0], [0], [1], [0, 0, 1, 1], [], []>} : vector<32x16xf32>, vector<16x256xf32>, vector<32x256xf32> -> vector<32x256xf32>
    %330 = tpu.concatenate %299, %329 in 1 : vector<32x256xf32>, vector<32x256xf32> -> vector<32x512xf32>
    %cst_103 = arith.constant dense<0.000000e+00> : vector<4x512xf32>
    %331 = tpu.matmul %13, %330, %cst_103 {dimension_numbers = #tpu.dot_dimension_numbers<[1], [0], [0], [1], [0, 0, 1, 1], [], []>} : vector<4x32xf32>, vector<32x512xf32>, vector<4x512xf32> -> vector<4x512xf32>
    %332 = arith.addf %331, %268 : vector<4x512xf32>
    %333 = vector.broadcast %235 : f32 to vector<4x512xf32>
    %334 = arith.mulf %333, %332 : vector<4x512xf32>
    %335 = arith.subf %233, %334 : vector<4x512xf32>
    %336 = vector.broadcast %237 : f32 to vector<4x512xf32>
    %337 = arith.mulf %335, %336 : vector<4x512xf32>
    %338 = vector.broadcast %239 : f32 to vector<4x512xf32>
    %339 = arith.mulf %338, %337 : vector<4x512xf32>
    %340 = vector.broadcast %241 : f32 to vector<4x512xf32>
    %341 = arith.mulf %340, %332 : vector<4x512xf32>
    %342 = arith.addf %339, %341 : vector<4x512xf32>
    %c3_i32_104 = arith.constant 3 : i32
    %c3_105 = arith.constant 3 : index
    %c0_106 = arith.constant 0 : index
    %343 = memref.load %arg0[%c3_105, %c0_106] : memref<4x8xf32, #tpu.memory_space<smem>>
    %c3_107 = arith.constant 3 : index
    %c1_108 = arith.constant 1 : index
    %344 = memref.load %arg0[%c3_107, %c1_108] : memref<4x8xf32, #tpu.memory_space<smem>>
    %c3_109 = arith.constant 3 : index
    %c2_110 = arith.constant 2 : index
    %345 = memref.load %arg0[%c3_109, %c2_110] : memref<4x8xf32, #tpu.memory_space<smem>>
    %c3_111 = arith.constant 3 : index
    %c3_112 = arith.constant 3 : index
    %346 = memref.load %arg0[%c3_111, %c3_112] : memref<4x8xf32, #tpu.memory_space<smem>>
    %cst_113 = arith.constant 0.000000e+00 : f32
    %347 = vector.broadcast %cst_113 : f32 to vector<4x1xf32>
    %c0_i32_114 = arith.constant 0 : i32
    %348 = vector.broadcast %c0_i32_114 : i32 to vector<4x1xi32>
    %349 = arith.cmpi eq, %14, %348 : vector<4x1xi32>
    %c3_115 = arith.constant 3 : index
    %c4_116 = arith.constant 4 : index
    %350 = memref.load %arg0[%c3_115, %c4_116] : memref<4x8xf32, #tpu.memory_space<smem>>
    %351 = vector.broadcast %350 : f32 to vector<4x1xf32>
    %352 = arith.select %349, %351, %347 : vector<4x1xi1>, vector<4x1xf32>
    %c1_i32_117 = arith.constant 1 : i32
    %353 = vector.broadcast %c1_i32_117 : i32 to vector<4x1xi32>
    %354 = arith.cmpi eq, %14, %353 : vector<4x1xi32>
    %c3_118 = arith.constant 3 : index
    %c5_119 = arith.constant 5 : index
    %355 = memref.load %arg0[%c3_118, %c5_119] : memref<4x8xf32, #tpu.memory_space<smem>>
    %356 = vector.broadcast %355 : f32 to vector<4x1xf32>
    %357 = arith.select %354, %356, %352 : vector<4x1xi1>, vector<4x1xf32>
    %c2_i32_120 = arith.constant 2 : i32
    %358 = vector.broadcast %c2_i32_120 : i32 to vector<4x1xi32>
    %359 = arith.cmpi eq, %14, %358 : vector<4x1xi32>
    %c3_121 = arith.constant 3 : index
    %c6_122 = arith.constant 6 : index
    %360 = memref.load %arg0[%c3_121, %c6_122] : memref<4x8xf32, #tpu.memory_space<smem>>
    %361 = vector.broadcast %360 : f32 to vector<4x1xf32>
    %362 = arith.select %359, %361, %357 : vector<4x1xi1>, vector<4x1xf32>
    %c3_i32_123 = arith.constant 3 : i32
    %363 = vector.broadcast %c3_i32_123 : i32 to vector<4x1xi32>
    %364 = arith.cmpi eq, %14, %363 : vector<4x1xi32>
    %c3_124 = arith.constant 3 : index
    %c7_125 = arith.constant 7 : index
    %365 = memref.load %arg0[%c3_124, %c7_125] : memref<4x8xf32, #tpu.memory_space<smem>>
    %366 = vector.broadcast %365 : f32 to vector<4x1xf32>
    %367 = arith.select %364, %366, %362 : vector<4x1xi1>, vector<4x1xf32>
    %368 = vector.broadcast %367 : vector<4x1xf32> to vector<4x512xf32>
    %369 = arith.addf %342, %368 : vector<4x512xf32>
    %cst_126 = arith.constant dense<0.000000e+00> : vector<32x512xf32>
    %370 = tpu.matmul %12, %369, %cst_126 {dimension_numbers = #tpu.dot_dimension_numbers<[1], [0], [0], [1], [0, 0, 1, 1], [], []>} : vector<32x4xf32>, vector<4x512xf32>, vector<32x512xf32> -> vector<32x512xf32>
    %371 = vector.extract_strided_slice %370 {offsets = [0, 0], sizes = [32, 256], strides = [1, 1]} : vector<32x512xf32> to vector<32x256xf32>
    %cst_127 = arith.constant dense<0.000000e+00> : vector<16x256xf32>
    %372 = tpu.matmul %4, %371, %cst_127 {dimension_numbers = #tpu.dot_dimension_numbers<[1], [0], [0], [1], [0, 0, 1, 1], [], []>} : vector<16x32xf32>, vector<32x256xf32>, vector<16x256xf32> -> vector<16x256xf32>
    %373 = vector.extract_strided_slice %372 {offsets = [0, 0], sizes = [8, 256], strides = [1, 1]} : vector<16x256xf32> to vector<8x256xf32>
    %cst_128 = arith.constant dense<0xFF800000> : vector<256xf32>
    %374 = vector.multi_reduction <maximumf>, %373, %cst_128 [0] : vector<8x256xf32> to vector<256xf32>
    %375 = vector.shape_cast %374 : vector<256xf32> to vector<1x256xf32>
    %376 = vector.broadcast %375 : vector<1x256xf32> to vector<8x256xf32>
    %377 = arith.subf %373, %376 : vector<8x256xf32>
    %378 = math.exp %377 : vector<8x256xf32>
    %cst_129 = arith.constant dense<0.000000e+00> : vector<256xf32>
    %379 = vector.multi_reduction <add>, %378, %cst_129 [0] : vector<8x256xf32> to vector<256xf32>
    %380 = vector.shape_cast %379 : vector<256xf32> to vector<1x256xf32>
    %381 = tpu.reciprocal %380 {approx = true} : vector<1x256xf32> -> vector<1x256xf32>
    %cst_130 = arith.constant -6.500000e+00 : f32
    %382 = vector.broadcast %cst_130 : f32 to vector<1x256xf32>
    %383 = arith.mulf %382, %381 : vector<1x256xf32>
    %384 = vector.broadcast %383 : vector<1x256xf32> to vector<8x256xf32>
    %385 = arith.mulf %378, %384 : vector<8x256xf32>
    %386 = vector.extract_strided_slice %372 {offsets = [8, 0], sizes = [8, 256], strides = [1, 1]} : vector<16x256xf32> to vector<8x256xf32>
    %cst_131 = arith.constant dense<0xFF800000> : vector<256xf32>
    %387 = vector.multi_reduction <maximumf>, %386, %cst_131 [0] : vector<8x256xf32> to vector<256xf32>
    %388 = vector.shape_cast %387 : vector<256xf32> to vector<1x256xf32>
    %389 = vector.broadcast %388 : vector<1x256xf32> to vector<8x256xf32>
    %390 = arith.subf %386, %389 : vector<8x256xf32>
    %391 = math.exp %390 : vector<8x256xf32>
    %cst_132 = arith.constant dense<0.000000e+00> : vector<256xf32>
    %392 = vector.multi_reduction <add>, %391, %cst_132 [0] : vector<8x256xf32> to vector<256xf32>
    %393 = vector.shape_cast %392 : vector<256xf32> to vector<1x256xf32>
    %394 = tpu.reciprocal %393 {approx = true} : vector<1x256xf32> -> vector<1x256xf32>
    %cst_133 = arith.constant 7.500000e+00 : f32
    %395 = vector.broadcast %cst_133 : f32 to vector<1x256xf32>
    %396 = arith.mulf %395, %394 : vector<1x256xf32>
    %397 = vector.broadcast %396 : vector<1x256xf32> to vector<8x256xf32>
    %398 = arith.mulf %391, %397 : vector<8x256xf32>
    %399 = tpu.concatenate %385, %398 in 0 : vector<8x256xf32>, vector<8x256xf32> -> vector<16x256xf32>
    %cst_134 = arith.constant dense<0.000000e+00> : vector<32x256xf32>
    %400 = tpu.matmul %5, %399, %cst_134 {dimension_numbers = #tpu.dot_dimension_numbers<[1], [0], [0], [1], [0, 0, 1, 1], [], []>} : vector<32x16xf32>, vector<16x256xf32>, vector<32x256xf32> -> vector<32x256xf32>
    %401 = vector.extract_strided_slice %370 {offsets = [0, 256], sizes = [32, 256], strides = [1, 1]} : vector<32x512xf32> to vector<32x256xf32>
    %cst_135 = arith.constant dense<0.000000e+00> : vector<16x256xf32>
    %402 = tpu.matmul %7, %401, %cst_135 {dimension_numbers = #tpu.dot_dimension_numbers<[1], [0], [0], [1], [0, 0, 1, 1], [], []>} : vector<16x32xf32>, vector<32x256xf32>, vector<16x256xf32> -> vector<16x256xf32>
    %403 = vector.extract_strided_slice %402 {offsets = [0, 0], sizes = [8, 256], strides = [1, 1]} : vector<16x256xf32> to vector<8x256xf32>
    %cst_136 = arith.constant dense<0xFF800000> : vector<256xf32>
    %404 = vector.multi_reduction <maximumf>, %403, %cst_136 [0] : vector<8x256xf32> to vector<256xf32>
    %405 = vector.shape_cast %404 : vector<256xf32> to vector<1x256xf32>
    %406 = vector.broadcast %405 : vector<1x256xf32> to vector<8x256xf32>
    %407 = arith.subf %403, %406 : vector<8x256xf32>
    %408 = math.exp %407 : vector<8x256xf32>
    %cst_137 = arith.constant dense<0.000000e+00> : vector<256xf32>
    %409 = vector.multi_reduction <add>, %408, %cst_137 [0] : vector<8x256xf32> to vector<256xf32>
    %410 = vector.shape_cast %409 : vector<256xf32> to vector<1x256xf32>
    %411 = tpu.reciprocal %410 {approx = true} : vector<1x256xf32> -> vector<1x256xf32>
    %cst_138 = arith.constant -6.500000e+00 : f32
    %412 = vector.broadcast %cst_138 : f32 to vector<1x256xf32>
    %413 = arith.mulf %412, %411 : vector<1x256xf32>
    %414 = vector.broadcast %413 : vector<1x256xf32> to vector<8x256xf32>
    %415 = arith.mulf %408, %414 : vector<8x256xf32>
    %416 = vector.extract_strided_slice %402 {offsets = [8, 0], sizes = [8, 256], strides = [1, 1]} : vector<16x256xf32> to vector<8x256xf32>
    %cst_139 = arith.constant dense<0xFF800000> : vector<256xf32>
    %417 = vector.multi_reduction <maximumf>, %416, %cst_139 [0] : vector<8x256xf32> to vector<256xf32>
    %418 = vector.shape_cast %417 : vector<256xf32> to vector<1x256xf32>
    %419 = vector.broadcast %418 : vector<1x256xf32> to vector<8x256xf32>
    %420 = arith.subf %416, %419 : vector<8x256xf32>
    %421 = math.exp %420 : vector<8x256xf32>
    %cst_140 = arith.constant dense<0.000000e+00> : vector<256xf32>
    %422 = vector.multi_reduction <add>, %421, %cst_140 [0] : vector<8x256xf32> to vector<256xf32>
    %423 = vector.shape_cast %422 : vector<256xf32> to vector<1x256xf32>
    %424 = tpu.reciprocal %423 {approx = true} : vector<1x256xf32> -> vector<1x256xf32>
    %cst_141 = arith.constant 7.500000e+00 : f32
    %425 = vector.broadcast %cst_141 : f32 to vector<1x256xf32>
    %426 = arith.mulf %425, %424 : vector<1x256xf32>
    %427 = vector.broadcast %426 : vector<1x256xf32> to vector<8x256xf32>
    %428 = arith.mulf %421, %427 : vector<8x256xf32>
    %429 = tpu.concatenate %415, %428 in 0 : vector<8x256xf32>, vector<8x256xf32> -> vector<16x256xf32>
    %cst_142 = arith.constant dense<0.000000e+00> : vector<32x256xf32>
    %430 = tpu.matmul %8, %429, %cst_142 {dimension_numbers = #tpu.dot_dimension_numbers<[1], [0], [0], [1], [0, 0, 1, 1], [], []>} : vector<32x16xf32>, vector<16x256xf32>, vector<32x256xf32> -> vector<32x256xf32>
    %431 = tpu.concatenate %400, %430 in 1 : vector<32x256xf32>, vector<32x256xf32> -> vector<32x512xf32>
    %cst_143 = arith.constant dense<0.000000e+00> : vector<4x512xf32>
    %432 = tpu.matmul %13, %431, %cst_143 {dimension_numbers = #tpu.dot_dimension_numbers<[1], [0], [0], [1], [0, 0, 1, 1], [], []>} : vector<4x32xf32>, vector<32x512xf32>, vector<4x512xf32> -> vector<4x512xf32>
    %433 = arith.addf %432, %369 : vector<4x512xf32>
    %434 = arith.addf %433, %11 : vector<4x512xf32>
    %435 = vector.broadcast %343 : f32 to vector<4x512xf32>
    %436 = arith.mulf %435, %434 : vector<4x512xf32>
    %437 = arith.subf %342, %436 : vector<4x512xf32>
    %438 = vector.broadcast %344 : f32 to vector<4x512xf32>
    %439 = arith.mulf %437, %438 : vector<4x512xf32>
    %440 = vector.broadcast %345 : f32 to vector<4x512xf32>
    %441 = arith.mulf %440, %439 : vector<4x512xf32>
    %442 = vector.broadcast %346 : f32 to vector<4x512xf32>
    %443 = arith.mulf %442, %434 : vector<4x512xf32>
    %444 = arith.addf %441, %443 : vector<4x512xf32>
    %cst_144 = arith.constant 5.4899807 : f32
    %445 = vector.broadcast %cst_144 : f32 to vector<4x512xf32>
    %446 = arith.mulf %444, %445 : vector<4x512xf32>
    %c0_145 = arith.constant 0 : index
    %c0_146 = arith.constant 0 : index
    %447 = vector.load %arg9[%c0_145, %c0_146] : memref<3x4xf32, #tpu.memory_space<vmem>>, vector<3x4xf32>
    %cst_147 = arith.constant dense<0.000000e+00> : vector<3x512xf32>
    %448 = tpu.matmul %447, %446, %cst_147 {dimension_numbers = #tpu.dot_dimension_numbers<[1], [0], [0], [1], [0, 0, 1, 1], [], []>} : vector<3x4xf32>, vector<4x512xf32>, vector<3x512xf32> -> vector<3x512xf32>
    %c0_148 = arith.constant 0 : index
    %c0_149 = arith.constant 0 : index
    %449 = vector.load %arg10[%c0_148, %c0_149] : memref<3x1xf32, #tpu.memory_space<vmem>>, vector<3x1xf32>
    %450 = vector.broadcast %449 : vector<3x1xf32> to vector<3x512xf32>
    %451 = arith.addf %448, %450 : vector<3x512xf32>
    %cst_150 = arith.constant 5.000000e-01 : f32
    %452 = vector.broadcast %cst_150 : f32 to vector<3x512xf32>
    %453 = arith.mulf %451, %452 : vector<3x512xf32>
    %cst_151 = arith.constant 5.000000e-01 : f32
    %454 = vector.broadcast %cst_151 : f32 to vector<3x512xf32>
    %455 = arith.addf %453, %454 : vector<3x512xf32>
    %cst_152 = arith.constant 0.000000e+00 : f32
    %cst_153 = arith.constant 1.000000e+00 : f32
    %456 = vector.broadcast %cst_152 : f32 to vector<3x512xf32>
    %457 = arith.maximumf %456, %455 : vector<3x512xf32>
    %458 = vector.broadcast %cst_153 : f32 to vector<3x512xf32>
    %459 = arith.minimumf %458, %457 : vector<3x512xf32>
    %cst_154 = arith.constant 2.550000e+02 : f32
    %460 = vector.broadcast %cst_154 : f32 to vector<3x512xf32>
    %461 = arith.mulf %459, %460 : vector<3x512xf32>
    %462 = math.floor %461 : vector<3x512xf32>
    %c0_155 = arith.constant 0 : index
    %c0_156 = arith.constant 0 : index
    %463 = vector.load %arg11[%c0_155, %c0_156] : memref<3x512xf32, #tpu.memory_space<vmem>>, vector<3x512xf32>
    tpu.vector_store %arg11[%c0_155, %c0_156], %462 {strides = array<i32>} : memref<3x512xf32, #tpu.memory_space<vmem>>, vector<3x512xf32>,
    return
  }
}

</mosaic_0001>

<bundles_post_ra>
// kernel: forward.1
= control target key start
LH: loop header
LB: loop body
LE: loop exit
PB: predicated region body
PF: predicated region fallthrough
CT: control target
= control target key end

     0   :  { %16 = vsyncpa [#allocation3], 0  ;;  %s5578_s0 = inlined_call_operand.vmem [shape: f32[4,8], index: 0, kind: input, shape index: {}]   ;;  %s5579_s1 = inlined_call_operand.vmem [shape: f32[4,512], index: 1, kind: input, shape index: {}]   ;;  %s5580_s2 = inlined_call_operand.vmem [shape: f32[32,32], index: 2, kind: input, shape index: {}]   ;;  %s5581_s3 = inlined_call_operand.vmem [shape: f32[3,512], index: 3, kind: input, shape index: {}]   ;;  %s5582_s4 = inlined_call_operand.vmem [shape: f32[32,4], index: 4, kind: input, shape index: {}]   ;;  %s5583_s5 = inlined_call_operand.vmem [shape: f32[32,32], index: 5, kind: input, shape index: {}]   ;;  %s5584_s6 = inlined_call_operand.vmem [shape: f32[32,32], index: 6, kind: input, shape index: {}]   ;;  %s5585_s7 = inlined_call_operand.vmem [shape: f32[4,32], index: 7, kind: input, shape index: {}]   ;;  %s5586_s8 = inlined_call_operand.vmem [shape: f32[4,3], index: 8, kind: input, shape index: {}]   ;;  %s5587_s9 = inlined_call_operand.vmem [shape: f32[3,4], index: 9, kind: input, shape index: {}]   ;;  %s5588_s10 = inlined_call_operand.vmem [shape: f32[3,1], index: 10, kind: input, shape index: {}]   ;;  %s5589_s11 = inlined_call_operand.vmem [shape: f32[3,512], index: 11, kind: output, shape index: {}]  }
   0x1   :  { %s23_s19 = sshll.u32 %s5578_s0, 4  ;;  %s24_s19 = int_to_ptr.vmem [resolvable:$true] %s23_s19 }
   0x2   :  { %s4707_s20 = scalar_lea.vmem %s24_s19, 64  ;;  %p4712_p1 = scmp.lt.s32.totalorder %s24_s19, %s24_s19 }
   0x3   :  { %p4708_p0 = scmp.ne.s32.totalorder %s24_s19, %s4707_s20  ;;  %p4713_p2 = scmp.lt.s32.totalorder %s4707_s20, %s4707_s20 }
   0x5   :  { %p4714_p3 = por %p4713_p2, %p4712_p1 }
   0x7   :  { %p4715_p4 = pnand %p4714_p3, %p4708_p0 }
   0x9   :  { %4718 = shalt.err (!%p4715_p4)
}
   0xa   :  { %s4721_s21 = smov [#allocation2]  }
   0xb   :  { %26 = dma.vmem_to_smem %s24_s19, 64, %s4721_s21, [#allocation3]  }
   0xc   :  { %4719 = dma.done.wait [#allocation3], 64  }
   0xd   :  { %4720 = vsyncadd [#allocation3], 4294967232 }
   0xe   :  { %50 = sfence }
   0xf   :  { %v52_v0 = vld [vmem:[%s5580_s2 + $0x8] sm:$0xff]  ;;  %vm63_vm0 = vcmask 261120   ;;  %v58_v1 = vld [vmem:[%s5583_s5 + $0x18] sm:$0xff]  ;;  %v57_v2 = vld [vmem:[%s5583_s5 + $0x10] sm:$0xff]  ;;  %v575_v3 = vlaneseq  ;;  %s4363_s12 = sld [smem:[#allocation2 + $0x4]]  ;;  %vm419_vm5 = vcmask 1042432  }
  0x10   :  { %4536 = vmatprep.subr.msk.mxu1 %vm63_vm0, %v52_v0  ;;  %4525 = vmatprep.subr.mxu0 %v58_v1  ;;  %v51_v4 = vld [vmem:[%s5580_s2] sm:$0xff]  ;;  %v56_v6 = vld [vmem:[%s5583_s5 + $0x8] sm:$0xff]  ;;  %s4364_s15 = sld [smem:[#allocation2 + $0x5]]  ;;  %v54_v9 = vld [vmem:[%s5580_s2 + $0x18] sm:$0xff]  ;;  %v4722_v12 = vmov 839922192  }
  0x11   :  { %v59_v5 = vld [vmem:[%s5584_s6] sm:$0xff]  ;;  %4537 = vmatpush3.xpose.msk.msra.mxu1 %vm63_vm0, %v52_v0  ;;  %4526 = vmatpush3.msra.mxu0 %v58_v1  ;;  %v4808_v7 = vshrl.u32 %v575_v3, 7  ;;  %s4811_s16 = sld [smem:[#allocation2 + $0x6]]  ;;  %v60_v10 = vld [vmem:[%s5584_s6 + $0x8] sm:$0xff]  ;;  %v601_v13 = vunpack.c.l.s4 %v4722_v12  ;;  %v61_v14 = vld [vmem:[%s5584_s6 + $0x10] sm:$0xff]  ;;  %vm627_vm6 = vcmask 1043456  }
  0x12   :  { %4527 = vmatprep.subr.mxu0 %v57_v2  ;;  %4538 = vmatprep.subr.msk.mxu1 %vm63_vm0, %v51_v4  ;;  %v55_v8 = vld [vmem:[%s5583_s5] sm:$0xff]  ;;  %s4822_s21 = sld [smem:[#allocation2 + $0x7]]  ;;  %v53_v17 = vld [vmem:[%s5580_s2 + $0x10] sm:$0xff]  ;;  %v62_v21 = vld [vmem:[%s5584_s6 + $0x18] sm:$0xff]  ;;  %v4723_v36 = vmov 0.0   ;;  %vm415_vm7 = vcmask 23552  }
  0x13   :  { %4528 = vmatpush3.msra.mxu0 %v57_v2  ;;  %4540 = vmatprep.mubr.msk.f32.mxu1 %vm63_vm0, %v59_v5  ;;  %vm583_vm1 = vcmp.eq.s32.totalorder %v4808_v7, 0  ;;  %vm587_vm2 = vcmp.eq.s32.totalorder %v4808_v7, 1  ;;  %vm591_vm3 = vcmp.eq.s32.totalorder %v4808_v7, 2  ;;  %vm595_vm4 = vcmp.eq.s32.totalorder %v4808_v7, 3  ;;  %v409_v25 = vld [vmem:[%s5581_s3] sm:$0x77] }
  0x14   :  { %4529 = vmatprep.subr.mxu0 %v56_v6  ;;  %4533 = vmatprep.mubr.msk.f32.mxu0 %vm63_vm0, %v51_v4  ;;  %v602_v20 = vunpack.c.0.s8 %v601_v13  ;;  %v4863_v26 = vld [vmem:[%s5579_s1] sm:$0xff]  ;;  %v4872_v29 = vld [vmem:[%s5579_s1 + $0x8] sm:$0xff]  ;;  %v413_v31 = vcombine.high %v409_v25, %v409_v25  ;;  %vm614_vm8 = vcmask 31744   ;;  %v4938_v41 = vld [vmem:[%s5582_s4 + $0x10] sm:$0xff]  ;;  %vm969_vm9 = vcmask 130048   ;;  %s4397_s5 = sld [smem:[#allocation2 + $0x84]] }
  0x15   :  { %4539 = vmatpush3.xpose.msk.msra.mxu1 %vm63_vm0, %v51_v4  ;;  %4530 = vmatpush3.msra.mxu0 %v56_v6  ;;  %v585_v11 = vstv %s4363_s12  ;;  %v410_v30 = vld [vmem:[%s5581_s3 + $0x8] sm:$0x77]  ;;  %v408_v37 = vld [vmem:[%s5586_s8] sm:$0xf]  ;;  %v4949_v42 = vld [vmem:[%s5582_s4 + $0x18] sm:$0xff]  ;;  %s4398_s24 = sld [smem:[#allocation2 + $0x85]] }
  0x16   :  { %4531 = vmatprep.subr.mxu0 %v55_v8  ;;  %4557 = vmatprep.subr.msk.mxu1 %vm63_vm0, %v54_v9  ;;  %v586_v15 = vsel %vm583_vm1, %v585_v11, 0.0  ;;  %v589_v16 = vstv %s4364_s15  ;;  %v4854_v24 = vsub.s32 %v602_v20, %v4808_v7  ;;  %v414_v35 = vcombine.high %v410_v30, %v410_v30  ;;  %v4912_v39 = vld [vmem:[%s5582_s4] sm:$0xff]  ;;  %v4925_v40 = vld [vmem:[%s5582_s4 + $0x8] sm:$0xff]  ;;  %s579_s0 = sld [smem:[#allocation2]] }
  0x17   :  { %4532 = vmatpush3.msra.mxu0 %v55_v8  ;;  %v590_v18 = vsel %vm587_vm2, %v589_v16, %v586_v15  ;;  %v593_v19 = vstv %s4811_s16  ;;  %s4399_s25 = sld [smem:[#allocation2 + $0x86]] }
  0x18   :  { %4541 = vmatmul.mubr.msk.f32.vlgmr.msra.gmra.mxu1 %vm63_vm0, %v60_v10  ;;  %4546 = vmatprep.subr.mxu0 %v58_v1  ;;  %v594_v22 = vsel %vm591_vm3, %v593_v19, %v590_v18  ;;  %v597_v23 = vstv %s4822_s21  ;;  %s4362_s26 = sld [smem:[#allocation2 + $0x3]] }
  0x19   :  { %4558 = vmatpush3.xpose.msk.msra.mxu1 %vm63_vm0, %v54_v9  ;;  %4534 = vmatmul.mubr.msk.f32.vlgmr.msra.gmra.mxu0 %vm63_vm0, %v52_v0  ;;  %v598_v27 = vsel %vm595_vm4, %v597_v23, %v594_v22  ;;  %s4400_s27 = sld [smem:[#allocation2 + $0x87]] }
  0x1a   :  { %4543 = vmatprep.mubr.msk.f32.mxu1 %vm63_vm0, %v61_v14  ;;  %4547 = vmatpush3.msra.mxu0 %v58_v1  ;;  %v606_v28 = vrot.slane %v598_v27, %v4854_v24  ;;  %s5075_s2 = sld [smem:[#allocation2 + $0x1]] }
  0x1b   :  { %4548 = vmatprep.subr.mxu0 %v57_v2  ;;  %4559 = vmatprep.subr.msk.mxu1 %vm63_vm0, %v53_v17  ;;  %s5080_s28 = sld [smem:[#allocation2 + $0x2]] }
  0x1c   :  { %4544 = vmatmul.mubr.msk.f32.gmra.mxu1 %vm63_vm0, %v62_v21  ;;  %4549 = vmatpush3.msra.mxu0 %v57_v2  ;;  %v4880_v32 = vadd.f32 %v606_v28, %v4863_v26  ;;  %v4884_v33 = vadd.f32 %v606_v28, %v4872_v29  ;;  %s4431_s29 = sld [smem:[#allocation2 + $0x104]] }
  0x1d   :  { %4560 = vmatpush3.xpose.msk.msra.mxu1 %vm63_vm0, %v53_v17  ;;  %4550 = vmatprep.subr.mxu0 %v56_v6  ;;  %s4432_s30 = sld [smem:[#allocation2 + $0x105]] }
  0x1e   :  { %4551 = vmatpush3.msra.mxu0 %v56_v6  ;;  %4561 = vmatprep.mubr.msk.f32.mxu1 %vm63_vm0, %v59_v5  ;;  %v4889_v34 = vcombine.high %v4880_v32, %v4880_v32  ;;  %v4903_v38 = vcombine.high %v4884_v33, %v4884_v33  ;;  %s4393_s6 = sld [smem:[#allocation2 + $0x80]] }
  0x1f   :  { %4552 = vmatprep.subr.mxu0 %v55_v8  ;;  %4554 = vmatprep.mubr.msk.f32.mxu0 %vm63_vm0, %v53_v17  ;;  %s4433_s12 = sld [smem:[#allocation2 + $0x106]] }
  0x20   :  { %4562 = vmatmul.mubr.msk.f32.vlgmr.msra.gmra.mxu1 %vm63_vm0, %v60_v10  ;;  %4553 = vmatpush3.msra.mxu0 %v55_v8  ;;  %s4396_s13 = sld [smem:[#allocation2 + $0x83]] }
  0x21   :  { %4555 = vmatmul.mubr.msk.f32.vlgmr.msra.gmra.mxu0 %vm63_vm0, %v54_v9  ;;  %4564 = vmatprep.mubr.msk.f32.mxu1 %vm63_vm0, %v61_v14  ;;  %s4434_s14 = sld [smem:[#allocation2 + $0x107]] }
  0x22   :  { %4354 = vmatprep.subr.msk.mxu0 %vm419_vm5, %v413_v31  ;;  %492 = vmatprep.mubr.f32.mxu0 %v4723_v36  ;;  %s5223_s1 = sld [smem:[#allocation2 + $0x81]] }
  0x23   :  { %4355 = vmatpush1.msk.msra.mxu0 %vm419_vm5, %v409_v25  ;;  %4367 = vmatprep.subr.msk.mxu1 %vm627_vm6, %v4889_v34  ;;  %s5228_s3 = sld [smem:[#allocation2 + $0x82]] }
  0x24   :  { %4565 = vmatmul.mubr.msk.f32.gmra.mxu1 %vm63_vm0, %v62_v21  ;;  %4357 = vmatprep.subr.msk.mxu0 %vm419_vm5, %v414_v35  ;;  %s4466_s23 = sld [smem:[#allocation2 + $0x185]] }
  0x25   :  { %4356 = vmatmul.mubr.msk.f32.vlgmr.msra.gmra.mxu0 %vm415_vm7, %v408_v37  ;;  %4368 = vmatpush1.msk.msra.mxu1 %vm627_vm6, %v4880_v32 }
  0x26   :  { %700 = vmatprep.mubr.f32.mxu1 %v4723_v36  ;;  %4358 = vmatpush1.msk.msra.mxu0 %vm419_vm5, %v410_v30 }
  0x27   :  { %563 = vmatprep.mubr.f32.mxu0 %v4723_v36  ;;  %4373 = vmatprep.subr.msk.mxu0 %vm627_vm6, %v4903_v38 }
  0x28   :  { %4369 = vmatmul.mubr.msk.f32.vlgmr.msra.gmra.mxu1 %vm614_vm8, %v4912_v39 }
  0x29   :  { %4359 = vmatmul.mubr.msk.f32.vlgmr.msra.gmra.mxu0 %vm415_vm7, %v408_v37  ;;  %706 = vmatprep.mubr.f32.mxu1 %v4723_v36 }
  0x2a   :  { %4374 = vmatpush1.msk.msra.mxu0 %vm627_vm6, %v4884_v33  ;;  %789 = vmatprep.mubr.f32.mxu0 %v4723_v36 }
  0x2c   :  { %4370 = vmatmul.mubr.msk.f32.gmra.mxu1 %vm614_vm8, %v4925_v40 }
  0x2d   :  { %4375 = vmatmul.mubr.msk.f32.vlgmr.msra.gmra.mxu0 %vm614_vm8, %v4912_v39  ;;  %712 = vmatprep.mubr.f32.mxu1 %v4723_v36 }
  0x2e   :  { %795 = vmatprep.mubr.f32.mxu0 %v4723_v36 }
  0x30   :  { %4371 = vmatmul.mubr.msk.f32.gmra.mxu1 %vm614_vm8, %v4938_v41 }
  0x31   :  { %4376 = vmatmul.mubr.msk.f32.gmra.mxu0 %vm614_vm8, %v4925_v40  ;;  %718 = vmatprep.mubr.f32.mxu1 %v4723_v36 }
  0x32   :  { %801 = vmatprep.mubr.f32.mxu0 %v4723_v36 }
  0x34   :  { %4372 = vmatmul.mubr.msk.f32.gmra.mxu1 %vm614_vm8, %v4949_v42 }
  0x35   :  { %4377 = vmatmul.mubr.msk.f32.gmra.mxu0 %vm614_vm8, %v4938_v41  ;;  %884 = vmatprep.mubr.f32.mxu1 %v4723_v36 }
  0x36   :  { %807 = vmatprep.mubr.f32.mxu0 %v4723_v36 }
  0x39   :  { %4378 = vmatmul.mubr.msk.f32.gmra.mxu0 %vm614_vm8, %v4949_v42 }
  0x3a   :  { %1046 = vmatprep.mubr.f32.mxu0 %v4723_v36 }
  0xd8   :  { %v4961_v43 = vpop.f32.mrf.mxu1 }
  0xd9   :  { %v4965_v45 = vpop.f32.mrf.mxu0 }
  0xda   :  { %v4963_v44 = vpop.f32.mrf.mxu1 }
  0xdb   :  { %v4971_v48 = vpop.f32.mrf.mxu0 }
  0xdc   :  { %v4967_v46 = vpop.f32.mrf.mxu1 }
  0xde   :  { %v4969_v47 = vpop.f32.mrf.mxu1 }
  0xe0   :  { %v4973_v49 = vpop.f32.mrf.mxu1 }
  0xe1   :  { %v4975_v50 = vpop.f32.mrf.mxu0 }
  0xe2   :  { %v4977_v51 = vpop.f32.mrf.mxu1 }
  0xe3   :  { %v4979_v52 = vpop.f32.mrf.mxu0 }
  0xe4   :  { %v4981_v53 = vpop.f32.mrf.mxu1 }
  0xe5   :  { %v4983_v54 = vpop.f32.mrf.mxu0 }
  0xe6   :  { %v4985_v55 = vpop.f32.mrf.mxu1 }
  0xe7   :  { %v4987_v56 = vpop.f32.mrf.mxu0 }
  0xe8   :  { %v702_v57 = vpop.f32.mrf.mxu1 }
  0xe9   :  { %v4989_v58 = vpop.f32.mrf.mxu0 }
  0xea   :  { %v704_v59 = vpop.f32.mrf.mxu1 }
  0xeb   :  { %v4991_v60 = vpop.f32.mrf.mxu0 }
  0xec   :  { %v708_v61 = vpop.f32.mrf.mxu1 }
  0xed   :  { %v791_v62 = vpop.f32.mrf.mxu0 }
  0xee   :  { %v710_v63 = vpop.f32.mrf.mxu1 }
  0xef   :  { %v793_v0 = vpop.f32.mrf.mxu0 }
  0xf0   :  { %v714_v1 = vpop.f32.mrf.mxu1 }
  0xf1   :  { %v797_v2 = vpop.f32.mrf.mxu0 }
  0xf2   :  { %v716_v3 = vpop.f32.mrf.mxu1 }
  0xf3   :  { %v799_v4 = vpop.f32.mrf.mxu0 }
  0xf4   :  { %v720_v5 = vpop.f32.mrf.mxu1 }
  0xf5   :  { %v803_v6 = vpop.f32.mrf.mxu0 }
  0xf6   :  { %v722_v8 = vpop.f32.mrf.mxu1 }
  0xf7   :  { %844 = vmatprep.subr.mxu1 %v722_v8  ;;  %v805_v9 = vpop.f32.mrf.mxu0 }
  0xf8   :  { %845 = vmatpush1.msra.mxu1 %v720_v5 }
  0xf9   :  { %846 = vmatprep.subr.mxu1 %v716_v3  ;;  %v809_v10 = vpop.f32.mrf.mxu0 }
  0xfa   :  { %847 = vmatpush1.msra.mxu1 %v714_v1 }
  0xfb   :  { %848 = vmatprep.subr.mxu1 %v710_v63  ;;  %v811_v11 = vpop.f32.mrf.mxu0 }
  0xfc   :  { %849 = vmatpush1.msra.mxu1 %v708_v61 }
  0xfd   :  { %850 = vmatprep.subr.mxu1 %v704_v59 }
  0xfe   :  { %851 = vmatpush1.msra.mxu1 %v702_v57 }
  0xff   :  { %4379 = vmatmul.mubr.msk.f32.vlgmr.msra.gmra.mxu1 %vm63_vm0, %v4971_v48  ;;  %1101 = vmatprep.subr.mxu1 %v811_v11 }
 0x100   :  { %1102 = vmatpush1.msra.mxu1 %v809_v10  ;;  %890 = vmatprep.mubr.f32.mxu1 %v4723_v36 }
 0x101   :  { %1103 = vmatprep.subr.mxu1 %v805_v9 }
 0x102   :  { %1104 = vmatpush1.msra.mxu1 %v803_v6 }
 0x103   :  { %4380 = vmatmul.mubr.msk.f32.gmra.mxu1 %vm63_vm0, %v4965_v45  ;;  %1105 = vmatprep.subr.mxu1 %v799_v4 }
 0x104   :  { %1106 = vmatpush1.msra.mxu1 %v797_v2  ;;  %1141 = vmatprep.mubr.f32.mxu1 %v4723_v36 }
 0x105   :  { %1107 = vmatprep.subr.mxu1 %v793_v0 }
 0x106   :  { %1108 = vmatpush1.msra.mxu1 %v791_v62 }
 0x107   :  { %4385 = vmatmul.mubr.msk.f32.vlgmr.msra.gmra.mxu1 %vm63_vm0, %v4979_v52 }
 0x108   :  { %1147 = vmatprep.mubr.f32.mxu1 %v4723_v36 }
 0x10b   :  { %4386 = vmatmul.mubr.msk.f32.gmra.mxu1 %vm63_vm0, %v4975_v50 }
 0x10c   :  { %1302 = vmatprep.mubr.f32.mxu1 %v4723_v36 }
 0x1bf   :  { %v886_v12 = vpop.f32.mrf.mxu1 }
 0x1c0   :  { %v897_v13 = vrot.slane %v886_v12, 4 }
 0x1c1   :  { %v888_v14 = vpop.f32.mrf.mxu1 }
 0x1c2   :  { %v898_v15 = vmax.f32 %v886_v12, %v897_v13  ;;  %v903_v16 = vrot.slane %v888_v14, 4 }
 0x1c3   :  { %v892_v17 = vpop.f32.mrf.mxu1 }
 0x1c4   :  { %v899_v18 = vrot.slane %v898_v15, 2  ;;  %v904_v19 = vmax.f32 %v888_v14, %v903_v16  ;;  %v933_v20 = vrot.slane %v892_v17, 4 }
 0x1c5   :  { %v894_v21 = vpop.f32.mrf.mxu1 }
 0x1c6   :  { %v900_v22 = vmax.f32 %v898_v15, %v899_v18  ;;  %v905_v23 = vrot.slane %v904_v19, 2  ;;  %v934_v25 = vmax.f32 %v892_v17, %v933_v20  ;;  %v939_v27 = vrot.slane %v894_v21, 4 }
 0x1c7   :  { %v1143_v28 = vpop.f32.mrf.mxu1 }
 0x1c8   :  { %v901_v30 = vrot.slane %v900_v22, 1  ;;  %v906_v31 = vmax.f32 %v904_v19, %v905_v23  ;;  %v935_v35 = vrot.slane %v934_v25, 2  ;;  %v940_v37 = vmax.f32 %v894_v21, %v939_v27 }
 0x1c9   :  { %v1154_v57 = vrot.slane %v1143_v28, 4  ;;  %v1145_v59 = vpop.f32.mrf.mxu1 }
 0x1ca   :  { %v902_v61 = vmax.f32 %v900_v22, %v901_v30  ;;  %v907_v62 = vrot.slane %v906_v31, 1  ;;  %v936_v63 = vmax.f32 %v934_v25, %v935_v35  ;;  %v941_v0 = vrot.slane %v940_v37, 2 }
 0x1cb   :  { %v1155_v1 = vmax.f32 %v1143_v28, %v1154_v57  ;;  %v1160_v2 = vrot.slane %v1145_v59, 4  ;;  %v1149_v3 = vpop.f32.mrf.mxu1 }
 0x1cc   :  { %v909_v4 = vsub.f32 %v886_v12, %v902_v61  ;;  %v908_v5 = vmax.f32 %v906_v31, %v907_v62  ;;  %v937_v6 = vrot.slane %v936_v63, 1  ;;  %v942_v8 = vmax.f32 %v940_v37, %v941_v0 }
 0x1cd   :  { %v1156_v9 = vrot.slane %v1155_v1, 2  ;;  %v1161_v10 = vmax.f32 %v1145_v59, %v1160_v2  ;;  %v1190_v11 = vrot.slane %v1149_v3, 4  ;;  %v1151_v13 = vpop.f32.mrf.mxu1 }
 0x1ce   :  { %v911_v15 = vmul.f32 1.442695, %v909_v4  ;;  %v910_v16 = vsub.f32 %v888_v14, %v908_v5  ;;  %v938_v18 = vmax.f32 %v936_v63, %v937_v6  ;;  %v943_v19 = vrot.slane %v942_v8, 1 }
 0x1cf   :  { %v1157_v20 = vmax.f32 %v1155_v1, %v1156_v9  ;;  %v1162_v22 = vrot.slane %v1161_v10, 2  ;;  %v1191_v23 = vmax.f32 %v1149_v3, %v1190_v11  ;;  %v1196_v25 = vrot.slane %v1151_v13, 4 }
 0x1d0   :  { %4574 = vpow2.f32 %v911_v15  ;;  %v913_v27 = vmul.f32 1.442695, %v910_v16  ;;  %v945_v30 = vsub.f32 %v892_v17, %v938_v18  ;;  %v944_v35 = vmax.f32 %v942_v8, %v943_v19 }
 0x1d1   :  { %v1158_v12 = vrot.slane %v1157_v20, 1  ;;  %v1163_v31 = vmax.f32 %v1161_v10, %v1162_v22  ;;  %v1192_v57 = vrot.slane %v1191_v23, 2  ;;  %v1197_v37 = vmax.f32 %v1151_v13, %v1196_v25 }
 0x1d2   :  { %4576 = vpow2.f32 %v913_v27  ;;  %v947_v61 = vmul.f32 1.442695, %v945_v30  ;;  %v946_v62 = vsub.f32 %v894_v21, %v944_v35 }
 0x1d3   :  { %v1159_v0 = vmax.f32 %v1157_v20, %v1158_v12  ;;  %v1164_v2 = vrot.slane %v1163_v31, 1  ;;  %v1193_v14 = vmax.f32 %v1191_v23, %v1192_v57  ;;  %v1198_v63 = vrot.slane %v1197_v37, 2 }
 0x1d4   :  { %4578 = vpow2.f32 %v947_v61  ;;  %v949_v1 = vmul.f32 1.442695, %v946_v62 }
 0x1d5   :  { %v1166_v4 = vsub.f32 %v1143_v28, %v1159_v0  ;;  %v1165_v5 = vmax.f32 %v1163_v31, %v1164_v2  ;;  %v1194_v6 = vrot.slane %v1193_v14, 1  ;;  %v1199_v9 = vmax.f32 %v1197_v37, %v1198_v63 }
 0x1d6   :  { %4580 = vpow2.f32 %v949_v1 }
 0x1d7   :  { %v1168_v17 = vmul.f32 1.442695, %v1166_v4  ;;  %v1167_v8 = vsub.f32 %v1145_v59, %v1165_v5  ;;  %v1195_v11 = vmax.f32 %v1193_v14, %v1194_v6  ;;  %v1200_v10 = vrot.slane %v1199_v9, 1 }
 0x1d9   :  { %4582 = vpow2.f32 %v1168_v17  ;;  %v1170_v15 = vmul.f32 1.442695, %v1167_v8  ;;  %v1202_v16 = vsub.f32 %v1149_v3, %v1195_v11  ;;  %v1201_v18 = vmax.f32 %v1199_v9, %v1200_v10 }
 0x1db   :  { %4584 = vpow2.f32 %v1170_v15  ;;  %v1204_v21 = vmul.f32 1.442695, %v1202_v16  ;;  %v1203_v19 = vsub.f32 %v1151_v13, %v1201_v18 }
 0x1dd   :  { %v5005_v20 = vpop.eup %4574  ;;  %4586 = vpow2.f32 %v1204_v21  ;;  %v1206_v22 = vmul.f32 1.442695, %v1203_v19 }
 0x1de   :  { %v915_v28 = vrot.slane %v5005_v20, 4 }
 0x1df   :  { %v5008_v23 = vpop.eup %4576  ;;  %4588 = vpow2.f32 %v1206_v22 }
 0x1e0   :  { %v921_v59 = vrot.slane %v5008_v23, 4  ;;  %v916_v25 = vadd.f32 %v5005_v20, %v915_v28 }
 0x1e1   :  { %v5012_v27 = vpop.eup %4578 }
 0x1e2   :  { %v951_v3 = vrot.slane %v5012_v27, 4  ;;  %v922_v30 = vadd.f32 %v5008_v23, %v921_v59  ;;  %v917_v13 = vrot.slane %v916_v25, 2 }
 0x1e3   :  { %v5016_v35 = vpop.eup %4580 }
 0x1e4   :  { %v957_v12 = vrot.slane %v5016_v35, 4  ;;  %v952_v31 = vadd.f32 %v5012_v27, %v951_v3  ;;  %v923_v57 = vrot.slane %v922_v30, 2  ;;  %v918_v37 = vadd.f32 %v917_v13, %v916_v25 }
 0x1e6   :  { %v5020_v61 = vpop.eup %4582  ;;  %v958_v62 = vadd.f32 %v5016_v35, %v957_v12  ;;  %v953_v0 = vrot.slane %v952_v31, 2  ;;  %v924_v2 = vadd.f32 %v923_v57, %v922_v30  ;;  %v919_v14 = vrot.slane %v918_v37, 1 }
 0x1e7   :  { %v1172_v63 = vrot.slane %v5020_v61, 4 }
 0x1e8   :  { %v5024_v1 = vpop.eup %4584  ;;  %v959_v4 = vrot.slane %v958_v62, 2  ;;  %v954_v5 = vadd.f32 %v953_v0, %v952_v31  ;;  %v925_v6 = vrot.slane %v924_v2, 1  ;;  %v920_v16 = vadd.f32 %v919_v14, %v918_v37 }
 0x1e9   :  { %v1178_v9 = vrot.slane %v5024_v1, 4  ;;  %v1173_v17 = vadd.f32 %v5020_v61, %v1172_v63 }
 0x1ea   :  { %v5028_v8 = vpop.eup %4586  ;;  %v960_v11 = vadd.f32 %v959_v4, %v958_v62  ;;  %v955_v10 = vrot.slane %v954_v5, 1  ;;  %v926_v15 = vadd.f32 %v925_v6, %v924_v2 }
 0x1eb   :  { %v1208_v18 = vrot.slane %v5028_v8, 4  ;;  %v1179_v21 = vadd.f32 %v5024_v1, %v1178_v9  ;;  %v1174_v19 = vrot.slane %v1173_v17, 2 }
 0x1ec   :  { %v4589_v22 = vpop.eup %4588  ;;  %v961_v28 = vrot.slane %v960_v11, 1  ;;  %v956_v59 = vadd.f32 %v955_v10, %v954_v5  ;;  %4590 = vrcp.f32 %v926_v15 }
 0x1ed   :  { %v1214_v25 = vrot.slane %v4589_v22, 4  ;;  %v1209_v3 = vadd.f32 %v5028_v8, %v1208_v18  ;;  %v1180_v30 = vrot.slane %v1179_v21, 2  ;;  %v1175_v13 = vadd.f32 %v1174_v19, %v1173_v17 }
 0x1ee   :  { %v962_v12 = vadd.f32 %v961_v28, %v960_v11  ;;  %4592 = vrcp.f32 %v956_v59 }
 0x1ef   :  { %4594 = vrcp.f32 %v920_v16  ;;  %v1215_v31 = vadd.f32 %v4589_v22, %v1214_v25  ;;  %v1210_v57 = vrot.slane %v1209_v3, 2  ;;  %v1181_v37 = vadd.f32 %v1180_v30, %v1179_v21 }
 0x1f0   :  { %4596 = vrcp.f32 %v962_v12  ;;  %v1176_v62 = vrot.slane %v1175_v13, 1 }
 0x1f1   :  { %v1216_v0 = vrot.slane %v1215_v31, 2  ;;  %v1211_v2 = vadd.f32 %v1210_v57, %v1209_v3  ;;  %v1182_v14 = vrot.slane %v1181_v37, 1 }
 0x1f2   :  { %v1177_v6 = vadd.f32 %v1176_v62, %v1175_v13 }
 0x1f3   :  { %v1217_v63 = vadd.f32 %v1216_v0, %v1215_v31  ;;  %v1212_v4 = vrot.slane %v1211_v2, 1  ;;  %v1183_v5 = vadd.f32 %v1182_v14, %v1181_v37 }
 0x1f5   :  { %v1218_v9 = vrot.slane %v1217_v63, 1  ;;  %v1213_v10 = vadd.f32 %v1212_v4, %v1211_v2  ;;  %4598 = vrcp.f32 %v1183_v5 }
 0x1f7   :  { %v1219_v15 = vadd.f32 %v1218_v9, %v1217_v63  ;;  %4600 = vrcp.f32 %v1213_v10 }
 0x1f8   :  { %4602 = vrcp.f32 %v1177_v6 }
 0x1f9   :  { %v4591_v17 = vpop.eup %4590  ;;  %4604 = vrcp.f32 %v1219_v15 }
 0x1fa   :  { %v930_v28 = vmul.f32 -6.5, %v4591_v17 }
 0x1fb   :  { %v4593_v11 = vpop.eup %4592 }
 0x1fc   :  { %v4595_v16 = vpop.eup %4594  ;;  %v965_v21 = vmul.f32 7.5, %v4593_v11  ;;  %v932_v30 = vmul.f32 %v5008_v23, %v930_v28  ;;  %v1515_v28 = vstv %s4397_s5  ;;  %s4427_s5 = sld [smem:[#allocation2 + $0x100]] }
 0x1fd   :  { %v4597_v18 = vpop.eup %4596  ;;  %v929_v59 = vmul.f32 -6.5, %v4595_v16 }
 0x1fe   :  { %v966_v19 = vmul.f32 7.5, %v4597_v18  ;;  %v967_v3 = vmul.f32 %v5012_v27, %v965_v21  ;;  %v5067_v18 = vld [vmem:[%s5585_s7] sm:$0xf] }
 0x1ff   :  { %v931_v12 = vmul.f32 %v5005_v20, %v929_v59 }
 0x200   :  { %v968_v25 = vmul.f32 %v5016_v35, %v966_v19 }
 0x202   :  { %1010 = vmatprep.subr.mxu0 %v968_v25  ;;  %v4599_v13 = vpop.eup %4598 }
 0x203   :  { %1011 = vmatpush1.msra.mxu0 %v967_v3  ;;  %v1187_v35 = vmul.f32 -6.5, %v4599_v13  ;;  %v1516_v3 = vsel %vm583_vm1, %v1515_v28, 0.0  ;;  %v1474_v13 = vstv %s579_s0  ;;  %s4430_s0 = sld [smem:[#allocation2 + $0x103]] }
 0x204   :  { %v4601_v31 = vpop.eup %4600  ;;  %1012 = vmatprep.subr.mxu0 %v932_v30  ;;  %v1518_v30 = vstv %s4398_s24  ;;  %s4467_s24 = sld [smem:[#allocation2 + $0x186]] }
 0x205   :  { %v4603_v57 = vpop.eup %4602  ;;  %1013 = vmatpush1.msra.mxu0 %v931_v12  ;;  %v1222_v62 = vmul.f32 7.5, %v4601_v31  ;;  %v1189_v2 = vmul.f32 %v5024_v1, %v1187_v35 }
 0x206   :  { %v4605_v37 = vpop.eup %4604  ;;  %4381 = vmatmul.mubr.msk.f32.vlgmr.msra.gmra.mxu0 %vm969_vm9, %v4963_v44  ;;  %v1186_v0 = vmul.f32 -6.5, %v4603_v57  ;;  %v1519_v57 = vsel %vm587_vm2, %v1518_v30, %v1516_v3 }
 0x207   :  { %1052 = vmatprep.mubr.f32.mxu0 %v4723_v36  ;;  %v1223_v27 = vmul.f32 7.5, %v4605_v37  ;;  %v1224_v20 = vmul.f32 %v5028_v8, %v1222_v62  ;;  %v1521_v37 = vstv %s4399_s25  ;;  %s4468_s25 = sld [smem:[#allocation2 + $0x187]] }
 0x208   :  { %v1188_v14 = vmul.f32 %v5020_v61, %v1186_v0  ;;  %v1524_v0 = vstv %s4400_s27  ;;  %s5401_s27 = sld [smem:[#allocation2 + $0x102]] }
 0x209   :  { %v1225_v23 = vmul.f32 %v4589_v22, %v1223_v27 }
 0x20a   :  { %4382 = vmatmul.mubr.msk.f32.gmra.mxu0 %vm969_vm9, %v4961_v43 }
 0x20b   :  { %1266 = vmatprep.subr.mxu1 %v1225_v23  ;;  %1058 = vmatprep.mubr.f32.mxu0 %v4723_v36  ;;  %v1495_v23 = vstv %s4362_s26  ;;  %s5396_s26 = sld [smem:[#allocation2 + $0x101]] }
 0x20c   :  { %1267 = vmatpush1.msra.mxu1 %v1224_v20  ;;  %v1489_v20 = vstv %s5075_s2 }
 0x20d   :  { %1268 = vmatprep.subr.mxu1 %v1189_v2 }
 0x20e   :  { %1269 = vmatpush1.msra.mxu1 %v1188_v14  ;;  %4383 = vmatmul.mubr.msk.f32.gmra.mxu0 %vm969_vm9, %v4969_v47 }
 0x20f   :  { %4387 = vmatmul.mubr.msk.f32.vlgmr.msra.gmra.mxu1 %vm969_vm9, %v4977_v51  ;;  %1064 = vmatprep.mubr.f32.mxu0 %v4723_v36 }
 0x210   :  { %1308 = vmatprep.mubr.f32.mxu1 %v4723_v36 }
 0x212   :  { %4384 = vmatmul.mubr.msk.f32.gmra.mxu0 %vm969_vm9, %v4967_v46 }
 0x213   :  { %4388 = vmatmul.mubr.msk.f32.gmra.mxu1 %vm969_vm9, %v4973_v49  ;;  %1396 = vmatprep.mubr.f32.mxu0 %v4723_v36 }
 0x214   :  { %1314 = vmatprep.mubr.f32.mxu1 %v4723_v36 }
 0x217   :  { %4389 = vmatmul.mubr.msk.f32.gmra.mxu1 %vm969_vm9, %v4985_v55 }
 0x218   :  { %1320 = vmatprep.mubr.f32.mxu1 %v4723_v36 }
 0x21b   :  { %4390 = vmatmul.mubr.msk.f32.gmra.mxu1 %vm969_vm9, %v4981_v53 }
 0x21c   :  { %1702 = vmatprep.mubr.f32.mxu1 %v4723_v36 }
 0x2c6   :  { %v1048_v61 = vpop.f32.mrf.mxu0 }
 0x2c8   :  { %v1050_v1 = vpop.f32.mrf.mxu0 }
 0x2ca   :  { %v1054_v8 = vpop.f32.mrf.mxu0 }
 0x2cc   :  { %v1056_v22 = vpop.f32.mrf.mxu0 }
 0x2ce   :  { %v1060_v63 = vpop.f32.mrf.mxu0 }
 0x2cf   :  { %v1304_v4 = vpop.f32.mrf.mxu1 }
 0x2d0   :  { %v1062_v5 = vpop.f32.mrf.mxu0 }
 0x2d1   :  { %v1306_v6 = vpop.f32.mrf.mxu1 }
 0x2d2   :  { %v1066_v9 = vpop.f32.mrf.mxu0 }
 0x2d3   :  { %v1310_v10 = vpop.f32.mrf.mxu1 }
 0x2d4   :  { %v1068_v15 = vpop.f32.mrf.mxu0 }
 0x2d5   :  { %v1312_v17 = vpop.f32.mrf.mxu1  ;;  %1356 = vmatprep.subr.mxu0 %v1068_v15 }
 0x2d6   :  { %1357 = vmatpush1.msra.mxu0 %v1066_v9 }
 0x2d7   :  { %v1316_v11 = vpop.f32.mrf.mxu1  ;;  %1358 = vmatprep.subr.mxu0 %v1062_v5 }
 0x2d8   :  { %1359 = vmatpush1.msra.mxu0 %v1060_v63 }
 0x2d9   :  { %v1318_v16 = vpop.f32.mrf.mxu1  ;;  %1360 = vmatprep.subr.mxu0 %v1056_v22 }
 0x2da   :  { %1361 = vmatpush1.msra.mxu0 %v1054_v8 }
 0x2db   :  { %v1322_v21 = vpop.f32.mrf.mxu1  ;;  %1362 = vmatprep.subr.mxu0 %v1050_v1  ;;  %v1492_v1 = vstv %s5080_s28 }
 0x2dc   :  { %1363 = vmatpush1.msra.mxu0 %v1048_v61 }
 0x2dd   :  { %v1324_v19 = vpop.f32.mrf.mxu1  ;;  %4391 = vmatmul.mubr.msk.f32.vlgmr.msra.gmra.mxu0 %vm63_vm0, %v5067_v18 }
 0x2de   :  { %1427 = vmatprep.subr.mxu0 %v1324_v19  ;;  %1467 = vmatprep.mubr.f32.mxu0 %v4723_v36 }
 0x2df   :  { %1428 = vmatpush1.msra.mxu0 %v1322_v21 }
 0x2e0   :  { %1429 = vmatprep.subr.mxu0 %v1318_v16 }
 0x2e1   :  { %1430 = vmatpush1.msra.mxu0 %v1316_v11 }
 0x2e2   :  { %1431 = vmatprep.subr.mxu0 %v1312_v17 }
 0x2e3   :  { %1432 = vmatpush1.msra.mxu0 %v1310_v10 }
 0x2e4   :  { %1433 = vmatprep.subr.mxu0 %v1306_v6 }
 0x2e5   :  { %1434 = vmatpush1.msra.mxu0 %v1304_v4 }
 0x2e6   :  { %4392 = vmatmul.mubr.msk.f32.vlgmr.msra.gmra.mxu0 %vm63_vm0, %v5067_v18 }
 0x2e7   :  { %1613 = vmatprep.mubr.f32.mxu0 %v4723_v36 }
 0x39d   :  { %v1398_v59 = vpop.f32.mrf.mxu0 }
 0x39e   :  { %v1399_v25 = vadd.f32 %v1398_v59, %v4880_v32  ;;  %v1522_v32 = vsel %vm591_vm3, %v1521_v37, %v1519_v57 }
 0x39f   :  { %v1400_v12 = vpop.f32.mrf.mxu0 }
 0x3a0   :  { %v1401_v31 = vadd.f32 %v1400_v12, %v4889_v34  ;;  %v1475_v62 = vmul.f32 %v1474_v13, %v1399_v25  ;;  %v1525_v34 = vsel %vm595_vm4, %v1524_v0, %v1522_v32  ;;  %v1496_v22 = vmul.f32 %v1495_v23, %v1399_v25 }
 0x3a1   :  { %v1533_v10 = vrot.slane %v1525_v34, %v4854_v24 }
 0x3a2   :  { %v1476_v27 = vmul.f32 %v1474_v13, %v1401_v31  ;;  %v1497_v14 = vmul.f32 %v1495_v23, %v1401_v31 }
 0x3a4   :  { %v1483_v35 = vcombine.low %v1475_v62, %v1476_v27  ;;  %v1504_v9 = vcombine.low %v1496_v22, %v1497_v14 }
 0x3a6   :  { %v1487_v2 = vsub.f32 %v4863_v26, %v1483_v35  ;;  %v1469_v61 = vpop.f32.mrf.mxu0 }
 0x3a7   :  { %v1470_v8 = vadd.f32 %v1469_v61, %v4884_v33 }
 0x3a8   :  { %v1490_v63 = vmul.f32 %v1489_v20, %v1487_v2  ;;  %v1471_v4 = vpop.f32.mrf.mxu0 }
 0x3a9   :  { %v1472_v5 = vadd.f32 %v1471_v4, %v4903_v38  ;;  %v1477_v15 = vmul.f32 %v1474_v13, %v1470_v8  ;;  %v1498_v38 = vmul.f32 %v1495_v23, %v1470_v8 }
 0x3aa   :  { %v1493_v6 = vmul.f32 %v1492_v1, %v1490_v63 }
 0x3ab   :  { %v1478_v17 = vmul.f32 %v1474_v13, %v1472_v5  ;;  %v1499_v33 = vmul.f32 %v1495_v23, %v1472_v5 }
 0x3ac   :  { %v5095_v26 = vadd.f32 %v1504_v9, %v1493_v6 }
 0x3ad   :  { %v1484_v11 = vcombine.low %v1477_v15, %v1478_v17  ;;  %v1505_v25 = vcombine.low %v1498_v38, %v1499_v33 }
 0x3ae   :  { %v5098_v16 = vadd.f32 %v1533_v10, %v5095_v26 }
 0x3af   :  { %v1488_v21 = vsub.f32 %v4872_v29, %v1484_v11 }
 0x3b0   :  { %v5103_v19 = vcombine.high %v5098_v16, %v5098_v16 }
 0x3b1   :  { %v1491_v28 = vmul.f32 %v1489_v20, %v1488_v21 }
 0x3b2   :  { %4401 = vmatprep.subr.msk.mxu0 %vm627_vm6, %v5103_v19 }
 0x3b3   :  { %v1494_v59 = vmul.f32 %v1492_v1, %v1491_v28  ;;  %4402 = vmatpush1.msk.msra.mxu0 %vm627_vm6, %v5098_v16 }
 0x3b4   :  { %4403 = vmatmul.mubr.msk.f32.vlgmr.msra.gmra.mxu0 %vm614_vm8, %v4912_v39 }
 0x3b5   :  { %v5111_v3 = vadd.f32 %v1505_v25, %v1494_v59  ;;  %1619 = vmatprep.mubr.f32.mxu0 %v4723_v36 }
 0x3b7   :  { %v5115_v29 = vadd.f32 %v1533_v10, %v5111_v3 }
 0x3b8   :  { %4404 = vmatmul.mubr.msk.f32.gmra.mxu0 %vm614_vm8, %v4925_v40 }
 0x3b9   :  { %v5121_v30 = vcombine.high %v5115_v29, %v5115_v29  ;;  %1625 = vmatprep.mubr.f32.mxu0 %v4723_v36 }
 0x3bb   :  { %4407 = vmatprep.subr.msk.mxu1 %vm627_vm6, %v5121_v30 }
 0x3bc   :  { %4408 = vmatpush1.msk.msra.mxu1 %vm627_vm6, %v5115_v29  ;;  %4405 = vmatmul.mubr.msk.f32.gmra.mxu0 %vm614_vm8, %v4938_v41 }
 0x3bd   :  { %4409 = vmatmul.mubr.msk.f32.vlgmr.msra.gmra.mxu1 %vm614_vm8, %v4912_v39  ;;  %1631 = vmatprep.mubr.f32.mxu0 %v4723_v36 }
 0x3be   :  { %1708 = vmatprep.mubr.f32.mxu1 %v4723_v36 }
 0x3c0   :  { %4406 = vmatmul.mubr.msk.f32.gmra.mxu0 %vm614_vm8, %v4949_v42 }
 0x3c1   :  { %4410 = vmatmul.mubr.msk.f32.gmra.mxu1 %vm614_vm8, %v4925_v40  ;;  %1791 = vmatprep.mubr.f32.mxu0 %v4723_v36 }
 0x3c2   :  { %1714 = vmatprep.mubr.f32.mxu1 %v4723_v36 }
 0x3c5   :  { %4411 = vmatmul.mubr.msk.f32.gmra.mxu1 %vm614_vm8, %v4938_v41 }
 0x3c6   :  { %1720 = vmatprep.mubr.f32.mxu1 %v4723_v36 }
 0x3c9   :  { %4412 = vmatmul.mubr.msk.f32.gmra.mxu1 %vm614_vm8, %v4949_v42 }
 0x3ca   :  { %1940 = vmatprep.mubr.f32.mxu1 %v4723_v36 }
 0x474   :  { %v1615_v39 = vpop.f32.mrf.mxu0 }
 0x476   :  { %v1617_v13 = vpop.f32.mrf.mxu0 }
 0x478   :  { %v1621_v12 = vpop.f32.mrf.mxu0 }
 0x47a   :  { %v1623_v31 = vpop.f32.mrf.mxu0 }
 0x47c   :  { %v1627_v57 = vpop.f32.mrf.mxu0 }
 0x47d   :  { %v1704_v40 = vpop.f32.mrf.mxu1 }
 0x47e   :  { %v1629_v37 = vpop.f32.mrf.mxu0 }
 0x47f   :  { %v1706_v62 = vpop.f32.mrf.mxu1 }
 0x480   :  { %v1633_v27 = vpop.f32.mrf.mxu0 }
 0x481   :  { %v1710_v35 = vpop.f32.mrf.mxu1 }
 0x482   :  { %v1635_v32 = vpop.f32.mrf.mxu0 }
 0x483   :  { %v1712_v0 = vpop.f32.mrf.mxu1  ;;  %1751 = vmatprep.subr.mxu0 %v1635_v32 }
 0x484   :  { %1752 = vmatpush1.msra.mxu0 %v1633_v27 }
 0x485   :  { %v1716_v41 = vpop.f32.mrf.mxu1  ;;  %1753 = vmatprep.subr.mxu0 %v1629_v37 }
 0x486   :  { %1754 = vmatpush1.msra.mxu0 %v1627_v57 }
 0x487   :  { %v1718_v42 = vpop.f32.mrf.mxu1  ;;  %1755 = vmatprep.subr.mxu0 %v1623_v31 }
 0x488   :  { %1756 = vmatpush1.msra.mxu0 %v1621_v12 }
 0x489   :  { %v1722_v23 = vpop.f32.mrf.mxu1  ;;  %1757 = vmatprep.subr.mxu0 %v1617_v13 }
 0x48a   :  { %1758 = vmatpush1.msra.mxu0 %v1615_v39 }
 0x48b   :  { %v1724_v20 = vpop.f32.mrf.mxu1  ;;  %4413 = vmatmul.mubr.msk.f32.vlgmr.msra.gmra.mxu0 %vm63_vm0, %v4971_v48 }
 0x48c   :  { %1989 = vmatprep.subr.mxu0 %v1724_v20  ;;  %1797 = vmatprep.mubr.f32.mxu0 %v4723_v36 }
 0x48d   :  { %1990 = vmatpush1.msra.mxu0 %v1722_v23 }
 0x48e   :  { %1991 = vmatprep.subr.mxu0 %v1718_v42 }
 0x48f   :  { %1992 = vmatpush1.msra.mxu0 %v1716_v41 }
 0x490   :  { %4414 = vmatmul.mubr.msk.f32.gmra.mxu0 %vm63_vm0, %v4965_v45  ;;  %1993 = vmatprep.subr.mxu0 %v1712_v0 }
 0x491   :  { %1994 = vmatpush1.msra.mxu0 %v1710_v35  ;;  %2029 = vmatprep.mubr.f32.mxu0 %v4723_v36 }
 0x492   :  { %1995 = vmatprep.subr.mxu0 %v1706_v62 }
 0x493   :  { %1996 = vmatpush1.msra.mxu0 %v1704_v40 }
 0x494   :  { %4419 = vmatmul.mubr.msk.f32.vlgmr.msra.gmra.mxu0 %vm63_vm0, %v4979_v52 }
 0x495   :  { %2035 = vmatprep.mubr.f32.mxu0 %v4723_v36 }
 0x498   :  { %4420 = vmatmul.mubr.msk.f32.gmra.mxu0 %vm63_vm0, %v4975_v50 }
 0x499   :  { %2178 = vmatprep.mubr.f32.mxu0 %v4723_v36 }
 0x54b   :  { %v1793_v2 = vpop.f32.mrf.mxu0 }
 0x54c   :  { %v1804_v14 = vrot.slane %v1793_v2, 4 }
 0x54d   :  { %v1795_v61 = vpop.f32.mrf.mxu0 }
 0x54e   :  { %v1805_v1 = vmax.f32 %v1793_v2, %v1804_v14  ;;  %v1810_v34 = vrot.slane %v1795_v61, 4 }
 0x550   :  { %v1806_v8 = vrot.slane %v1805_v1, 2  ;;  %v1811_v22 = vmax.f32 %v1795_v61, %v1810_v34  ;;  %v1799_v63 = vpop.f32.mrf.mxu0 }
 0x551   :  { %v1840_v4 = vrot.slane %v1799_v63, 4 }
 0x552   :  { %v1807_v5 = vmax.f32 %v1805_v1, %v1806_v8  ;;  %v1812_v6 = vrot.slane %v1811_v22, 2  ;;  %v1801_v9 = vpop.f32.mrf.mxu0 }
 0x553   :  { %v1841_v10 = vmax.f32 %v1799_v63, %v1840_v4  ;;  %v1846_v15 = vrot.slane %v1801_v9, 4 }
 0x554   :  { %v1808_v17 = vrot.slane %v1807_v5, 1  ;;  %v1813_v11 = vmax.f32 %v1811_v22, %v1812_v6  ;;  %v2031_v21 = vpop.f32.mrf.mxu0 }
 0x555   :  { %v1842_v33 = vrot.slane %v1841_v10, 2  ;;  %v1847_v38 = vmax.f32 %v1801_v9, %v1846_v15  ;;  %v2042_v28 = vrot.slane %v2031_v21, 4 }
 0x556   :  { %v1809_v59 = vmax.f32 %v1807_v5, %v1808_v17  ;;  %v1814_v25 = vrot.slane %v1813_v11, 1  ;;  %v2033_v39 = vpop.f32.mrf.mxu0 }
 0x557   :  { %v1843_v13 = vmax.f32 %v1841_v10, %v1842_v33  ;;  %v1848_v12 = vrot.slane %v1847_v38, 2  ;;  %v2043_v31 = vmax.f32 %v2031_v21, %v2042_v28  ;;  %v2048_v57 = vrot.slane %v2033_v39, 4 }
 0x558   :  { %v1816_v40 = vsub.f32 %v1793_v2, %v1809_v59  ;;  %v1815_v37 = vmax.f32 %v1813_v11, %v1814_v25  ;;  %v2037_v62 = vpop.f32.mrf.mxu0 }
 0x559   :  { %v1844_v27 = vrot.slane %v1843_v13, 1  ;;  %v1849_v35 = vmax.f32 %v1847_v38, %v1848_v12  ;;  %v2044_v32 = vrot.slane %v2043_v31, 2  ;;  %v2049_v0 = vmax.f32 %v2033_v39, %v2048_v57 }
 0x55a   :  { %v1818_v41 = vmul.f32 1.442695, %v1816_v40  ;;  %v1817_v42 = vsub.f32 %v1795_v61, %v1815_v37  ;;  %v2078_v23 = vrot.slane %v2037_v62, 4  ;;  %v2039_v20 = vpop.f32.mrf.mxu0 }
 0x55b   :  { %v1845_v14 = vmax.f32 %v1843_v13, %v1844_v27  ;;  %v1850_v1 = vrot.slane %v1849_v35, 1  ;;  %v2045_v34 = vmax.f32 %v2043_v31, %v2044_v32  ;;  %v2050_v8 = vrot.slane %v2049_v0, 2 }
 0x55c   :  { %4606 = vpow2.f32 %v1818_v41  ;;  %v1820_v22 = vmul.f32 1.442695, %v1817_v42  ;;  %v2079_v4 = vmax.f32 %v2037_v62, %v2078_v23  ;;  %v2084_v5 = vrot.slane %v2039_v20, 4 }
 0x55d   :  { %v1852_v6 = vsub.f32 %v1799_v63, %v1845_v14  ;;  %v1851_v2 = vmax.f32 %v1849_v35, %v1850_v1  ;;  %v2046_v10 = vrot.slane %v2045_v34, 1  ;;  %v2051_v15 = vmax.f32 %v2049_v0, %v2050_v8 }
 0x55e   :  { %4608 = vpow2.f32 %v1820_v22  ;;  %v2080_v17 = vrot.slane %v2079_v4, 2  ;;  %v2085_v11 = vmax.f32 %v2039_v20, %v2084_v5 }
 0x55f   :  { %v1854_v33 = vmul.f32 1.442695, %v1852_v6  ;;  %v1853_v38 = vsub.f32 %v1801_v9, %v1851_v2  ;;  %v2047_v61 = vmax.f32 %v2045_v34, %v2046_v10  ;;  %v2052_v28 = vrot.slane %v2051_v15, 1 }
 0x560   :  { %v2081_v59 = vmax.f32 %v2079_v4, %v2080_v17  ;;  %v2086_v25 = vrot.slane %v2085_v11, 2 }
 0x561   :  { %4610 = vpow2.f32 %v1854_v33  ;;  %v1856_v13 = vmul.f32 1.442695, %v1853_v38  ;;  %v2054_v12 = vsub.f32 %v2031_v21, %v2047_v61  ;;  %v2053_v31 = vmax.f32 %v2051_v15, %v2052_v28 }
 0x562   :  { %v2082_v57 = vrot.slane %v2081_v59, 1  ;;  %v2087_v40 = vmax.f32 %v2085_v11, %v2086_v25 }
 0x563   :  { %4612 = vpow2.f32 %v1856_v13  ;;  %v2056_v63 = vmul.f32 1.442695, %v2054_v12  ;;  %v2055_v37 = vsub.f32 %v2033_v39, %v2053_v31 }
 0x564   :  { %v2083_v27 = vmax.f32 %v2081_v59, %v2082_v57  ;;  %v2088_v35 = vrot.slane %v2087_v40, 1 }
 0x565   :  { %4614 = vpow2.f32 %v2056_v63  ;;  %v2058_v32 = vmul.f32 1.442695, %v2055_v37 }
 0x566   :  { %v2090_v0 = vsub.f32 %v2037_v62, %v2083_v27  ;;  %v2089_v41 = vmax.f32 %v2087_v40, %v2088_v35 }
 0x567   :  { %4616 = vpow2.f32 %v2058_v32 }
 0x568   :  { %v2092_v9 = vmul.f32 1.442695, %v2090_v0  ;;  %v2091_v42 = vsub.f32 %v2039_v20, %v2089_v41 }
 0x569   :  { %v5158_v23 = vpop.eup %4606 }
 0x56a   :  { %4618 = vpow2.f32 %v2092_v9  ;;  %v2094_v14 = vmul.f32 1.442695, %v2091_v42  ;;  %v1822_v21 = vrot.slane %v5158_v23, 4 }
 0x56b   :  { %v5161_v1 = vpop.eup %4608 }
 0x56c   :  { %4620 = vpow2.f32 %v2094_v14  ;;  %v1828_v39 = vrot.slane %v5161_v1, 4  ;;  %v1823_v34 = vadd.f32 %v5158_v23, %v1822_v21 }
 0x56e   :  { %v5165_v8 = vpop.eup %4610  ;;  %v1829_v62 = vadd.f32 %v5161_v1, %v1828_v39  ;;  %v1824_v22 = vrot.slane %v1823_v34, 2 }
 0x56f   :  { %v1858_v20 = vrot.slane %v5165_v8, 4 }
 0x570   :  { %v5169_v4 = vpop.eup %4612  ;;  %v1830_v5 = vrot.slane %v1829_v62, 2  ;;  %v1825_v6 = vadd.f32 %v1824_v22, %v1823_v34 }
 0x571   :  { %v1864_v2 = vrot.slane %v5169_v4, 4  ;;  %v1859_v10 = vadd.f32 %v5165_v8, %v1858_v20 }
 0x572   :  { %v5173_v15 = vpop.eup %4614  ;;  %v1831_v17 = vadd.f32 %v1830_v5, %v1829_v62  ;;  %v1826_v59 = vrot.slane %v1825_v6, 1 }
 0x573   :  { %v1865_v11 = vadd.f32 %v5169_v4, %v1864_v2  ;;  %v1860_v33 = vrot.slane %v1859_v10, 2  ;;  %v2060_v38 = vrot.slane %v5173_v15, 4 }
 0x574   :  { %v5177_v61 = vpop.eup %4616  ;;  %v1832_v28 = vrot.slane %v1831_v17, 1  ;;  %v1827_v32 = vadd.f32 %v1826_v59, %v1825_v6 }
 0x575   :  { %v1866_v25 = vrot.slane %v1865_v11, 2  ;;  %v1861_v13 = vadd.f32 %v1860_v33, %v1859_v10  ;;  %v2066_v12 = vrot.slane %v5177_v61, 4  ;;  %v2061_v31 = vadd.f32 %v5173_v15, %v2060_v38 }
 0x576   :  { %v1833_v57 = vadd.f32 %v1832_v28, %v1831_v17 }
 0x577   :  { %v5181_v40 = vpop.eup %4618  ;;  %v1867_v63 = vadd.f32 %v1866_v25, %v1865_v11  ;;  %v1862_v37 = vrot.slane %v1861_v13, 1  ;;  %v2067_v27 = vadd.f32 %v5177_v61, %v2066_v12  ;;  %v2062_v35 = vrot.slane %v2061_v31, 2 }
 0x578   :  { %v2096_v0 = vrot.slane %v5181_v40, 4  ;;  %4622 = vrcp.f32 %v1833_v57 }
 0x579   :  { %v4621_v41 = vpop.eup %4620  ;;  %v1868_v9 = vrot.slane %v1867_v63, 1  ;;  %v1863_v42 = vadd.f32 %v1862_v37, %v1861_v13  ;;  %v2068_v14 = vrot.slane %v2067_v27, 2  ;;  %v2063_v21 = vadd.f32 %v2062_v35, %v2061_v31 }
 0x57a   :  { %v2102_v39 = vrot.slane %v4621_v41, 4  ;;  %v2097_v34 = vadd.f32 %v5181_v40, %v2096_v0 }
 0x57b   :  { %v1869_v62 = vadd.f32 %v1868_v9, %v1867_v63  ;;  %4624 = vrcp.f32 %v1863_v42  ;;  %v2069_v22 = vadd.f32 %v2068_v14, %v2067_v27  ;;  %v2064_v6 = vrot.slane %v2063_v21, 1 }
 0x57c   :  { %4626 = vrcp.f32 %v1827_v32  ;;  %v2103_v20 = vadd.f32 %v4621_v41, %v2102_v39  ;;  %v2098_v5 = vrot.slane %v2097_v34, 2 }
 0x57d   :  { %4628 = vrcp.f32 %v1869_v62  ;;  %v2070_v2 = vrot.slane %v2069_v22, 1  ;;  %v2065_v28 = vadd.f32 %v2064_v6, %v2063_v21 }
 0x57e   :  { %v2104_v10 = vrot.slane %v2103_v20, 2  ;;  %v2099_v17 = vadd.f32 %v2098_v5, %v2097_v34 }
 0x57f   :  { %v2071_v11 = vadd.f32 %v2070_v2, %v2069_v22 }
 0x580   :  { %v2105_v33 = vadd.f32 %v2104_v10, %v2103_v20  ;;  %v2100_v38 = vrot.slane %v2099_v17, 1 }
 0x581   :  { %4630 = vrcp.f32 %v2071_v11 }
 0x582   :  { %v2106_v59 = vrot.slane %v2105_v33, 1  ;;  %v2101_v25 = vadd.f32 %v2100_v38, %v2099_v17 }
 0x584   :  { %v2107_v13 = vadd.f32 %v2106_v59, %v2105_v33  ;;  %4632 = vrcp.f32 %v2101_v25 }
 0x585   :  { %4634 = vrcp.f32 %v2065_v28  ;;  %v4623_v12 = vpop.eup %4622 }
 0x586   :  { %4636 = vrcp.f32 %v2107_v13  ;;  %v1837_v35 = vmul.f32 -6.5, %v4623_v12 }
 0x588   :  { %v4625_v31 = vpop.eup %4624  ;;  %v1839_v42 = vmul.f32 %v5161_v1, %v1837_v35  ;;  %v2391_v35 = vstv %s4432_s30  ;;  %s4464_s30 = sld [smem:[#allocation2 + $0x183]] }
 0x589   :  { %v4627_v57 = vpop.eup %4626  ;;  %v1872_v37 = vmul.f32 7.5, %v4625_v31 }
 0x58a   :  { %v4629_v63 = vpop.eup %4628  ;;  %v1836_v32 = vmul.f32 -6.5, %v4627_v57  ;;  %v2388_v57 = vstv %s4431_s29  ;;  %s4461_s29 = sld [smem:[#allocation2 + $0x180]] }
 0x58b   :  { %v1873_v27 = vmul.f32 7.5, %v4629_v63  ;;  %v1874_v9 = vmul.f32 %v5165_v8, %v1872_v37 }
 0x58c   :  { %v1838_v21 = vmul.f32 %v5158_v23, %v1836_v32 }
 0x58d   :  { %v1875_v0 = vmul.f32 %v5169_v4, %v1873_v27  ;;  %v2389_v27 = vsel %vm583_vm1, %v2388_v57, 0.0  ;;  %v5273_v57 = vld [vmem:[%s5582_s4 + $0x8] sm:$0xff] }
 0x58e   :  { %v4631_v14 = vpop.eup %4630 }
 0x58f   :  { %1904 = vmatprep.subr.mxu1 %v1875_v0  ;;  %v2075_v8 = vmul.f32 -6.5, %v4631_v14 }
 0x590   :  { %1905 = vmatpush1.msra.mxu1 %v1874_v9  ;;  %v2392_v9 = vsel %vm587_vm2, %v2391_v35, %v2389_v27  ;;  %v5300_v27 = vld [vmem:[%s5582_s4 + $0x18] sm:$0xff] }
 0x591   :  { %v4633_v39 = vpop.eup %4632  ;;  %1906 = vmatprep.subr.mxu1 %v1839_v42  ;;  %v2077_v1 = vmul.f32 %v5177_v61, %v2075_v8  ;;  %v2394_v42 = vstv %s4433_s12  ;;  %s5552_s12 = sld [smem:[#allocation2 + $0x182]] }
 0x592   :  { %v4635_v34 = vpop.eup %4634  ;;  %1907 = vmatpush1.msra.mxu1 %v1838_v21  ;;  %v2110_v22 = vmul.f32 7.5, %v4633_v39 }
 0x593   :  { %v4637_v62 = vpop.eup %4636  ;;  %4415 = vmatmul.mubr.msk.f32.vlgmr.msra.gmra.mxu1 %vm969_vm9, %v4963_v44  ;;  %v2074_v20 = vmul.f32 -6.5, %v4635_v34  ;;  %v2397_v34 = vstv %s4434_s14 }
 0x594   :  { %1946 = vmatprep.mubr.f32.mxu1 %v4723_v36  ;;  %v2111_v4 = vmul.f32 7.5, %v4637_v62  ;;  %v2112_v23 = vmul.f32 %v5181_v40, %v2110_v22  ;;  %v2368_v62 = vstv %s4396_s13  ;;  %v2362_v22 = vstv %s5223_s1 }
 0x595   :  { %v2076_v2 = vmul.f32 %v5173_v15, %v2074_v20 }
 0x596   :  { %v2113_v5 = vmul.f32 %v4621_v41, %v2111_v4 }
 0x597   :  { %4416 = vmatmul.mubr.msk.f32.gmra.mxu1 %vm969_vm9, %v4961_v43 }
 0x598   :  { %2142 = vmatprep.subr.mxu0 %v2113_v5  ;;  %1952 = vmatprep.mubr.f32.mxu1 %v4723_v36  ;;  %v2365_v5 = vstv %s5228_s3 }
 0x599   :  { %2143 = vmatpush1.msra.mxu0 %v2112_v23 }
 0x59a   :  { %2144 = vmatprep.subr.mxu0 %v2077_v1 }
 0x59b   :  { %2145 = vmatpush1.msra.mxu0 %v2076_v2  ;;  %4417 = vmatmul.mubr.msk.f32.gmra.mxu1 %vm969_vm9, %v4969_v47 }
 0x59c   :  { %4421 = vmatmul.mubr.msk.f32.vlgmr.msra.gmra.mxu0 %vm969_vm9, %v4977_v51  ;;  %1958 = vmatprep.mubr.f32.mxu1 %v4723_v36 }
 0x59d   :  { %2184 = vmatprep.mubr.f32.mxu0 %v4723_v36 }
 0x59f   :  { %4418 = vmatmul.mubr.msk.f32.gmra.mxu1 %vm969_vm9, %v4967_v46 }
 0x5a0   :  { %4422 = vmatmul.mubr.msk.f32.gmra.mxu0 %vm969_vm9, %v4973_v49  ;;  %2269 = vmatprep.mubr.f32.mxu1 %v4723_v36 }
 0x5a1   :  { %2190 = vmatprep.mubr.f32.mxu0 %v4723_v36 }
 0x5a4   :  { %4423 = vmatmul.mubr.msk.f32.gmra.mxu0 %vm969_vm9, %v4985_v55 }
 0x5a5   :  { %2196 = vmatprep.mubr.f32.mxu0 %v4723_v36 }
 0x5a8   :  { %4424 = vmatmul.mubr.msk.f32.gmra.mxu0 %vm969_vm9, %v4981_v53 }
 0x5a9   :  { %2575 = vmatprep.mubr.f32.mxu0 %v4723_v36 }
 0x653   :  { %v1942_v15 = vpop.f32.mrf.mxu1 }
 0x655   :  { %v1944_v61 = vpop.f32.mrf.mxu1 }
 0x657   :  { %v1948_v40 = vpop.f32.mrf.mxu1 }
 0x659   :  { %v1950_v41 = vpop.f32.mrf.mxu1 }
 0x65b   :  { %v1954_v6 = vpop.f32.mrf.mxu1 }
 0x65c   :  { %v2180_v10 = vpop.f32.mrf.mxu0 }
 0x65d   :  { %v1956_v17 = vpop.f32.mrf.mxu1 }
 0x65e   :  { %v2182_v11 = vpop.f32.mrf.mxu0 }
 0x65f   :  { %v1960_v33 = vpop.f32.mrf.mxu1 }
 0x660   :  { %v2186_v38 = vpop.f32.mrf.mxu0 }
 0x661   :  { %v1962_v28 = vpop.f32.mrf.mxu1 }
 0x662   :  { %v2188_v59 = vpop.f32.mrf.mxu0  ;;  %2229 = vmatprep.subr.mxu1 %v1962_v28 }
 0x663   :  { %2230 = vmatpush1.msra.mxu1 %v1960_v33 }
 0x664   :  { %v2192_v25 = vpop.f32.mrf.mxu0  ;;  %2231 = vmatprep.subr.mxu1 %v1956_v17 }
 0x665   :  { %2232 = vmatpush1.msra.mxu1 %v1954_v6 }
 0x666   :  { %v2194_v13 = vpop.f32.mrf.mxu0  ;;  %2233 = vmatprep.subr.mxu1 %v1950_v41 }
 0x667   :  { %2234 = vmatpush1.msra.mxu1 %v1948_v40 }
 0x668   :  { %v2198_v12 = vpop.f32.mrf.mxu0  ;;  %2235 = vmatprep.subr.mxu1 %v1944_v61 }
 0x669   :  { %2236 = vmatpush1.msra.mxu1 %v1942_v15 }
 0x66a   :  { %v2200_v31 = vpop.f32.mrf.mxu0  ;;  %4425 = vmatmul.mubr.msk.f32.vlgmr.msra.gmra.mxu1 %vm63_vm0, %v5067_v18 }
 0x66b   :  { %2300 = vmatprep.subr.mxu1 %v2200_v31  ;;  %2340 = vmatprep.mubr.f32.mxu1 %v4723_v36 }
 0x66c   :  { %2301 = vmatpush1.msra.mxu1 %v2198_v12  ;;  %v5260_v12 = vld [vmem:[%s5582_s4] sm:$0xff] }
 0x66d   :  { %2302 = vmatprep.subr.mxu1 %v2194_v13 }
 0x66e   :  { %2303 = vmatpush1.msra.mxu1 %v2192_v25 }
 0x66f   :  { %2304 = vmatprep.subr.mxu1 %v2188_v59 }
 0x670   :  { %2305 = vmatpush1.msra.mxu1 %v2186_v38 }
 0x671   :  { %2306 = vmatprep.subr.mxu1 %v2182_v11 }
 0x672   :  { %2307 = vmatpush1.msra.mxu1 %v2180_v10 }
 0x673   :  { %4426 = vmatmul.mubr.msk.f32.vlgmr.msra.gmra.mxu1 %vm63_vm0, %v5067_v18  ;;  %v2347_v18 = vstv %s4393_s6  ;;  %s5548_s6 = sld [smem:[#allocation2 + $0x181]] }
 0x674   :  { %2486 = vmatprep.mubr.f32.mxu1 %v4723_v36 }
 0x72a   :  { %v2271_v63 = vpop.f32.mrf.mxu1 }
 0x72b   :  { %v2272_v37 = vadd.f32 %v2271_v63, %v5098_v16  ;;  %v2395_v16 = vsel %vm591_vm3, %v2394_v42, %v2392_v9 }
 0x72c   :  { %v2273_v32 = vpop.f32.mrf.mxu1 }
 0x72d   :  { %v2274_v0 = vadd.f32 %v2273_v32, %v5103_v19  ;;  %v2348_v14 = vmul.f32 %v2347_v18, %v2272_v37  ;;  %v2398_v19 = vsel %vm595_vm4, %v2397_v34, %v2395_v16  ;;  %v2369_v1 = vmul.f32 %v2368_v62, %v2272_v37  ;;  %v5289_v37 = vld [vmem:[%s5582_s4 + $0x10] sm:$0xff] }
 0x72e   :  { %v2406_v6 = vrot.slane %v2398_v19, %v4854_v24 }
 0x72f   :  { %v2349_v21 = vmul.f32 %v2347_v18, %v2274_v0  ;;  %v2370_v8 = vmul.f32 %v2368_v62, %v2274_v0 }
 0x731   :  { %v2356_v39 = vcombine.low %v2348_v14, %v2349_v21  ;;  %v2377_v41 = vcombine.low %v2369_v1, %v2370_v8 }
 0x733   :  { %v2360_v4 = vsub.f32 %v5095_v26, %v2356_v39  ;;  %v2342_v20 = vpop.f32.mrf.mxu1 }
 0x734   :  { %v2343_v23 = vadd.f32 %v2342_v20, %v5115_v29 }
 0x735   :  { %v2363_v2 = vmul.f32 %v2362_v22, %v2360_v4  ;;  %v2344_v15 = vpop.f32.mrf.mxu1 }
 0x736   :  { %v2345_v61 = vadd.f32 %v2344_v15, %v5121_v30  ;;  %v2350_v10 = vmul.f32 %v2347_v18, %v2343_v23  ;;  %v2371_v30 = vmul.f32 %v2368_v62, %v2343_v23 }
 0x737   :  { %v2366_v40 = vmul.f32 %v2365_v5, %v2363_v2 }
 0x738   :  { %v2351_v17 = vmul.f32 %v2347_v18, %v2345_v61  ;;  %v2372_v29 = vmul.f32 %v2368_v62, %v2345_v61 }
 0x739   :  { %v5243_v26 = vadd.f32 %v2377_v41, %v2366_v40 }
 0x73a   :  { %v2357_v11 = vcombine.low %v2350_v10, %v2351_v17  ;;  %v2378_v13 = vcombine.low %v2371_v30, %v2372_v29 }
 0x73b   :  { %v5246_v33 = vadd.f32 %v2406_v6, %v5243_v26 }
 0x73c   :  { %v2361_v38 = vsub.f32 %v5111_v3, %v2357_v11 }
 0x73d   :  { %v5251_v28 = vcombine.high %v5246_v33, %v5246_v33 }
 0x73e   :  { %v2364_v59 = vmul.f32 %v2362_v22, %v2361_v38 }
 0x73f   :  { %4435 = vmatprep.subr.msk.mxu1 %vm627_vm6, %v5251_v28 }
 0x740   :  { %v2367_v25 = vmul.f32 %v2365_v5, %v2364_v59  ;;  %4436 = vmatpush1.msk.msra.mxu1 %vm627_vm6, %v5246_v33 }
 0x741   :  { %4437 = vmatmul.mubr.msk.f32.vlgmr.msra.gmra.mxu1 %vm614_vm8, %v5260_v12 }
 0x742   :  { %v5264_v3 = vadd.f32 %v2378_v13, %v2367_v25  ;;  %2492 = vmatprep.mubr.f32.mxu1 %v4723_v36 }
 0x744   :  { %v5268_v31 = vadd.f32 %v2406_v6, %v5264_v3 }
 0x745   :  { %4438 = vmatmul.mubr.msk.f32.gmra.mxu1 %vm614_vm8, %v5273_v57 }
 0x746   :  { %v5279_v63 = vcombine.high %v5268_v31, %v5268_v31  ;;  %2498 = vmatprep.mubr.f32.mxu1 %v4723_v36 }
 0x748   :  { %4441 = vmatprep.subr.msk.mxu0 %vm627_vm6, %v5279_v63 }
 0x749   :  { %4442 = vmatpush1.msk.msra.mxu0 %vm627_vm6, %v5268_v31  ;;  %4439 = vmatmul.mubr.msk.f32.gmra.mxu1 %vm614_vm8, %v5289_v37 }
 0x74a   :  { %4443 = vmatmul.mubr.msk.f32.vlgmr.msra.gmra.mxu0 %vm614_vm8, %v5260_v12  ;;  %2504 = vmatprep.mubr.f32.mxu1 %v4723_v36 }
 0x74b   :  { %2581 = vmatprep.mubr.f32.mxu0 %v4723_v36 }
 0x74d   :  { %4440 = vmatmul.mubr.msk.f32.gmra.mxu1 %vm614_vm8, %v5300_v27 }
 0x74e   :  { %4444 = vmatmul.mubr.msk.f32.gmra.mxu0 %vm614_vm8, %v5273_v57  ;;  %2664 = vmatprep.mubr.f32.mxu1 %v4723_v36 }
 0x74f   :  { %2587 = vmatprep.mubr.f32.mxu0 %v4723_v36 }
 0x752   :  { %4445 = vmatmul.mubr.msk.f32.gmra.mxu0 %vm614_vm8, %v5289_v37 }
 0x753   :  { %2593 = vmatprep.mubr.f32.mxu0 %v4723_v36 }
 0x756   :  { %4446 = vmatmul.mubr.msk.f32.gmra.mxu0 %vm614_vm8, %v5300_v27 }
 0x757   :  { %2813 = vmatprep.mubr.f32.mxu0 %v4723_v36 }
 0x801   :  { %v2488_v35 = vpop.f32.mrf.mxu1 }
 0x803   :  { %v2490_v18 = vpop.f32.mrf.mxu1 }
 0x805   :  { %v2494_v32 = vpop.f32.mrf.mxu1 }
 0x807   :  { %v2496_v0 = vpop.f32.mrf.mxu1 }
 0x809   :  { %v2500_v9 = vpop.f32.mrf.mxu1 }
 0x80a   :  { %v2577_v42 = vpop.f32.mrf.mxu0 }
 0x80b   :  { %v2502_v14 = vpop.f32.mrf.mxu1 }
 0x80c   :  { %v2579_v21 = vpop.f32.mrf.mxu0 }
 0x80d   :  { %v2506_v39 = vpop.f32.mrf.mxu1 }
 0x80e   :  { %v2583_v16 = vpop.f32.mrf.mxu0 }
 0x80f   :  { %v2508_v34 = vpop.f32.mrf.mxu1 }
 0x810   :  { %v2585_v62 = vpop.f32.mrf.mxu0  ;;  %2624 = vmatprep.subr.mxu1 %v2508_v34 }
 0x811   :  { %2625 = vmatpush1.msra.mxu1 %v2506_v39 }
 0x812   :  { %v2589_v22 = vpop.f32.mrf.mxu0  ;;  %2626 = vmatprep.subr.mxu1 %v2502_v14 }
 0x813   :  { %2627 = vmatpush1.msra.mxu1 %v2500_v9 }
 0x814   :  { %v2591_v4 = vpop.f32.mrf.mxu0  ;;  %2628 = vmatprep.subr.mxu1 %v2496_v0 }
 0x815   :  { %2629 = vmatpush1.msra.mxu1 %v2494_v32 }
 0x816   :  { %v2595_v8 = vpop.f32.mrf.mxu0  ;;  %2630 = vmatprep.subr.mxu1 %v2490_v18 }
 0x817   :  { %2631 = vmatpush1.msra.mxu1 %v2488_v35 }
 0x818   :  { %v2597_v20 = vpop.f32.mrf.mxu0  ;;  %4447 = vmatmul.mubr.msk.f32.vlgmr.msra.gmra.mxu1 %vm63_vm0, %v4971_v48 }
 0x819   :  { %2862 = vmatprep.subr.mxu1 %v2597_v20  ;;  %2670 = vmatprep.mubr.f32.mxu1 %v4723_v36 }
 0x81a   :  { %2863 = vmatpush1.msra.mxu1 %v2595_v8 }
 0x81b   :  { %2864 = vmatprep.subr.mxu1 %v2591_v4 }
 0x81c   :  { %2865 = vmatpush1.msra.mxu1 %v2589_v22 }
 0x81d   :  { %4448 = vmatmul.mubr.msk.f32.gmra.mxu1 %vm63_vm0, %v4965_v45  ;;  %2866 = vmatprep.subr.mxu1 %v2585_v62 }
 0x81e   :  { %2867 = vmatpush1.msra.mxu1 %v2583_v16  ;;  %2902 = vmatprep.mubr.f32.mxu1 %v4723_v36 }
 0x81f   :  { %2868 = vmatprep.subr.mxu1 %v2579_v21 }
 0x820   :  { %2869 = vmatpush1.msra.mxu1 %v2577_v42 }
 0x821   :  { %4453 = vmatmul.mubr.msk.f32.vlgmr.msra.gmra.mxu1 %vm63_vm0, %v4979_v52 }
 0x822   :  { %2908 = vmatprep.mubr.f32.mxu1 %v4723_v36 }
 0x825   :  { %4454 = vmatmul.mubr.msk.f32.gmra.mxu1 %vm63_vm0, %v4975_v50 }
 0x826   :  { %3051 = vmatprep.mubr.f32.mxu1 %v4723_v36 }
 0x8d8   :  { %v2666_v5 = vpop.f32.mrf.mxu1 }
 0x8d9   :  { %v2677_v19 = vrot.slane %v2666_v5, 4 }
 0x8da   :  { %v2668_v23 = vpop.f32.mrf.mxu1 }
 0x8db   :  { %v2678_v1 = vmax.f32 %v2666_v5, %v2677_v19  ;;  %v2683_v2 = vrot.slane %v2668_v23, 4 }
 0x8dd   :  { %v2679_v15 = vrot.slane %v2678_v1, 2  ;;  %v2684_v61 = vmax.f32 %v2668_v23, %v2683_v2  ;;  %v2672_v40 = vpop.f32.mrf.mxu1 }
 0x8de   :  { %v2713_v41 = vrot.slane %v2672_v40, 4 }
 0x8df   :  { %v2680_v6 = vmax.f32 %v2678_v1, %v2679_v15  ;;  %v2685_v10 = vrot.slane %v2684_v61, 2  ;;  %v2674_v17 = vpop.f32.mrf.mxu1 }
 0x8e0   :  { %v2714_v11 = vmax.f32 %v2672_v40, %v2713_v41  ;;  %v2719_v38 = vrot.slane %v2674_v17, 4 }
 0x8e1   :  { %v2681_v29 = vrot.slane %v2680_v6, 1  ;;  %v2686_v30 = vmax.f32 %v2684_v61, %v2685_v10  ;;  %v2904_v59 = vpop.f32.mrf.mxu1 }
 0x8e2   :  { %v2715_v25 = vrot.slane %v2714_v11, 2  ;;  %v2720_v13 = vmax.f32 %v2674_v17, %v2719_v38  ;;  %v2915_v35 = vrot.slane %v2904_v59, 4 }
 0x8e3   :  { %v2682_v18 = vmax.f32 %v2680_v6, %v2681_v29  ;;  %v2687_v32 = vrot.slane %v2686_v30, 1  ;;  %v2906_v0 = vpop.f32.mrf.mxu1 }
 0x8e4   :  { %v2716_v9 = vmax.f32 %v2714_v11, %v2715_v25  ;;  %v2721_v42 = vrot.slane %v2720_v13, 2  ;;  %v2916_v14 = vmax.f32 %v2904_v59, %v2915_v35  ;;  %v2921_v21 = vrot.slane %v2906_v0, 4 }
 0x8e5   :  { %v2689_v39 = vsub.f32 %v2666_v5, %v2682_v18  ;;  %v2688_v16 = vmax.f32 %v2686_v30, %v2687_v32  ;;  %v2910_v34 = vpop.f32.mrf.mxu1 }
 0x8e6   :  { %v2717_v62 = vrot.slane %v2716_v9, 1  ;;  %v2722_v22 = vmax.f32 %v2720_v13, %v2721_v42  ;;  %v2917_v4 = vrot.slane %v2916_v14, 2  ;;  %v2922_v8 = vmax.f32 %v2906_v0, %v2921_v21 }
 0x8e7   :  { %v2691_v20 = vmul.f32 1.442695, %v2689_v39  ;;  %v2690_v19 = vsub.f32 %v2668_v23, %v2688_v16  ;;  %v2951_v1 = vrot.slane %v2910_v34, 4  ;;  %v2912_v2 = vpop.f32.mrf.mxu1 }
 0x8e8   :  { %v2718_v15 = vmax.f32 %v2716_v9, %v2717_v62  ;;  %v2723_v61 = vrot.slane %v2722_v22, 1  ;;  %v2918_v41 = vmax.f32 %v2916_v14, %v2917_v4  ;;  %v2923_v6 = vrot.slane %v2922_v8, 2 }
 0x8e9   :  { %4638 = vpow2.f32 %v2691_v20  ;;  %v2693_v10 = vmul.f32 1.442695, %v2690_v19  ;;  %v2952_v11 = vmax.f32 %v2910_v34, %v2951_v1  ;;  %v2957_v38 = vrot.slane %v2912_v2, 4 }
 0x8ea   :  { %v2725_v29 = vsub.f32 %v2672_v40, %v2718_v15  ;;  %v2724_v5 = vmax.f32 %v2722_v22, %v2723_v61  ;;  %v2919_v30 = vrot.slane %v2918_v41, 1  ;;  %v2924_v25 = vmax.f32 %v2922_v8, %v2923_v6 }
 0x8eb   :  { %4640 = vpow2.f32 %v2693_v10  ;;  %v2953_v13 = vrot.slane %v2952_v11, 2  ;;  %v2958_v35 = vmax.f32 %v2912_v2, %v2957_v38 }
 0x8ec   :  { %v2727_v18 = vmul.f32 1.442695, %v2725_v29  ;;  %v2726_v32 = vsub.f32 %v2674_v17, %v2724_v5  ;;  %v2920_v23 = vmax.f32 %v2918_v41, %v2919_v30  ;;  %v2925_v42 = vrot.slane %v2924_v25, 1 }
 0x8ed   :  { %v2954_v21 = vmax.f32 %v2952_v11, %v2953_v13  ;;  %v2959_v9 = vrot.slane %v2958_v35, 2 }
 0x8ee   :  { %4642 = vpow2.f32 %v2727_v18  ;;  %v2729_v14 = vmul.f32 1.442695, %v2726_v32  ;;  %v2927_v39 = vsub.f32 %v2904_v59, %v2920_v23  ;;  %v2926_v16 = vmax.f32 %v2924_v25, %v2925_v42 }
 0x8ef   :  { %v2955_v62 = vrot.slane %v2954_v21, 1  ;;  %v2960_v4 = vmax.f32 %v2958_v35, %v2959_v9 }
 0x8f0   :  { %4644 = vpow2.f32 %v2729_v14  ;;  %v2929_v40 = vmul.f32 1.442695, %v2927_v39  ;;  %v2928_v22 = vsub.f32 %v2906_v0, %v2926_v16 }
 0x8f1   :  { %v2956_v20 = vmax.f32 %v2954_v21, %v2955_v62  ;;  %v2961_v8 = vrot.slane %v2960_v4, 1 }
 0x8f2   :  { %4646 = vpow2.f32 %v2929_v40  ;;  %v2931_v19 = vmul.f32 1.442695, %v2928_v22 }
 0x8f3   :  { %v2963_v1 = vsub.f32 %v2910_v34, %v2956_v20  ;;  %v2962_v15 = vmax.f32 %v2960_v4, %v2961_v8 }
 0x8f4   :  { %4648 = vpow2.f32 %v2931_v19 }
 0x8f5   :  { %v2965_v17 = vmul.f32 1.442695, %v2963_v1  ;;  %v2964_v61 = vsub.f32 %v2912_v2, %v2962_v15 }
 0x8f6   :  { %v5326_v41 = vpop.eup %4638 }
 0x8f7   :  { %4650 = vpow2.f32 %v2965_v17  ;;  %v2967_v6 = vmul.f32 1.442695, %v2964_v61  ;;  %v2695_v59 = vrot.slane %v5326_v41, 4 }
 0x8f8   :  { %v5329_v10 = vpop.eup %4640 }
 0x8f9   :  { %4652 = vpow2.f32 %v2967_v6  ;;  %v2701_v0 = vrot.slane %v5329_v10, 4  ;;  %v2696_v11 = vadd.f32 %v5326_v41, %v2695_v59 }
 0x8fb   :  { %v5333_v38 = vpop.eup %4642  ;;  %v2702_v34 = vadd.f32 %v5329_v10, %v2701_v0  ;;  %v2697_v29 = vrot.slane %v2696_v11, 2 }
 0x8fc   :  { %v2731_v2 = vrot.slane %v5333_v38, 4 }
 0x8fd   :  { %v5337_v5 = vpop.eup %4644  ;;  %v2703_v30 = vrot.slane %v2702_v34, 2  ;;  %v2698_v25 = vadd.f32 %v2697_v29, %v2696_v11 }
 0x8fe   :  { %v2737_v13 = vrot.slane %v5337_v5, 4  ;;  %v2732_v35 = vadd.f32 %v5333_v38, %v2731_v2 }
 0x8ff   :  { %v5341_v18 = vpop.eup %4646  ;;  %v2704_v32 = vadd.f32 %v2703_v30, %v2702_v34  ;;  %v2699_v39 = vrot.slane %v2698_v25, 1 }
 0x900   :  { %v2738_v23 = vadd.f32 %v5337_v5, %v2737_v13  ;;  %v2733_v42 = vrot.slane %v2732_v35, 2  ;;  %v2933_v21 = vrot.slane %v5341_v18, 4 }
 0x901   :  { %v5345_v9 = vpop.eup %4648  ;;  %v2705_v14 = vrot.slane %v2704_v32, 1  ;;  %v2700_v17 = vadd.f32 %v2699_v39, %v2698_v25 }
 0x902   :  { %v2739_v16 = vrot.slane %v2738_v23, 2  ;;  %v2734_v62 = vadd.f32 %v2733_v42, %v2732_v35  ;;  %v2939_v4 = vrot.slane %v5345_v9, 4  ;;  %v2934_v40 = vadd.f32 %v5341_v18, %v2933_v21 }
 0x903   :  { %v2706_v22 = vadd.f32 %v2705_v14, %v2704_v32 }
 0x904   :  { %v5349_v20 = vpop.eup %4650  ;;  %v2740_v8 = vadd.f32 %v2739_v16, %v2738_v23  ;;  %v2735_v19 = vrot.slane %v2734_v62, 1  ;;  %v2940_v1 = vadd.f32 %v5345_v9, %v2939_v4  ;;  %v2935_v15 = vrot.slane %v2934_v40, 2 }
 0x905   :  { %v2969_v61 = vrot.slane %v5349_v20, 4  ;;  %4654 = vrcp.f32 %v2706_v22 }
 0x906   :  { %v4653_v6 = vpop.eup %4652  ;;  %v2741_v59 = vrot.slane %v2740_v8, 1  ;;  %v2736_v0 = vadd.f32 %v2735_v19, %v2734_v62  ;;  %v2941_v11 = vrot.slane %v2940_v1, 2  ;;  %v2936_v34 = vadd.f32 %v2935_v15, %v2934_v40 }
 0x907   :  { %v2975_v29 = vrot.slane %v4653_v6, 4  ;;  %v2970_v2 = vadd.f32 %v5349_v20, %v2969_v61 }
 0x908   :  { %v2742_v30 = vadd.f32 %v2741_v59, %v2740_v8  ;;  %4656 = vrcp.f32 %v2736_v0  ;;  %v2942_v13 = vadd.f32 %v2941_v11, %v2940_v1  ;;  %v2937_v25 = vrot.slane %v2936_v34, 1 }
 0x909   :  { %4658 = vrcp.f32 %v2700_v17  ;;  %v2976_v35 = vadd.f32 %v4653_v6, %v2975_v29  ;;  %v2971_v32 = vrot.slane %v2970_v2, 2 }
 0x90a   :  { %4660 = vrcp.f32 %v2742_v30  ;;  %v2943_v23 = vrot.slane %v2942_v13, 1  ;;  %v2938_v62 = vadd.f32 %v2937_v25, %v2936_v34 }
 0x90b   :  { %v2977_v42 = vrot.slane %v2976_v35, 2  ;;  %v2972_v21 = vadd.f32 %v2971_v32, %v2970_v2 }
 0x90c   :  { %v2944_v14 = vadd.f32 %v2943_v23, %v2942_v13 }
 0x90d   :  { %v2978_v39 = vadd.f32 %v2977_v42, %v2976_v35  ;;  %v2973_v16 = vrot.slane %v2972_v21, 1 }
 0x90e   :  { %4662 = vrcp.f32 %v2944_v14 }
 0x90f   :  { %v2979_v4 = vrot.slane %v2978_v39, 1  ;;  %v2974_v40 = vadd.f32 %v2973_v16, %v2972_v21 }
 0x911   :  { %v2980_v22 = vadd.f32 %v2979_v4, %v2978_v39  ;;  %4664 = vrcp.f32 %v2974_v40 }
 0x912   :  { %4666 = vrcp.f32 %v2938_v62  ;;  %v4655_v8 = vpop.eup %4654 }
 0x913   :  { %4668 = vrcp.f32 %v2980_v22  ;;  %v2710_v59 = vmul.f32 -6.5, %v4655_v8 }
 0x915   :  { %v4657_v19 = vpop.eup %4656  ;;  %v2712_v34 = vmul.f32 %v5329_v10, %v2710_v59 }
 0x916   :  { %v4659_v1 = vpop.eup %4658  ;;  %v2745_v17 = vmul.f32 7.5, %v4657_v19 }
 0x917   :  { %v4661_v15 = vpop.eup %4660  ;;  %v2709_v0 = vmul.f32 -6.5, %v4659_v1 }
 0x918   :  { %v2746_v61 = vmul.f32 7.5, %v4661_v15  ;;  %v2747_v29 = vmul.f32 %v5333_v38, %v2745_v17 }
 0x919   :  { %v2711_v30 = vmul.f32 %v5326_v41, %v2709_v0 }
 0x91a   :  { %v2748_v11 = vmul.f32 %v5337_v5, %v2746_v61  ;;  %v5388_v61 = vld [vmem:[%s5585_s7] sm:$0xf]  ;;  %s4465_s7 = sld [smem:[#allocation2 + $0x184]] }
 0x91b   :  { %v4663_v2 = vpop.eup %4662 }
 0x91c   :  { %2777 = vmatprep.subr.mxu0 %v2748_v11  ;;  %v2948_v38 = vmul.f32 -6.5, %v4663_v2  ;;  %v3220_v2 = vstv %s4427_s5 }
 0x91d   :  { %2778 = vmatpush1.msra.mxu0 %v2747_v29 }
 0x91e   :  { %v4665_v13 = vpop.eup %4664  ;;  %2779 = vmatprep.subr.mxu0 %v2712_v34  ;;  %v2950_v10 = vmul.f32 %v5345_v9, %v2948_v38  ;;  %v3264_v34 = vstv %s4466_s23 }
 0x91f   :  { %v4667_v35 = vpop.eup %4666  ;;  %2780 = vmatpush1.msra.mxu0 %v2711_v30  ;;  %v2983_v23 = vmul.f32 7.5, %v4665_v13 }
 0x920   :  { %v4669_v32 = vpop.eup %4668  ;;  %4449 = vmatmul.mubr.msk.f32.vlgmr.msra.gmra.mxu0 %vm969_vm9, %v4963_v44  ;;  %v2947_v25 = vmul.f32 -6.5, %v4667_v35  ;;  %v3261_v59 = vstv %s4465_s7 }
 0x921   :  { %2819 = vmatprep.mubr.f32.mxu0 %v4723_v36  ;;  %v2984_v5 = vmul.f32 7.5, %v4669_v32  ;;  %v2985_v41 = vmul.f32 %v5349_v20, %v2983_v23  ;;  %v3262_v29 = vsel %vm583_vm1, %v3261_v59, 0.0  ;;  %v3267_v32 = vstv %s4467_s24 }
 0x922   :  { %v2949_v21 = vmul.f32 %v5341_v18, %v2947_v25  ;;  %v3265_v35 = vsel %vm587_vm2, %v3264_v34, %v3262_v29  ;;  %v3270_v25 = vstv %s4468_s25 }
 0x923   :  { %v2986_v42 = vmul.f32 %v4653_v6, %v2984_v5 }
 0x924   :  { %4450 = vmatmul.mubr.msk.f32.gmra.mxu0 %vm969_vm9, %v4961_v43 }
 0x925   :  { %3015 = vmatprep.subr.mxu1 %v2986_v42  ;;  %2825 = vmatprep.mubr.f32.mxu0 %v4723_v36  ;;  %v3241_v42 = vstv %s4430_s0 }
 0x926   :  { %3016 = vmatpush1.msra.mxu1 %v2985_v41  ;;  %v3235_v41 = vstv %s5396_s26 }
 0x927   :  { %3017 = vmatprep.subr.mxu1 %v2950_v10 }
 0x928   :  { %3018 = vmatpush1.msra.mxu1 %v2949_v21  ;;  %4451 = vmatmul.mubr.msk.f32.gmra.mxu0 %vm969_vm9, %v4969_v47 }
 0x929   :  { %4455 = vmatmul.mubr.msk.f32.vlgmr.msra.gmra.mxu1 %vm969_vm9, %v4977_v51  ;;  %2831 = vmatprep.mubr.f32.mxu0 %v4723_v36 }
 0x92a   :  { %3057 = vmatprep.mubr.f32.mxu1 %v4723_v36 }
 0x92c   :  { %4452 = vmatmul.mubr.msk.f32.gmra.mxu0 %vm969_vm9, %v4967_v46 }
 0x92d   :  { %4456 = vmatmul.mubr.msk.f32.gmra.mxu1 %vm969_vm9, %v4973_v49  ;;  %3142 = vmatprep.mubr.f32.mxu0 %v4723_v36 }
 0x92e   :  { %3063 = vmatprep.mubr.f32.mxu1 %v4723_v36 }
 0x931   :  { %4457 = vmatmul.mubr.msk.f32.gmra.mxu1 %vm969_vm9, %v4985_v55 }
 0x932   :  { %3069 = vmatprep.mubr.f32.mxu1 %v4723_v36 }
 0x935   :  { %4458 = vmatmul.mubr.msk.f32.gmra.mxu1 %vm969_vm9, %v4981_v53 }
 0x936   :  { %3448 = vmatprep.mubr.f32.mxu1 %v4723_v36 }
 0x9e0   :  { %v2815_v18 = vpop.f32.mrf.mxu0 }
 0x9e2   :  { %v2817_v9 = vpop.f32.mrf.mxu0 }
 0x9e4   :  { %v2821_v20 = vpop.f32.mrf.mxu0 }
 0x9e6   :  { %v2823_v6 = vpop.f32.mrf.mxu0 }
 0x9e8   :  { %v2827_v14 = vpop.f32.mrf.mxu0 }
 0x9e9   :  { %v3053_v39 = vpop.f32.mrf.mxu1 }
 0x9ea   :  { %v2829_v16 = vpop.f32.mrf.mxu0 }
 0x9eb   :  { %v3055_v62 = vpop.f32.mrf.mxu1 }
 0x9ec   :  { %v2833_v4 = vpop.f32.mrf.mxu0 }
 0x9ed   :  { %v3059_v40 = vpop.f32.mrf.mxu1 }
 0x9ee   :  { %v2835_v22 = vpop.f32.mrf.mxu0 }
 0x9ef   :  { %v3061_v8 = vpop.f32.mrf.mxu1  ;;  %3102 = vmatprep.subr.mxu0 %v2835_v22 }
 0x9f0   :  { %3103 = vmatpush1.msra.mxu0 %v2833_v4 }
 0x9f1   :  { %v3065_v19 = vpop.f32.mrf.mxu1  ;;  %3104 = vmatprep.subr.mxu0 %v2829_v16 }
 0x9f2   :  { %3105 = vmatpush1.msra.mxu0 %v2827_v14 }
 0x9f3   :  { %v3067_v1 = vpop.f32.mrf.mxu1  ;;  %3106 = vmatprep.subr.mxu0 %v2823_v6 }
 0x9f4   :  { %3107 = vmatpush1.msra.mxu0 %v2821_v20 }
 0x9f5   :  { %v3071_v15 = vpop.f32.mrf.mxu1  ;;  %3108 = vmatprep.subr.mxu0 %v2817_v9  ;;  %v3238_v9 = vstv %s5401_s27 }
 0x9f6   :  { %3109 = vmatpush1.msra.mxu0 %v2815_v18 }
 0x9f7   :  { %v3073_v17 = vpop.f32.mrf.mxu1  ;;  %4459 = vmatmul.mubr.msk.f32.vlgmr.msra.gmra.mxu0 %vm63_vm0, %v5388_v61 }
 0x9f8   :  { %3173 = vmatprep.subr.mxu0 %v3073_v17  ;;  %3213 = vmatprep.mubr.f32.mxu0 %v4723_v36 }
 0x9f9   :  { %3174 = vmatpush1.msra.mxu0 %v3071_v15 }
 0x9fa   :  { %3175 = vmatprep.subr.mxu0 %v3067_v1 }
 0x9fb   :  { %3176 = vmatpush1.msra.mxu0 %v3065_v19 }
 0x9fc   :  { %3177 = vmatprep.subr.mxu0 %v3061_v8 }
 0x9fd   :  { %3178 = vmatpush1.msra.mxu0 %v3059_v40 }
 0x9fe   :  { %3179 = vmatprep.subr.mxu0 %v3055_v62 }
 0x9ff   :  { %3180 = vmatpush1.msra.mxu0 %v3053_v39 }
 0xa00   :  { %4460 = vmatmul.mubr.msk.f32.vlgmr.msra.gmra.mxu0 %vm63_vm0, %v5388_v61 }
 0xa01   :  { %3359 = vmatprep.mubr.f32.mxu0 %v4723_v36 }
 0xab7   :  { %v3144_v0 = vpop.f32.mrf.mxu0 }
 0xab8   :  { %v3145_v11 = vadd.f32 %v3144_v0, %v5246_v33  ;;  %v3268_v33 = vsel %vm591_vm3, %v3267_v32, %v3265_v35 }
 0xab9   :  { %v3146_v30 = vpop.f32.mrf.mxu0 }
 0xaba   :  { %v3147_v13 = vadd.f32 %v3146_v30, %v5251_v28  ;;  %v3221_v23 = vmul.f32 %v3220_v2, %v3145_v11  ;;  %v3271_v28 = vsel %vm595_vm4, %v3270_v25, %v3268_v33  ;;  %v3242_v6 = vmul.f32 %v3241_v42, %v3145_v11 }
 0xabb   :  { %v3279_v40 = vrot.slane %v3271_v28, %v4854_v24 }
 0xabc   :  { %v3222_v5 = vmul.f32 %v3220_v2, %v3147_v13  ;;  %v3243_v21 = vmul.f32 %v3241_v42, %v3147_v13 }
 0xabe   :  { %v3229_v38 = vcombine.low %v3221_v23, %v3222_v5  ;;  %v3250_v4 = vcombine.low %v3242_v6, %v3243_v21 }
 0xac0   :  { %v3233_v10 = vsub.f32 %v5243_v26, %v3229_v38  ;;  %v3215_v18 = vpop.f32.mrf.mxu0 }
 0xac1   :  { %v3216_v20 = vadd.f32 %v3215_v18, %v5268_v31 }
 0xac2   :  { %v3236_v14 = vmul.f32 %v3235_v41, %v3233_v10  ;;  %v3217_v39 = vpop.f32.mrf.mxu0 }
 0xac3   :  { %v3218_v16 = vadd.f32 %v3217_v39, %v5279_v63  ;;  %v3223_v22 = vmul.f32 %v3220_v2, %v3216_v20  ;;  %v3244_v63 = vmul.f32 %v3241_v42, %v3216_v20 }
 0xac4   :  { %v3239_v62 = vmul.f32 %v3238_v9, %v3236_v14 }
 0xac5   :  { %v3224_v8 = vmul.f32 %v3220_v2, %v3218_v16  ;;  %v3245_v31 = vmul.f32 %v3241_v42, %v3218_v16 }
 0xac6   :  { %v5416_v26 = vadd.f32 %v3250_v4, %v3239_v62 }
 0xac7   :  { %v3230_v19 = vcombine.low %v3223_v22, %v3224_v8  ;;  %v3251_v59 = vcombine.low %v3244_v63, %v3245_v31 }
 0xac8   :  { %v5419_v1 = vadd.f32 %v3279_v40, %v5416_v26 }
 0xac9   :  { %v3234_v7 = vsub.f32 %v5264_v3, %v3230_v19 }
 0xaca   :  { %v5424_v15 = vcombine.high %v5419_v1, %v5419_v1 }
 0xacb   :  { %v3237_v17 = vmul.f32 %v3235_v41, %v3234_v7 }
 0xacc   :  { %4469 = vmatprep.subr.msk.mxu0 %vm627_vm6, %v5424_v15 }
 0xacd   :  { %v3240_v24 = vmul.f32 %v3238_v9, %v3237_v17  ;;  %4470 = vmatpush1.msk.msra.mxu0 %vm627_vm6, %v5419_v1 }
 0xace   :  { %4471 = vmatmul.mubr.msk.f32.vlgmr.msra.gmra.mxu0 %vm614_vm8, %v5260_v12 }
 0xacf   :  { %v5432_v0 = vadd.f32 %v3251_v59, %v3240_v24  ;;  %3365 = vmatprep.mubr.f32.mxu0 %v4723_v36 }
 0xad1   :  { %v5436_v3 = vadd.f32 %v3279_v40, %v5432_v0 }
 0xad2   :  { %4472 = vmatmul.mubr.msk.f32.gmra.mxu0 %vm614_vm8, %v5273_v57 }
 0xad3   :  { %v5442_v11 = vcombine.high %v5436_v3, %v5436_v3  ;;  %3371 = vmatprep.mubr.f32.mxu0 %v4723_v36 }
 0xad5   :  { %4475 = vmatprep.subr.msk.mxu1 %vm627_vm6, %v5442_v11 }
 0xad6   :  { %4476 = vmatpush1.msk.msra.mxu1 %vm627_vm6, %v5436_v3  ;;  %4473 = vmatmul.mubr.msk.f32.gmra.mxu0 %vm614_vm8, %v5289_v37 }
 0xad7   :  { %4477 = vmatmul.mubr.msk.f32.vlgmr.msra.gmra.mxu1 %vm614_vm8, %v5260_v12  ;;  %3377 = vmatprep.mubr.f32.mxu0 %v4723_v36 }
 0xad8   :  { %3454 = vmatprep.mubr.f32.mxu1 %v4723_v36 }
 0xada   :  { %4474 = vmatmul.mubr.msk.f32.gmra.mxu0 %vm614_vm8, %v5300_v27 }
 0xadb   :  { %4478 = vmatmul.mubr.msk.f32.gmra.mxu1 %vm614_vm8, %v5273_v57  ;;  %3537 = vmatprep.mubr.f32.mxu0 %v4723_v36 }
 0xadc   :  { %3460 = vmatprep.mubr.f32.mxu1 %v4723_v36 }
 0xadf   :  { %4479 = vmatmul.mubr.msk.f32.gmra.mxu1 %vm614_vm8, %v5289_v37 }
 0xae0   :  { %3466 = vmatprep.mubr.f32.mxu1 %v4723_v36 }
 0xae3   :  { %4480 = vmatmul.mubr.msk.f32.gmra.mxu1 %vm614_vm8, %v5300_v27 }
 0xae4   :  { %3686 = vmatprep.mubr.f32.mxu1 %v4723_v36 }
 0xb8e   :  { %v3361_v12 = vpop.f32.mrf.mxu0 }
 0xb90   :  { %v3363_v29 = vpop.f32.mrf.mxu0 }
 0xb92   :  { %v3367_v34 = vpop.f32.mrf.mxu0 }
 0xb94   :  { %v3369_v2 = vpop.f32.mrf.mxu0 }
 0xb96   :  { %v3373_v30 = vpop.f32.mrf.mxu0 }
 0xb97   :  { %v3450_v57 = vpop.f32.mrf.mxu1 }
 0xb98   :  { %v3375_v13 = vpop.f32.mrf.mxu0 }
 0xb99   :  { %v3452_v35 = vpop.f32.mrf.mxu1 }
 0xb9a   :  { %v3379_v32 = vpop.f32.mrf.mxu0 }
 0xb9b   :  { %v3456_v23 = vpop.f32.mrf.mxu1 }
 0xb9c   :  { %v3381_v5 = vpop.f32.mrf.mxu0 }
 0xb9d   :  { %v3458_v38 = vpop.f32.mrf.mxu1  ;;  %3497 = vmatprep.subr.mxu0 %v3381_v5 }
 0xb9e   :  { %3498 = vmatpush1.msra.mxu0 %v3379_v32 }
 0xb9f   :  { %v3462_v37 = vpop.f32.mrf.mxu1  ;;  %3499 = vmatprep.subr.mxu0 %v3375_v13 }
 0xba0   :  { %3500 = vmatpush1.msra.mxu0 %v3373_v30 }
 0xba1   :  { %v3464_v27 = vpop.f32.mrf.mxu1  ;;  %3501 = vmatprep.subr.mxu0 %v3369_v2 }
 0xba2   :  { %3502 = vmatpush1.msra.mxu0 %v3367_v34 }
 0xba3   :  { %v3468_v33 = vpop.f32.mrf.mxu1  ;;  %3503 = vmatprep.subr.mxu0 %v3363_v29 }
 0xba4   :  { %3504 = vmatpush1.msra.mxu0 %v3361_v12 }
 0xba5   :  { %v3470_v25 = vpop.f32.mrf.mxu1  ;;  %4481 = vmatmul.mubr.msk.f32.vlgmr.msra.gmra.mxu0 %vm63_vm0, %v4971_v48 }
 0xba6   :  { %3735 = vmatprep.subr.mxu0 %v3470_v25  ;;  %3543 = vmatprep.mubr.f32.mxu0 %v4723_v36 }
 0xba7   :  { %3736 = vmatpush1.msra.mxu0 %v3468_v33 }
 0xba8   :  { %3737 = vmatprep.subr.mxu0 %v3464_v27 }
 0xba9   :  { %3738 = vmatpush1.msra.mxu0 %v3462_v37 }
 0xbaa   :  { %4482 = vmatmul.mubr.msk.f32.gmra.mxu0 %vm63_vm0, %v4965_v45  ;;  %3739 = vmatprep.subr.mxu0 %v3458_v38 }
 0xbab   :  { %3740 = vmatpush1.msra.mxu0 %v3456_v23  ;;  %3775 = vmatprep.mubr.f32.mxu0 %v4723_v36 }
 0xbac   :  { %3741 = vmatprep.subr.mxu0 %v3452_v35 }
 0xbad   :  { %3742 = vmatpush1.msra.mxu0 %v3450_v57 }
 0xbae   :  { %4487 = vmatmul.mubr.msk.f32.vlgmr.msra.gmra.mxu0 %vm63_vm0, %v4979_v52 }
 0xbaf   :  { %3781 = vmatprep.mubr.f32.mxu0 %v4723_v36 }
 0xbb2   :  { %4488 = vmatmul.mubr.msk.f32.gmra.mxu0 %vm63_vm0, %v4975_v50 }
 0xbb3   :  { %3924 = vmatprep.mubr.f32.mxu0 %v4723_v36 }
 0xc65   :  { %v3539_v48 = vpop.f32.mrf.mxu0 }
 0xc66   :  { %v3550_v42 = vrot.slane %v3539_v48, 4 }
 0xc67   :  { %v3541_v41 = vpop.f32.mrf.mxu0 }
 0xc68   :  { %v3551_v45 = vmax.f32 %v3539_v48, %v3550_v42  ;;  %v3556_v10 = vrot.slane %v3541_v41, 4 }
 0xc6a   :  { %v3552_v21 = vrot.slane %v3551_v45, 2  ;;  %v3557_v18 = vmax.f32 %v3541_v41, %v3556_v10  ;;  %v3545_v9 = vpop.f32.mrf.mxu0 }
 0xc6b   :  { %v3586_v28 = vrot.slane %v3545_v9, 4 }
 0xc6c   :  { %v3553_v20 = vmax.f32 %v3551_v45, %v3552_v21  ;;  %v3558_v6 = vrot.slane %v3557_v18, 2  ;;  %v3547_v14 = vpop.f32.mrf.mxu0 }
 0xc6d   :  { %v3587_v52 = vmax.f32 %v3545_v9, %v3586_v28  ;;  %v3592_v39 = vrot.slane %v3547_v14, 4 }
 0xc6e   :  { %v3554_v16 = vrot.slane %v3553_v20, 1  ;;  %v3559_v62 = vmax.f32 %v3557_v18, %v3558_v6  ;;  %v3777_v4 = vpop.f32.mrf.mxu0 }
 0xc6f   :  { %v3588_v50 = vrot.slane %v3587_v52, 2  ;;  %v3593_v40 = vmax.f32 %v3547_v14, %v3592_v39  ;;  %v3788_v22 = vrot.slane %v3777_v4, 4 }
 0xc70   :  { %v3555_v8 = vmax.f32 %v3553_v20, %v3554_v16  ;;  %v3560_v19 = vrot.slane %v3559_v62, 1  ;;  %v3779_v7 = vpop.f32.mrf.mxu0 }
 0xc71   :  { %v3589_v31 = vmax.f32 %v3587_v52, %v3588_v50  ;;  %v3594_v63 = vrot.slane %v3593_v40, 2  ;;  %v3789_v17 = vmax.f32 %v3777_v4, %v3788_v22  ;;  %v3794_v24 = vrot.slane %v3779_v7, 4 }
 0xc72   :  { %v3562_v59 = vsub.f32 %v3539_v48, %v3555_v8  ;;  %v3561_v12 = vmax.f32 %v3559_v62, %v3560_v19  ;;  %v3783_v29 = vpop.f32.mrf.mxu0 }
 0xc73   :  { %v3590_v34 = vrot.slane %v3589_v31, 1  ;;  %v3595_v2 = vmax.f32 %v3593_v40, %v3594_v63  ;;  %v3790_v30 = vrot.slane %v3789_v17, 2  ;;  %v3795_v57 = vmax.f32 %v3779_v7, %v3794_v24 }
 0xc74   :  { %v3564_v13 = vmul.f32 1.442695, %v3562_v59  ;;  %v3563_v35 = vsub.f32 %v3541_v41, %v3561_v12  ;;  %v3824_v32 = vrot.slane %v3783_v29, 4  ;;  %v3785_v23 = vpop.f32.mrf.mxu0 }
 0xc75   :  { %v3591_v5 = vmax.f32 %v3589_v31, %v3590_v34  ;;  %v3596_v38 = vrot.slane %v3595_v2, 1  ;;  %v3791_v37 = vmax.f32 %v3789_v17, %v3790_v30  ;;  %v3796_v27 = vrot.slane %v3795_v57, 2 }
 0xc76   :  { %4670 = vpow2.f32 %v3564_v13  ;;  %v3566_v33 = vmul.f32 1.442695, %v3563_v35  ;;  %v3825_v25 = vmax.f32 %v3783_v29, %v3824_v32  ;;  %v3830_v42 = vrot.slane %v3785_v23, 4 }
 0xc77   :  { %v3598_v45 = vsub.f32 %v3545_v9, %v3591_v5  ;;  %v3597_v48 = vmax.f32 %v3595_v2, %v3596_v38  ;;  %v3792_v10 = vrot.slane %v3791_v37, 1  ;;  %v3797_v21 = vmax.f32 %v3795_v57, %v3796_v27 }
 0xc78   :  { %4672 = vpow2.f32 %v3566_v33  ;;  %v3826_v18 = vrot.slane %v3825_v25, 2  ;;  %v3831_v28 = vmax.f32 %v3785_v23, %v3830_v42 }
 0xc79   :  { %v3600_v20 = vmul.f32 1.442695, %v3598_v45  ;;  %v3599_v6 = vsub.f32 %v3547_v14, %v3597_v48  ;;  %v3793_v41 = vmax.f32 %v3791_v37, %v3792_v10  ;;  %v3798_v52 = vrot.slane %v3797_v21, 1 }
 0xc7a   :  { %v3827_v39 = vmax.f32 %v3825_v25, %v3826_v18  ;;  %v3832_v16 = vrot.slane %v3831_v28, 2 }
 0xc7b   :  { %4674 = vpow2.f32 %v3600_v20  ;;  %v3602_v62 = vmul.f32 1.442695, %v3599_v6  ;;  %v3800_v50 = vsub.f32 %v3777_v4, %v3793_v41  ;;  %v3799_v40 = vmax.f32 %v3797_v21, %v3798_v52 }
 0xc7c   :  { %v3828_v22 = vrot.slane %v3827_v39, 1  ;;  %v3833_v8 = vmax.f32 %v3831_v28, %v3832_v16 }
 0xc7d   :  { %4676 = vpow2.f32 %v3602_v62  ;;  %v3802_v9 = vmul.f32 1.442695, %v3800_v50  ;;  %v3801_v19 = vsub.f32 %v3779_v7, %v3799_v40 }
 0xc7e   :  { %v3829_v31 = vmax.f32 %v3827_v39, %v3828_v22  ;;  %v3834_v63 = vrot.slane %v3833_v8, 1 }
 0xc7f   :  { %4678 = vpow2.f32 %v3802_v9  ;;  %v3804_v17 = vmul.f32 1.442695, %v3801_v19 }
 0xc80   :  { %v3836_v24 = vsub.f32 %v3783_v29, %v3829_v31  ;;  %v3835_v59 = vmax.f32 %v3833_v8, %v3834_v63 }
 0xc81   :  { %4680 = vpow2.f32 %v3804_v17 }
 0xc82   :  { %v3838_v14 = vmul.f32 1.442695, %v3836_v24  ;;  %v3837_v12 = vsub.f32 %v3785_v23, %v3835_v59 }
 0xc83   :  { %v5479_v34 = vpop.eup %4670 }
 0xc84   :  { %4682 = vpow2.f32 %v3838_v14  ;;  %v3840_v2 = vmul.f32 1.442695, %v3837_v12  ;;  %v3568_v4 = vrot.slane %v5479_v34, 4 }
 0xc85   :  { %v5482_v30 = vpop.eup %4672 }
 0xc86   :  { %4684 = vpow2.f32 %v3840_v2  ;;  %v3574_v7 = vrot.slane %v5482_v30, 4  ;;  %v3569_v57 = vadd.f32 %v5479_v34, %v3568_v4 }
 0xc88   :  { %v5486_v13 = vpop.eup %4674  ;;  %v3575_v29 = vadd.f32 %v5482_v30, %v3574_v7  ;;  %v3570_v35 = vrot.slane %v3569_v57, 2 }
 0xc89   :  { %v3604_v32 = vrot.slane %v5486_v13, 4 }
 0xc8a   :  { %v5490_v23 = vpop.eup %4676  ;;  %v3576_v5 = vrot.slane %v3575_v29, 2  ;;  %v3571_v38 = vadd.f32 %v3570_v35, %v3569_v57 }
 0xc8b   :  { %v3610_v37 = vrot.slane %v5490_v23, 4  ;;  %v3605_v27 = vadd.f32 %v5486_v13, %v3604_v32 }
 0xc8c   :  { %v5494_v33 = vpop.eup %4678  ;;  %v3577_v25 = vadd.f32 %v3576_v5, %v3575_v29  ;;  %v3572_v18 = vrot.slane %v3571_v38, 1 }
 0xc8d   :  { %v3611_v42 = vadd.f32 %v5490_v23, %v3610_v37  ;;  %v3606_v45 = vrot.slane %v3605_v27, 2  ;;  %v3806_v48 = vrot.slane %v5494_v33, 4 }
 0xc8e   :  { %v5498_v10 = vpop.eup %4680  ;;  %v3578_v21 = vrot.slane %v3577_v25, 1  ;;  %v3573_v22 = vadd.f32 %v3572_v18, %v3571_v38 }
 0xc8f   :  { %v3612_v28 = vrot.slane %v3611_v42, 2  ;;  %v3607_v20 = vadd.f32 %v3606_v45, %v3605_v27  ;;  %v3812_v6 = vrot.slane %v5498_v10, 4  ;;  %v3807_v41 = vadd.f32 %v5494_v33, %v3806_v48 }
 0xc90   :  { %v3579_v52 = vadd.f32 %v3578_v21, %v3577_v25 }
 0xc91   :  { %v5502_v39 = vpop.eup %4682  ;;  %v3613_v16 = vadd.f32 %v3612_v28, %v3611_v42  ;;  %v3608_v62 = vrot.slane %v3607_v20, 1  ;;  %v3813_v50 = vadd.f32 %v5498_v10, %v3812_v6  ;;  %v3808_v40 = vrot.slane %v3807_v41, 2 }
 0xc92   :  { %v3842_v8 = vrot.slane %v5502_v39, 4  ;;  %4686 = vrcp.f32 %v3579_v52 }
 0xc93   :  { %v4685_v9 = vpop.eup %4684  ;;  %v3614_v19 = vrot.slane %v3613_v16, 1  ;;  %v3609_v31 = vadd.f32 %v3608_v62, %v3607_v20  ;;  %v3814_v63 = vrot.slane %v3813_v50, 2  ;;  %v3809_v17 = vadd.f32 %v3808_v40, %v3807_v41 }
 0xc94   :  { %v3848_v24 = vrot.slane %v4685_v9, 4  ;;  %v3843_v59 = vadd.f32 %v5502_v39, %v3842_v8 }
 0xc95   :  { %v3615_v14 = vadd.f32 %v3614_v19, %v3613_v16  ;;  %4688 = vrcp.f32 %v3609_v31  ;;  %v3815_v12 = vadd.f32 %v3814_v63, %v3813_v50  ;;  %v3810_v57 = vrot.slane %v3809_v17, 1 }
 0xc96   :  { %4690 = vrcp.f32 %v3573_v22  ;;  %v3849_v2 = vadd.f32 %v4685_v9, %v3848_v24  ;;  %v3844_v4 = vrot.slane %v3843_v59, 2 }
 0xc97   :  { %4692 = vrcp.f32 %v3615_v14  ;;  %v3816_v7 = vrot.slane %v3815_v12, 1  ;;  %v3811_v37 = vadd.f32 %v3810_v57, %v3809_v17 }
 0xc98   :  { %v3850_v29 = vrot.slane %v3849_v2, 2  ;;  %v3845_v35 = vadd.f32 %v3844_v4, %v3843_v59  ;;  %v4136_v4 = vld [vmem:[%s5588_s10] sm:$0x7] }
 0xc99   :  { %v3817_v32 = vadd.f32 %v3816_v7, %v3815_v12  ;;  %v4724_v7 = vmov 0  }
 0xc9a   :  { %v3851_v5 = vadd.f32 %v3850_v29, %v3849_v2  ;;  %v3846_v38 = vrot.slane %v3845_v35, 1  ;;  %4571 = vset.pattern.permute.xlu0 %v4724_v7 }
 0xc9b   :  { %4694 = vrcp.f32 %v3817_v32  ;;  %4139 = vperm.xlu0 %4571, %v4136_v4   ;;  %v4097_v32 = vstv %s4461_s29 }
 0xc9c   :  { %v3852_v27 = vrot.slane %v3851_v5, 1  ;;  %v3847_v25 = vadd.f32 %v3846_v38, %v3845_v35 }
 0xc9e   :  { %v3853_v42 = vadd.f32 %v3852_v27, %v3851_v5  ;;  %4696 = vrcp.f32 %v3847_v25 }
 0xc9f   :  { %4698 = vrcp.f32 %v3811_v37  ;;  %v4687_v45 = vpop.eup %4686 }
 0xca0   :  { %4700 = vrcp.f32 %v3853_v42  ;;  %v3583_v6 = vmul.f32 -6.5, %v4687_v45  ;;  %v4118_v42 = vstv %s4464_s30 }
 0xca2   :  { %v4689_v48 = vpop.eup %4688  ;;  %v3585_v62 = vmul.f32 %v5482_v30, %v3583_v6 }
 0xca3   :  { %v4691_v21 = vpop.eup %4690  ;;  %v3618_v28 = vmul.f32 7.5, %v4689_v48 }
 0xca4   :  { %v4693_v18 = vpop.eup %4692  ;;  %v3582_v41 = vmul.f32 -6.5, %v4691_v21 }
 0xca5   :  { %v3619_v20 = vmul.f32 7.5, %v4693_v18  ;;  %v3620_v16 = vmul.f32 %v5486_v13, %v3618_v28  ;;  %v4115_v18 = vstv %s5552_s12 }
 0xca6   :  { %v3584_v40 = vmul.f32 %v5479_v34, %v3582_v41 }
 0xca7   :  { %v3621_v52 = vmul.f32 %v5490_v23, %v3619_v20 }
 0xca8   :  { %v4695_v50 = vpop.eup %4694 }
 0xca9   :  { %3650 = vmatprep.subr.mxu1 %v3621_v52  ;;  %v3821_v13 = vmul.f32 -6.5, %v4695_v50 }
 0xcaa   :  { %3651 = vmatpush1.msra.mxu1 %v3620_v16 }
 0xcab   :  { %v4697_v22 = vpop.eup %4696  ;;  %3652 = vmatprep.subr.mxu1 %v3585_v62  ;;  %v3823_v30 = vmul.f32 %v5498_v10, %v3821_v13 }
 0xcac   :  { %v4699_v8 = vpop.eup %4698  ;;  %3653 = vmatpush1.msra.mxu1 %v3584_v40  ;;  %v3856_v31 = vmul.f32 7.5, %v4697_v22 }
 0xcad   :  { %v4701_v19 = vpop.eup %4700  ;;  %4483 = vmatmul.mubr.msk.f32.vlgmr.msra.gmra.mxu1 %vm969_vm9, %v4963_v44  ;;  %v3820_v63 = vmul.f32 -6.5, %v4699_v8 }
 0xcae   :  { %3692 = vmatprep.mubr.f32.mxu1 %v4723_v36  ;;  %v3857_v23 = vmul.f32 7.5, %v4701_v19  ;;  %v3858_v34 = vmul.f32 %v5502_v39, %v3856_v31 }
 0xcaf   :  { %v3822_v44 = vmul.f32 %v5494_v33, %v3820_v63 }
 0xcb0   :  { %v3859_v17 = vmul.f32 %v4685_v9, %v3857_v23 }
 0xcb1   :  { %4484 = vmatmul.mubr.msk.f32.gmra.mxu1 %vm969_vm9, %v4961_v43 }
 0xcb2   :  { %3888 = vmatprep.subr.mxu0 %v3859_v17  ;;  %3698 = vmatprep.mubr.f32.mxu1 %v4723_v36 }
 0xcb3   :  { %3889 = vmatpush1.msra.mxu0 %v3858_v34 }
 0xcb4   :  { %3890 = vmatprep.subr.mxu0 %v3823_v30 }
 0xcb5   :  { %3891 = vmatpush1.msra.mxu0 %v3822_v44  ;;  %4485 = vmatmul.mubr.msk.f32.gmra.mxu1 %vm969_vm9, %v4969_v47 }
 0xcb6   :  { %4489 = vmatmul.mubr.msk.f32.vlgmr.msra.gmra.mxu0 %vm969_vm9, %v4977_v51  ;;  %3704 = vmatprep.mubr.f32.mxu1 %v4723_v36 }
 0xcb7   :  { %3930 = vmatprep.mubr.f32.mxu0 %v4723_v36 }
 0xcb9   :  { %4486 = vmatmul.mubr.msk.f32.gmra.mxu1 %vm969_vm9, %v4967_v46 }
 0xcba   :  { %4490 = vmatmul.mubr.msk.f32.gmra.mxu0 %vm969_vm9, %v4973_v49  ;;  %4015 = vmatprep.mubr.f32.mxu1 %v4723_v36 }
 0xcbb   :  { %3936 = vmatprep.mubr.f32.mxu0 %v4723_v36 }
 0xcbe   :  { %4491 = vmatmul.mubr.msk.f32.gmra.mxu0 %vm969_vm9, %v4985_v55 }
 0xcbf   :  { %3942 = vmatprep.mubr.f32.mxu0 %v4723_v36 }
 0xcc2   :  { %4492 = vmatmul.mubr.msk.f32.gmra.mxu0 %vm969_vm9, %v4981_v53 }
 0xcc3   :  { %4292 = vmatprep.mubr.f32.mxu0 %v4723_v36 }
 0xd6d   :  { %v3688_v43 = vpop.f32.mrf.mxu1 }
 0xd6f   :  { %v3690_v47 = vpop.f32.mrf.mxu1 }
 0xd71   :  { %v3694_v46 = vpop.f32.mrf.mxu1 }
 0xd73   :  { %v3696_v51 = vpop.f32.mrf.mxu1 }
 0xd75   :  { %v3700_v33 = vpop.f32.mrf.mxu1 }
 0xd76   :  { %v3926_v49 = vpop.f32.mrf.mxu0 }
 0xd77   :  { %v3702_v10 = vpop.f32.mrf.mxu1 }
 0xd78   :  { %v3928_v39 = vpop.f32.mrf.mxu0 }
 0xd79   :  { %v3706_v9 = vpop.f32.mrf.mxu1 }
 0xd7a   :  { %v3932_v24 = vpop.f32.mrf.mxu0 }
 0xd7b   :  { %v3708_v59 = vpop.f32.mrf.mxu1 }
 0xd7c   :  { %v3934_v14 = vpop.f32.mrf.mxu0  ;;  %3975 = vmatprep.subr.mxu1 %v3708_v59 }
 0xd7d   :  { %3976 = vmatpush1.msra.mxu1 %v3706_v9 }
 0xd7e   :  { %v3938_v55 = vpop.f32.mrf.mxu0  ;;  %3977 = vmatprep.subr.mxu1 %v3702_v10 }
 0xd7f   :  { %3978 = vmatpush1.msra.mxu1 %v3700_v33 }
 0xd80   :  { %v3940_v53 = vpop.f32.mrf.mxu0  ;;  %3979 = vmatprep.subr.mxu1 %v3696_v51 }
 0xd81   :  { %3980 = vmatpush1.msra.mxu1 %v3694_v46 }
 0xd82   :  { %v3944_v12 = vpop.f32.mrf.mxu0  ;;  %3981 = vmatprep.subr.mxu1 %v3690_v47 }
 0xd83   :  { %3982 = vmatpush1.msra.mxu1 %v3688_v43 }
 0xd84   :  { %v3946_v2 = vpop.f32.mrf.mxu0  ;;  %4493 = vmatmul.mubr.msk.f32.vlgmr.msra.gmra.mxu1 %vm63_vm0, %v5388_v61 }
 0xd85   :  { %4046 = vmatprep.subr.mxu1 %v3946_v2  ;;  %4086 = vmatprep.mubr.f32.mxu1 %v4723_v36 }
 0xd86   :  { %4047 = vmatpush1.msra.mxu1 %v3944_v12 }
 0xd87   :  { %4048 = vmatprep.subr.mxu1 %v3940_v53 }
 0xd88   :  { %4049 = vmatpush1.msra.mxu1 %v3938_v55 }
 0xd89   :  { %4050 = vmatprep.subr.mxu1 %v3934_v14 }
 0xd8a   :  { %4051 = vmatpush1.msra.mxu1 %v3932_v24 }
 0xd8b   :  { %4052 = vmatprep.subr.mxu1 %v3928_v39 }
 0xd8c   :  { %4053 = vmatpush1.msra.mxu1 %v3926_v49 }
 0xd8d   :  { %4494 = vmatmul.mubr.msk.f32.vlgmr.msra.gmra.mxu1 %vm63_vm0, %v5388_v61 }
 0xd8e   :  { %4221 = vmatprep.mubr.f32.mxu1 %v4723_v36 }
 0xe44   :  { %v4017_v57 = vpop.f32.mrf.mxu1 }
 0xe45   :  { %v4018_v29 = vadd.f32 %v4017_v57, %v5419_v1  ;;  %v4112_v1 = vstv %s5548_s6 }
 0xe46   :  { %v4019_v35 = vpop.f32.mrf.mxu1 }
 0xe47   :  { %v4093_v61 = vadd.f32 %v4018_v29, %v4983_v54  ;;  %v4020_v36 = vadd.f32 %v4019_v35, %v5424_v15 }
 0xe49   :  { %v4094_v5 = vadd.f32 %v4020_v36, %v4987_v56  ;;  %v4098_v38 = vmul.f32 %v4097_v32, %v4093_v61  ;;  %v4119_v20 = vmul.f32 %v4118_v42, %v4093_v61 }
 0xe4b   :  { %v4099_v37 = vmul.f32 %v4097_v32, %v4094_v5  ;;  %v4120_v21 = vmul.f32 %v4118_v42, %v4094_v5 }
 0xe4d   :  { %v4106_v27 = vcombine.low %v4098_v38, %v4099_v37  ;;  %v4088_v25 = vpop.f32.mrf.mxu1  ;;  %v4127_v52 = vcombine.low %v4119_v20, %v4120_v21 }
 0xe4e   :  { %v4089_v45 = vadd.f32 %v4088_v25, %v5436_v3 }
 0xe4f   :  { %v4110_v48 = vsub.f32 %v5416_v26, %v4106_v27  ;;  %v4090_v54 = vpop.f32.mrf.mxu1 }
 0xe50   :  { %v4095_v15 = vadd.f32 %v4089_v45, %v4989_v58  ;;  %v4091_v28 = vadd.f32 %v4090_v54, %v5442_v11  ;;  %v4135_v58 = vld [vmem:[%s5587_s9] sm:$0x7] }
 0xe51   :  { %v4113_v6 = vmul.f32 %v4112_v1, %v4110_v48 }
 0xe52   :  { %v4096_v56 = vadd.f32 %v4091_v28, %v4991_v60  ;;  %v4100_v16 = vmul.f32 %v4097_v32, %v4095_v15  ;;  %v4121_v19 = vmul.f32 %v4118_v42, %v4095_v15 }
 0xe53   :  { %v4116_v41 = vmul.f32 %v4115_v18, %v4113_v6 }
 0xe54   :  { %v4101_v62 = vmul.f32 %v4097_v32, %v4096_v56  ;;  %v4122_v22 = vmul.f32 %v4118_v42, %v4096_v56 }
 0xe55   :  { %v4131_v50 = vadd.f32 %v4127_v52, %v4116_v41 }
 0xe56   :  { %v4107_v40 = vcombine.low %v4100_v16, %v4101_v62  ;;  %v4128_v11 = vcombine.low %v4121_v19, %v4122_v22 }
 0xe57   :  { %v4133_v3 = vmul.f32 5.4899807, %v4131_v50 }
 0xe58   :  { %v4111_v26 = vsub.f32 %v5432_v0, %v4107_v40  ;;  %v4140_v0 = vpop.permute.xlu0 %4139 }
 0xe59   :  { %v4144_v8 = vcombine.high %v4133_v3, %v4133_v3 }
 0xe5a   :  { %v4114_v31 = vmul.f32 %v4112_v1, %v4111_v26 }
 0xe5b   :  { %4495 = vmatprep.subr.msk.mxu1 %vm627_vm6, %v4144_v8 }
 0xe5c   :  { %v4117_v60 = vmul.f32 %v4115_v18, %v4114_v31  ;;  %4496 = vmatpush1.msk.msra.mxu1 %vm627_vm6, %v4133_v3 }
 0xe5d   :  { %4497 = vmatmul.mubr.msk.f32.vlgmr.msra.gmra.mxu1 %vm614_vm8, %v4135_v58 }
 0xe5e   :  { %v4132_v23 = vadd.f32 %v4128_v11, %v4117_v60 }
 0xe60   :  { %v4134_v13 = vmul.f32 5.4899807, %v4132_v23 }
 0xe62   :  { %v4145_v63 = vcombine.high %v4134_v13, %v4134_v13 }
 0xe64   :  { %4498 = vmatprep.subr.msk.mxu0 %vm627_vm6, %v4145_v63 }
 0xe65   :  { %4499 = vmatpush1.msk.msra.mxu0 %vm627_vm6, %v4134_v13 }
 0xe66   :  { %4500 = vmatmul.mubr.msk.f32.vlgmr.msra.gmra.mxu0 %vm614_vm8, %v4135_v58 }
 0xf1d   :  { %v4223_v17 = vpop.f32.mrf.mxu1 }
 0xf1e   :  { %v4224_v34 = vadd.f32 %v4223_v17, %v4140_v0 }
 0xf1f   :  { %v4225_v30 = vpop.f32.mrf.mxu1 }
 0xf20   :  { %v4299_v44 = vmul.f32 0.5, %v4224_v34  ;;  %v4226_v43 = vadd.f32 %v4225_v30, %v4140_v0 }
 0xf22   :  { %v4303_v47 = vadd.f32 0.5, %v4299_v44  ;;  %v4300_v46 = vmul.f32 0.5, %v4226_v43 }
 0xf24   :  { %v4307_v51 = vmax.f32 %v4303_v47, 0.0  ;;  %v4304_v33 = vadd.f32 0.5, %v4300_v46 }
 0xf26   :  { %v4294_v49 = vpop.f32.mrf.mxu0  ;;  %v4311_v10 = vmin.f32 %v4307_v51, 1.0  ;;  %v4308_v39 = vmax.f32 %v4304_v33, 0.0 }
 0xf27   :  { %v4295_v9 = vadd.f32 %v4294_v49, %v4140_v0 }
 0xf28   :  { %v4315_v24 = vmul.f32 255.0, %v4311_v10  ;;  %v4312_v59 = vmin.f32 %v4308_v39, 1.0  ;;  %v4296_v14 = vpop.f32.mrf.mxu0 }
 0xf29   :  { %v4301_v55 = vmul.f32 0.5, %v4295_v9  ;;  %v4297_v53 = vadd.f32 %v4296_v14, %v4140_v0 }
 0xf2a   :  { %v4319_v12 = vfloor.f32 %v4315_v24  ;;  %v4316_v2 = vmul.f32 255.0, %v4312_v59 }
 0xf2b   :  { %v4305_v4 = vadd.f32 0.5, %v4301_v55  ;;  %v4302_v7 = vmul.f32 0.5, %v4297_v53 }
 0xf2c   :  { %v4320_v57 = vfloor.f32 %v4316_v2 }
 0xf2d   :  { %v4309_v29 = vmax.f32 %v4305_v4, 0.0  ;;  %v4306_v35 = vadd.f32 0.5, %v4302_v7 }
 0xf2e   :  { %v4327_v61 = vcombine.low %v4319_v12, %v4320_v57 }
 0xf2f   :  { %v4313_v36 = vmin.f32 %v4309_v29, 1.0  ;;  %v4310_v32 = vmax.f32 %v4306_v35, 0.0 }
 0xf30   :  { %4331 = vst [vmem:[%s5589_s11] sm:$0x77] %v4327_v61 }
 0xf31   :  { %v4317_v5 = vmul.f32 255.0, %v4313_v36  ;;  %v4314_v38 = vmin.f32 %v4310_v32, 1.0 }
 0xf33   :  { %v4318_v37 = vmul.f32 255.0, %v4314_v38  ;;  %v4321_v27 = vfloor.f32 %v4317_v5 }
 0xf35   :  { %v4322_v25 = vfloor.f32 %v4318_v37 }
 0xf37   :  { %v4328_v42 = vcombine.low %v4321_v27, %v4322_v25 }
 0xf39   :  { %4332 = vst [vmem:[%s5589_s11 + $0x8] sm:$0x77] %v4328_v42 }
 0xf3a   :  { %4337 = vsyncpa [#allocation3], 1 }

</bundles_post_ra>
